<compile_context>
chip_gen: v5e
topology: v5e:2x2
jax: 0.10.0
libtpu: 0.0.40
codegen_flags: <defaults>
</compile_context>

<pallas_src>
import functools

import numpy as np
import jax
import jax.numpy as jnp
from jax.experimental import pallas as pl
from jax.experimental.pallas import tpu as pltpu

EPS = 1e-5
MXU_DTYPE = jnp.float32     # set to jnp.bfloat16 for the bf16 operand path


# ------------------------------ kernel helpers ------------------------------ #

def _assemble_patch(xpad_ref, patch_ref, c):
    """im2col: 9 static, reshape-free slice stores into a 4-D patch scratch."""
    n, hp, wp, _ = xpad_ref.shape
    hb, wd = hp - 2, wp - 2
    for t in range(9):                                   # statically unrolled
        dy, dx = divmod(t, 3)
        patch_ref[:, :, :, t * c:(t + 1) * c] = xpad_ref[:, dy:dy + hb, dx:dx + wd, :]


def _matmul_bn_relu(patch_ref, c, w, scale, bias):
    """Single MXU matmul over K = 9*c + folded (conv-bias + BN) + ReLU."""
    n, hb, wd, _ = patch_ref.shape
    k = 9 * c
    pm = patch_ref[:, :, :, 0:k].reshape(n * hb * wd, k)
    acc = jnp.dot(pm.astype(MXU_DTYPE), w.astype(MXU_DTYPE),
                  preferred_element_type=jnp.float32)
    return jnp.maximum(acc * scale + bias, 0.0)


# ------------------------------- fused kernel ------------------------------- #

def _band_kernel(x_ref, halo_ref, gw_ref, gs_ref, gb_ref,
                 w1_ref, s1_ref, b1_ref, w2_ref, s2_ref, b2_ref,
                 o_ref, xpad1_ref, xpad2_ref, patch_ref):
    """One band: global conv+BN+ReLU (real halo rows) and local
    conv+BN+ReLU -> conv+BN+ReLU, all fused; output = local2 + global."""
    n, bh, wd, cin = x_ref.shape
    cout = o_ref.shape[-1]

    # ---- shared padded input for conv1 & the global conv ----
    # W-halo columns are never overwritten with data -> zero them every band
    # (core-safe, no reliance on persistent scratch state).
    xpad1_ref[:, :, 0:1, :] = jnp.zeros((n, bh + 2, 1, cin), jnp.float32)
    xpad1_ref[:, :, wd + 1:wd + 2, :] = jnp.zeros((n, bh + 2, 1, cin), jnp.float32)
    xpad1_ref[:, 1:bh + 1, 1:wd + 1, :] = x_ref[...]
    hal = halo_ref[...]                                   # (n, 2, wd, cin)
    xpad1_ref[:, 0:1, 1:wd + 1, :] = hal[:, 0:1]          # row above the band
    xpad1_ref[:, bh + 1:bh + 2, 1:wd + 1, :] = hal[:, 1:2]  # row below the band

    _assemble_patch(xpad1_ref, patch_ref, cin)

    # global conv + BN + ReLU (sees the true neighbouring rows)
    g = _matmul_bn_relu(patch_ref, cin, gw_ref[...], gs_ref[...], gb_ref[...])

    # conv1 must see the band zero-padded on all sides: only the patch entries
    # reading the halo rows are contaminated -> two tiny zero-fix stores.
    patch_ref[:, 0:1, :, 0:3 * cin] = jnp.zeros((n, 1, wd, 3 * cin), jnp.float32)
    patch_ref[:, bh - 1:bh, :, 6 * cin:9 * cin] = jnp.zeros((n, 1, wd, 3 * cin),
                                                            jnp.float32)
    h1 = _matmul_bn_relu(patch_ref, cin, w1_ref[0], s1_ref[0], b1_ref[0])

    # ---- conv2: the intermediate activation never leaves VMEM ----
    # zero only the 1-pixel halo ring; the interior is fully overwritten.
    xpad2_ref[:, 0:1, :, :] = jnp.zeros((n, 1, wd + 2, cout), jnp.float32)
    xpad2_ref[:, bh + 1:bh + 2, :, :] = jnp.zeros((n, 1, wd + 2, cout), jnp.float32)
    xpad2_ref[:, :, 0:1, :] = jnp.zeros((n, bh + 2, 1, cout), jnp.float32)
    xpad2_ref[:, :, wd + 1:wd + 2, :] = jnp.zeros((n, bh + 2, 1, cout), jnp.float32)
    xpad2_ref[:, 1:bh + 1, 1:wd + 1, :] = h1.reshape(n, bh, wd, cout)

    _assemble_patch(xpad2_ref, patch_ref, cout)           # patch buffer reused
    h2 = _matmul_bn_relu(patch_ref, cout, w2_ref[0], s2_ref[0], b2_ref[0])

    # fused residual add with the global features; unpadded NHWC store.
    o_ref[...] = (h2 + g).reshape(n, bh, wd, cout)


# ----------------------- parameter folding / packing ----------------------- #

def _fold(conv, bn):
    """Fold conv bias + eval-mode BN into a (9*Cin, Cout) matmul weight plus a
    per-channel scale/bias applied before the ReLU."""
    w, b = conv
    gamma, beta, mean, var = bn
    scale = gamma / jnp.sqrt(var + EPS)
    bias = beta + scale * (b - mean)
    cout, cin = w.shape[0], w.shape[1]
    # OIHW -> (kh, kw, Cin, Cout) -> (9*Cin, Cout); tap-major, cin-minor K order
    # to match _assemble_patch.
    w9 = jnp.transpose(w, (2, 3, 1, 0)).reshape(9 * cin, cout)
    return (w9.astype(MXU_DTYPE),
            scale.reshape(1, cout).astype(jnp.float32),
            bias.reshape(1, cout).astype(jnp.float32))


def _fold_and_pack(params, num_bands):
    gw, gs, gb = _fold(params["gconv"], params["gbn"])
    w1, s1, b1, w2, s2, b2 = [], [], [], [], [], []
    for band in range(num_bands):
        p = params["local"][band]
        a, s, c = _fold(p["conv1"], p["bn1"]); w1.append(a); s1.append(s); b1.append(c)
        a, s, c = _fold(p["conv2"], p["bn2"]); w2.append(a); s2.append(s); b2.append(c)
    return dict(gw=gw, gs=gs, gb=gb,
                w1=jnp.stack(w1), s1=jnp.stack(s1), b1=jnp.stack(b1),
                w2=jnp.stack(w2), s2=jnp.stack(s2), b2=jnp.stack(b2))


def _vmem_limit_bytes(block_shapes, scratch_shapes):
    """Derive the VMEM budget from (8,128)-padded scratch + double-buffered
    block footprints (f32), with headroom; clamped to stay chip-safe."""
    def padded(shape):
        s = list(shape)
        s[-1] = ((s[-1] + 127) // 128) * 128
        if len(s) >= 2:
            s[-2] = ((s[-2] + 7) // 8) * 8
        b = 4
        for d in s:
            b *= d
        return b
    need = sum(padded(s) for s in scratch_shapes)        # single-buffered scratch
    need += 2 * sum(padded(s) for s in block_shapes)     # double-buffered blocks
    return int(min(max(2 * need + (4 << 20), 32 << 20), 96 << 20))


# ------------------------------- forward pass ------------------------------- #

@functools.partial(jax.jit, static_argnums=(2,))
def frequency_distributed_block(x_nchw, params, num_bands):
    # TODO(synk): if the surrounding model consumes NHWC, both transposes below
    #             (full HBM passes) can be dropped.
    x = jnp.transpose(x_nchw.astype(jnp.float32), (0, 2, 3, 1))   # NCHW -> NHWC
    n, h, wd, cin = x.shape
    assert h % num_bands == 0
    bh = h // num_bands
    cout = params["gconv"][0].shape[0]

    f = _fold_and_pack(params, num_bands)

    # Halo rows for the fused global conv: for each band, the image row just
    # above and just below it (zeros at the image top/bottom). Tiny side input.
    zrow = jnp.zeros((n, 1, wd, cin), jnp.float32)
    halos = []
    for b in range(num_bands):
        top = x[:, b * bh - 1:b * bh] if b > 0 else zrow
        bot = x[:, (b + 1) * bh:(b + 1) * bh + 1] if b < num_bands - 1 else zrow
        halos.append(jnp.concatenate([top, bot], axis=1))           # (n, 2, wd, cin)
    halo = jnp.concatenate(halos, axis=0)                # (num_bands * n, 2, wd, cin)

    block_shapes = [
        (n, bh, wd, cin), (n, 2, wd, cin),
        (9 * cin, cout), (1, cout), (1, cout),
        (1, 9 * cin, cout), (1, 1, cout), (1, 1, cout),
        (1, 9 * cout, cout), (1, 1, cout), (1, 1, cout),
        (n, bh, wd, cout),
    ]
    scratch_shapes = [
        (n, bh + 2, wd + 2, cin),
        (n, bh + 2, wd + 2, cout),
        (n, bh, wd, 9 * max(cin, cout)),
    ]

    out_nhwc = pl.pallas_call(
        _band_kernel,
        grid=(num_bands,),
        in_specs=[
            pl.BlockSpec((n, bh, wd, cin), lambda b: (0, b, 0, 0)),      # band of x
            pl.BlockSpec((n, 2, wd, cin), lambda b: (b, 0, 0, 0)),       # halo rows
            pl.BlockSpec((9 * cin, cout), lambda b: (0, 0)),             # loop-invariant
            pl.BlockSpec((1, cout), lambda b: (0, 0)),                   # loop-invariant
            pl.BlockSpec((1, cout), lambda b: (0, 0)),                   # loop-invariant
            pl.BlockSpec((1, 9 * cin, cout), lambda b: (b, 0, 0)),
            pl.BlockSpec((1, 1, cout), lambda b: (b, 0, 0)),
            pl.BlockSpec((1, 1, cout), lambda b: (b, 0, 0)),
            pl.BlockSpec((1, 9 * cout, cout), lambda b: (b, 0, 0)),
            pl.BlockSpec((1, 1, cout), lambda b: (b, 0, 0)),
            pl.BlockSpec((1, 1, cout), lambda b: (b, 0, 0)),
        ],
        out_specs=pl.BlockSpec((n, bh, wd, cout), lambda b: (0, b, 0, 0)),
        out_shape=jax.ShapeDtypeStruct((n, h, wd, cout), jnp.float32),
        scratch_shapes=[
            pltpu.VMEM(scratch_shapes[0], jnp.float32),   # padded x band (+ halos)
            pltpu.VMEM(scratch_shapes[1], jnp.float32),   # padded h1 (VMEM-only)
            pltpu.VMEM(scratch_shapes[2], jnp.float32),   # shared im2col patch
        ],
        compiler_params=pltpu.CompilerParams(
            dimension_semantics=("parallel",),            # megacore-shardable
            vmem_limit_bytes=_vmem_limit_bytes(block_shapes, scratch_shapes)),
    )(x, halo, f["gw"], f["gs"], f["gb"],
      f["w1"], f["s1"], f["b1"], f["w2"], f["s2"], f["b2"])

    return jnp.transpose(out_nhwc, (0, 3, 1, 2))          # NHWC -> NCHW


# ------------------------------ param init (glue) --------------------------- #

def init_params(key, cin, cout, num_bands):
    def conv_init(k, ci, co):
        kw, kb = jax.random.split(k)
        w = jax.random.normal(kw, (co, ci, 3, 3), jnp.float32) * 0.1   # OIHW
        b = jax.random.normal(kb, (co,), jnp.float32) * 0.1
        return w, b

    def bn_init(k, co):
        k1, k2, k3, k4 = jax.random.split(k, 4)
        gamma = jax.random.uniform(k1, (co,), jnp.float32, 0.5, 1.5)
        beta = jax.random.normal(k2, (co,), jnp.float32) * 0.1
        mean = jax.random.normal(k3, (co,), jnp.float32) * 0.1
        var = jax.random.uniform(k4, (co,), jnp.float32, 0.5, 1.5)
        return gamma, beta, mean, var

    keys = jax.random.split(key, num_bands + 1)
    params = {"local": []}
    for b in range(num_bands):
        k1, k2, k3, k4 = jax.random.split(keys[b], 4)
        params["local"].append({
            "conv1": conv_init(k1, cin, cout), "bn1": bn_init(k2, cout),
            "conv2": conv_init(k3, cout, cout), "bn2": bn_init(k4, cout),
        })
    kg1, kg2 = jax.random.split(keys[-1])
    params["gconv"] = conv_init(kg1, cin, cout)
    params["gbn"] = bn_init(kg2, cout)
    return params


# ----------------------------- pure-JAX reference --------------------------- #

def _conv_ref(x, w, b):
    y = jax.lax.conv_general_dilated(
        x, w, (1, 1), [(1, 1), (1, 1)],
        dimension_numbers=("NCHW", "OIHW", "NCHW"),
        precision=jax.lax.Precision.HIGHEST)
    return y + b[None, :, None, None]


def _bn_relu_ref(y, bn):
    gamma, beta, mean, var = bn
    yn = (y - mean[None, :, None, None]) / jnp.sqrt(var[None, :, None, None] + EPS)
    return jnp.maximum(gamma[None, :, None, None] * yn + beta[None, :, None, None], 0.0)


def reference_forward(x, params, num_bands):
    x = x.astype(jnp.float32)
    bands = jnp.split(x, num_bands, axis=2)
    local_features = []
    for b, xb in enumerate(bands):
        p = params["local"][b]
        h = _bn_relu_ref(_conv_ref(xb, *p["conv1"]), p["bn1"])
        h = _bn_relu_ref(_conv_ref(h, *p["conv2"]), p["bn2"])
        local_features.append(h)
    g = _bn_relu_ref(_conv_ref(x, *params["gconv"]), params["gbn"])
    return jnp.concatenate(local_features, axis=2) + g


# ----------------------------------- main ------------------------------------ #

if __name__ == "__main__":
    key = jax.random.PRNGKey(0)
    kx, kp = jax.random.split(key)

    N, Cin, Cout, H, W, num_bands = 2, 4, 8, 16, 16, 2
    x = jax.random.normal(kx, (N, Cin, H, W), jnp.float32)   # NCHW like PyTorch
    params = init_params(kp, Cin, Cout, num_bands)

    out = frequency_distributed_block(x, params, num_bands)
    out = jax.block_until_ready(out)

    ref = reference_forward(x, params, num_bands)
    # In-kernel matmuls use the MXU default precision; the reference uses
    # Precision.HIGHEST, hence the slightly relaxed atol.
    np.testing.assert_allclose(np.asarray(out), np.asarray(ref), rtol=1e-3, atol=2e-3)

    print("KERNEL_OK")
</pallas_src>

<mosaic_0001>
module attributes {stable_mosaic.version = 11 : i64} {
  func.func @_band_kernel(%arg0: i32, %arg1: memref<2x8x16x4xf32, #tpu.memory_space<vmem>>, %arg2: memref<2x2x16x4xf32, #tpu.memory_space<vmem>>, %arg3: memref<36x8xf32, #tpu.memory_space<vmem>>, %arg4: memref<1x8xf32, #tpu.memory_space<vmem>>, %arg5: memref<1x8xf32, #tpu.memory_space<vmem>>, %arg6: memref<1x36x8xf32, #tpu.memory_space<vmem>>, %arg7: memref<1x1x8xf32, #tpu.memory_space<vmem>>, %arg8: memref<1x1x8xf32, #tpu.memory_space<vmem>>, %arg9: memref<1x72x8xf32, #tpu.memory_space<vmem>>, %arg10: memref<1x1x8xf32, #tpu.memory_space<vmem>>, %arg11: memref<1x1x8xf32, #tpu.memory_space<vmem>>, %arg12: memref<2x8x16x8xf32, #tpu.memory_space<vmem>>, %arg13: memref<2x10x18x4xf32, #tpu.memory_space<vmem>>, %arg14: memref<2x10x18x8xf32, #tpu.memory_space<vmem>>, %arg15: memref<2x8x16x72xf32, #tpu.memory_space<vmem>>) attributes {dimension_semantics = [#tpu.dimension_semantics<parallel>], iteration_bounds = array<i64: 2>, scalar_prefetch = 0 : i64, scratch_operands = 3 : i64, tpu.core_type = #tpu.core_type<tc>, window_params = [{transform_indices = @transform_0, window_bounds = array<i64: 2, 8, 16, 4>}, {transform_indices = @transform_1, window_bounds = array<i64: 2, 2, 16, 4>}, {pipeline_mode = #tpu.pipeline_mode<synchronous>, transform_indices = @transform_2, window_bounds = array<i64: 36, 8>}, {pipeline_mode = #tpu.pipeline_mode<synchronous>, transform_indices = @transform_3, window_bounds = array<i64: 1, 8>}, {pipeline_mode = #tpu.pipeline_mode<synchronous>, transform_indices = @transform_4, window_bounds = array<i64: 1, 8>}, {transform_indices = @transform_5, window_bounds = array<i64: 1, 36, 8>}, {transform_indices = @transform_6, window_bounds = array<i64: 1, 1, 8>}, {transform_indices = @transform_7, window_bounds = array<i64: 1, 1, 8>}, {transform_indices = @transform_8, window_bounds = array<i64: 1, 72, 8>}, {transform_indices = @transform_9, window_bounds = array<i64: 1, 1, 8>}, {transform_indices = @transform_10, window_bounds = array<i64: 1, 1, 8>}, {transform_indices = @transform_11, window_bounds = array<i64: 2, 8, 16, 8>}]} {
    %cst = arith.constant 0.000000e+00 : f32
    %0 = vector.broadcast %cst : f32 to vector<2x10x1x4xf32>
    %c0 = arith.constant 0 : index
    %c0_0 = arith.constant 0 : index
    %c0_1 = arith.constant 0 : index
    %c0_2 = arith.constant 0 : index
    %1 = vector.load %arg13[%c0, %c0_0, %c0_1, %c0_2] : memref<2x10x18x4xf32, #tpu.memory_space<vmem>>, vector<2x10x1x4xf32>
    tpu.vector_store %arg13[%c0, %c0_0, %c0_1, %c0_2], %0 {strides = array<i32>} : memref<2x10x18x4xf32, #tpu.memory_space<vmem>>, vector<2x10x1x4xf32>,
    %cst_3 = arith.constant 0.000000e+00 : f32
    %2 = vector.broadcast %cst_3 : f32 to vector<2x10x1x4xf32>
    %c0_4 = arith.constant 0 : index
    %c0_5 = arith.constant 0 : index
    %c17 = arith.constant 17 : index
    %c0_6 = arith.constant 0 : index
    %3 = vector.load %arg13[%c0_4, %c0_5, %c17, %c0_6] : memref<2x10x18x4xf32, #tpu.memory_space<vmem>>, vector<2x10x1x4xf32>
    tpu.vector_store %arg13[%c0_4, %c0_5, %c17, %c0_6], %2 {strides = array<i32>} : memref<2x10x18x4xf32, #tpu.memory_space<vmem>>, vector<2x10x1x4xf32>,
    %c0_7 = arith.constant 0 : index
    %c0_8 = arith.constant 0 : index
    %c0_9 = arith.constant 0 : index
    %c0_10 = arith.constant 0 : index
    %4 = vector.load %arg1[%c0_7, %c0_8, %c0_9, %c0_10] : memref<2x8x16x4xf32, #tpu.memory_space<vmem>>, vector<2x8x16x4xf32>
    %c0_11 = arith.constant 0 : index
    %c1 = arith.constant 1 : index
    %c1_12 = arith.constant 1 : index
    %c0_13 = arith.constant 0 : index
    %5 = vector.load %arg13[%c0_11, %c1, %c1_12, %c0_13] : memref<2x10x18x4xf32, #tpu.memory_space<vmem>>, vector<2x8x16x4xf32>
    tpu.vector_store %arg13[%c0_11, %c1, %c1_12, %c0_13], %4 {strides = array<i32>} : memref<2x10x18x4xf32, #tpu.memory_space<vmem>>, vector<2x8x16x4xf32>,
    %c0_14 = arith.constant 0 : index
    %c0_15 = arith.constant 0 : index
    %c0_16 = arith.constant 0 : index
    %c0_17 = arith.constant 0 : index
    %6 = vector.load %arg2[%c0_14, %c0_15, %c0_16, %c0_17] : memref<2x2x16x4xf32, #tpu.memory_space<vmem>>, vector<2x2x16x4xf32>
    %7 = vector.extract_strided_slice %6 {offsets = [0, 0, 0, 0], sizes = [2, 1, 16, 4], strides = [1, 1, 1, 1]} : vector<2x2x16x4xf32> to vector<2x1x16x4xf32>
    %c0_18 = arith.constant 0 : index
    %c0_19 = arith.constant 0 : index
    %c1_20 = arith.constant 1 : index
    %c0_21 = arith.constant 0 : index
    %8 = vector.load %arg13[%c0_18, %c0_19, %c1_20, %c0_21] : memref<2x10x18x4xf32, #tpu.memory_space<vmem>>, vector<2x1x16x4xf32>
    tpu.vector_store %arg13[%c0_18, %c0_19, %c1_20, %c0_21], %7 {strides = array<i32>} : memref<2x10x18x4xf32, #tpu.memory_space<vmem>>, vector<2x1x16x4xf32>,
    %9 = vector.extract_strided_slice %6 {offsets = [0, 1, 0, 0], sizes = [2, 1, 16, 4], strides = [1, 1, 1, 1]} : vector<2x2x16x4xf32> to vector<2x1x16x4xf32>
    %c0_22 = arith.constant 0 : index
    %c9 = arith.constant 9 : index
    %c1_23 = arith.constant 1 : index
    %c0_24 = arith.constant 0 : index
    %10 = vector.load %arg13[%c0_22, %c9, %c1_23, %c0_24] : memref<2x10x18x4xf32, #tpu.memory_space<vmem>>, vector<2x1x16x4xf32>
    tpu.vector_store %arg13[%c0_22, %c9, %c1_23, %c0_24], %9 {strides = array<i32>} : memref<2x10x18x4xf32, #tpu.memory_space<vmem>>, vector<2x1x16x4xf32>,
    %c0_25 = arith.constant 0 : index
    %c0_26 = arith.constant 0 : index
    %c0_27 = arith.constant 0 : index
    %c0_28 = arith.constant 0 : index
    %11 = vector.load %arg13[%c0_25, %c0_26, %c0_27, %c0_28] : memref<2x10x18x4xf32, #tpu.memory_space<vmem>>, vector<2x8x16x4xf32>
    %c0_29 = arith.constant 0 : index
    %c0_30 = arith.constant 0 : index
    %c0_31 = arith.constant 0 : index
    %c0_32 = arith.constant 0 : index
    %12 = vector.load %arg15[%c0_29, %c0_30, %c0_31, %c0_32] : memref<2x8x16x72xf32, #tpu.memory_space<vmem>>, vector<2x8x16x4xf32>
    tpu.vector_store %arg15[%c0_29, %c0_30, %c0_31, %c0_32], %11 {strides = array<i32>} : memref<2x8x16x72xf32, #tpu.memory_space<vmem>>, vector<2x8x16x4xf32>,
    %c0_33 = arith.constant 0 : index
    %c0_34 = arith.constant 0 : index
    %c1_35 = arith.constant 1 : index
    %c0_36 = arith.constant 0 : index
    %13 = vector.load %arg13[%c0_33, %c0_34, %c1_35, %c0_36] : memref<2x10x18x4xf32, #tpu.memory_space<vmem>>, vector<2x8x16x4xf32>
    %c0_37 = arith.constant 0 : index
    %c0_38 = arith.constant 0 : index
    %c0_39 = arith.constant 0 : index
    %c4 = arith.constant 4 : index
    %14 = vector.load %arg15[%c0_37, %c0_38, %c0_39, %c4] : memref<2x8x16x72xf32, #tpu.memory_space<vmem>>, vector<2x8x16x4xf32>
    tpu.vector_store %arg15[%c0_37, %c0_38, %c0_39, %c4], %13 {strides = array<i32>} : memref<2x8x16x72xf32, #tpu.memory_space<vmem>>, vector<2x8x16x4xf32>,
    %c0_40 = arith.constant 0 : index
    %c0_41 = arith.constant 0 : index
    %c2 = arith.constant 2 : index
    %c0_42 = arith.constant 0 : index
    %15 = vector.load %arg13[%c0_40, %c0_41, %c2, %c0_42] : memref<2x10x18x4xf32, #tpu.memory_space<vmem>>, vector<2x8x16x4xf32>
    %c0_43 = arith.constant 0 : index
    %c0_44 = arith.constant 0 : index
    %c0_45 = arith.constant 0 : index
    %c8 = arith.constant 8 : index
    %16 = vector.load %arg15[%c0_43, %c0_44, %c0_45, %c8] : memref<2x8x16x72xf32, #tpu.memory_space<vmem>>, vector<2x8x16x4xf32>
    tpu.vector_store %arg15[%c0_43, %c0_44, %c0_45, %c8], %15 {strides = array<i32>} : memref<2x8x16x72xf32, #tpu.memory_space<vmem>>, vector<2x8x16x4xf32>,
    %c0_46 = arith.constant 0 : index
    %c1_47 = arith.constant 1 : index
    %c0_48 = arith.constant 0 : index
    %c0_49 = arith.constant 0 : index
    %17 = vector.load %arg13[%c0_46, %c1_47, %c0_48, %c0_49] : memref<2x10x18x4xf32, #tpu.memory_space<vmem>>, vector<2x8x16x4xf32>
    %c0_50 = arith.constant 0 : index
    %c0_51 = arith.constant 0 : index
    %c0_52 = arith.constant 0 : index
    %c12 = arith.constant 12 : index
    %18 = vector.load %arg15[%c0_50, %c0_51, %c0_52, %c12] : memref<2x8x16x72xf32, #tpu.memory_space<vmem>>, vector<2x8x16x4xf32>
    tpu.vector_store %arg15[%c0_50, %c0_51, %c0_52, %c12], %17 {strides = array<i32>} : memref<2x8x16x72xf32, #tpu.memory_space<vmem>>, vector<2x8x16x4xf32>,
    %c0_53 = arith.constant 0 : index
    %c1_54 = arith.constant 1 : index
    %c1_55 = arith.constant 1 : index
    %c0_56 = arith.constant 0 : index
    %19 = vector.load %arg13[%c0_53, %c1_54, %c1_55, %c0_56] : memref<2x10x18x4xf32, #tpu.memory_space<vmem>>, vector<2x8x16x4xf32>
    %c0_57 = arith.constant 0 : index
    %c0_58 = arith.constant 0 : index
    %c0_59 = arith.constant 0 : index
    %c16 = arith.constant 16 : index
    %20 = vector.load %arg15[%c0_57, %c0_58, %c0_59, %c16] : memref<2x8x16x72xf32, #tpu.memory_space<vmem>>, vector<2x8x16x4xf32>
    tpu.vector_store %arg15[%c0_57, %c0_58, %c0_59, %c16], %19 {strides = array<i32>} : memref<2x8x16x72xf32, #tpu.memory_space<vmem>>, vector<2x8x16x4xf32>,
    %c0_60 = arith.constant 0 : index
    %c1_61 = arith.constant 1 : index
    %c2_62 = arith.constant 2 : index
    %c0_63 = arith.constant 0 : index
    %21 = vector.load %arg13[%c0_60, %c1_61, %c2_62, %c0_63] : memref<2x10x18x4xf32, #tpu.memory_space<vmem>>, vector<2x8x16x4xf32>
    %c0_64 = arith.constant 0 : index
    %c0_65 = arith.constant 0 : index
    %c0_66 = arith.constant 0 : index
    %c20 = arith.constant 20 : index
    %22 = vector.load %arg15[%c0_64, %c0_65, %c0_66, %c20] : memref<2x8x16x72xf32, #tpu.memory_space<vmem>>, vector<2x8x16x4xf32>
    tpu.vector_store %arg15[%c0_64, %c0_65, %c0_66, %c20], %21 {strides = array<i32>} : memref<2x8x16x72xf32, #tpu.memory_space<vmem>>, vector<2x8x16x4xf32>,
    %c0_67 = arith.constant 0 : index
    %c2_68 = arith.constant 2 : index
    %c0_69 = arith.constant 0 : index
    %c0_70 = arith.constant 0 : index
    %23 = vector.load %arg13[%c0_67, %c2_68, %c0_69, %c0_70] : memref<2x10x18x4xf32, #tpu.memory_space<vmem>>, vector<2x8x16x4xf32>
    %c0_71 = arith.constant 0 : index
    %c0_72 = arith.constant 0 : index
    %c0_73 = arith.constant 0 : index
    %c24 = arith.constant 24 : index
    %24 = vector.load %arg15[%c0_71, %c0_72, %c0_73, %c24] : memref<2x8x16x72xf32, #tpu.memory_space<vmem>>, vector<2x8x16x4xf32>
    tpu.vector_store %arg15[%c0_71, %c0_72, %c0_73, %c24], %23 {strides = array<i32>} : memref<2x8x16x72xf32, #tpu.memory_space<vmem>>, vector<2x8x16x4xf32>,
    %c0_74 = arith.constant 0 : index
    %c2_75 = arith.constant 2 : index
    %c1_76 = arith.constant 1 : index
    %c0_77 = arith.constant 0 : index
    %25 = vector.load %arg13[%c0_74, %c2_75, %c1_76, %c0_77] : memref<2x10x18x4xf32, #tpu.memory_space<vmem>>, vector<2x8x16x4xf32>
    %c0_78 = arith.constant 0 : index
    %c0_79 = arith.constant 0 : index
    %c0_80 = arith.constant 0 : index
    %c28 = arith.constant 28 : index
    %26 = vector.load %arg15[%c0_78, %c0_79, %c0_80, %c28] : memref<2x8x16x72xf32, #tpu.memory_space<vmem>>, vector<2x8x16x4xf32>
    tpu.vector_store %arg15[%c0_78, %c0_79, %c0_80, %c28], %25 {strides = array<i32>} : memref<2x8x16x72xf32, #tpu.memory_space<vmem>>, vector<2x8x16x4xf32>,
    %c0_81 = arith.constant 0 : index
    %c2_82 = arith.constant 2 : index
    %c2_83 = arith.constant 2 : index
    %c0_84 = arith.constant 0 : index
    %27 = vector.load %arg13[%c0_81, %c2_82, %c2_83, %c0_84] : memref<2x10x18x4xf32, #tpu.memory_space<vmem>>, vector<2x8x16x4xf32>
    %c0_85 = arith.constant 0 : index
    %c0_86 = arith.constant 0 : index
    %c0_87 = arith.constant 0 : index
    %c32 = arith.constant 32 : index
    %28 = vector.load %arg15[%c0_85, %c0_86, %c0_87, %c32] : memref<2x8x16x72xf32, #tpu.memory_space<vmem>>, vector<2x8x16x4xf32>
    tpu.vector_store %arg15[%c0_85, %c0_86, %c0_87, %c32], %27 {strides = array<i32>} : memref<2x8x16x72xf32, #tpu.memory_space<vmem>>, vector<2x8x16x4xf32>,
    %c0_88 = arith.constant 0 : index
    %c0_89 = arith.constant 0 : index
    %29 = vector.load %arg3[%c0_88, %c0_89] : memref<36x8xf32, #tpu.memory_space<vmem>>, vector<36x8xf32>
    %c0_90 = arith.constant 0 : index
    %c0_91 = arith.constant 0 : index
    %30 = vector.load %arg4[%c0_90, %c0_91] : memref<1x8xf32, #tpu.memory_space<vmem>>, vector<1x8xf32>
    %c0_92 = arith.constant 0 : index
    %c0_93 = arith.constant 0 : index
    %31 = vector.load %arg5[%c0_92, %c0_93] : memref<1x8xf32, #tpu.memory_space<vmem>>, vector<1x8xf32>
    %c0_94 = arith.constant 0 : index
    %c0_95 = arith.constant 0 : index
    %c0_96 = arith.constant 0 : index
    %c0_97 = arith.constant 0 : index
    %32 = vector.load %arg15[%c0_94, %c0_95, %c0_96, %c0_97] : memref<2x8x16x72xf32, #tpu.memory_space<vmem>>, vector<2x8x16x36xf32>
    %33 = vector.shape_cast %32 : vector<2x8x16x36xf32> to vector<256x36xf32>
    %cst_98 = arith.constant dense<0.000000e+00> : vector<256x8xf32>
    %34 = tpu.matmul %33, %29, %cst_98 {dimension_numbers = #tpu.dot_dimension_numbers<[1], [0], [0], [1], [0, 0, 1, 1], [], []>} : vector<256x36xf32>, vector<36x8xf32>, vector<256x8xf32> -> vector<256x8xf32>
    %35 = vector.broadcast %30 : vector<1x8xf32> to vector<256x8xf32>
    %36 = arith.mulf %34, %35 : vector<256x8xf32>
    %37 = vector.broadcast %31 : vector<1x8xf32> to vector<256x8xf32>
    %38 = arith.addf %36, %37 : vector<256x8xf32>
    %cst_99 = arith.constant 0.000000e+00 : f32
    %39 = vector.broadcast %cst_99 : f32 to vector<256x8xf32>
    %40 = arith.maximumf %38, %39 : vector<256x8xf32>
    %cst_100 = arith.constant 0.000000e+00 : f32
    %41 = vector.broadcast %cst_100 : f32 to vector<2x1x16x12xf32>
    %c0_101 = arith.constant 0 : index
    %c0_102 = arith.constant 0 : index
    %c0_103 = arith.constant 0 : index
    %c0_104 = arith.constant 0 : index
    %42 = vector.load %arg15[%c0_101, %c0_102, %c0_103, %c0_104] : memref<2x8x16x72xf32, #tpu.memory_space<vmem>>, vector<2x1x16x12xf32>
    tpu.vector_store %arg15[%c0_101, %c0_102, %c0_103, %c0_104], %41 {strides = array<i32>} : memref<2x8x16x72xf32, #tpu.memory_space<vmem>>, vector<2x1x16x12xf32>,
    %cst_105 = arith.constant 0.000000e+00 : f32
    %43 = vector.broadcast %cst_105 : f32 to vector<2x1x16x12xf32>
    %c0_106 = arith.constant 0 : index
    %c7 = arith.constant 7 : index
    %c0_107 = arith.constant 0 : index
    %c24_108 = arith.constant 24 : index
    %44 = vector.load %arg15[%c0_106, %c7, %c0_107, %c24_108] : memref<2x8x16x72xf32, #tpu.memory_space<vmem>>, vector<2x1x16x12xf32>
    tpu.vector_store %arg15[%c0_106, %c7, %c0_107, %c24_108], %43 {strides = array<i32>} : memref<2x8x16x72xf32, #tpu.memory_space<vmem>>, vector<2x1x16x12xf32>,
    %c0_109 = arith.constant 0 : index
    %c0_110 = arith.constant 0 : index
    %c0_111 = arith.constant 0 : index
    %45 = vector.load %arg6[%c0_109, %c0_110, %c0_111] : memref<1x36x8xf32, #tpu.memory_space<vmem>>, vector<1x36x8xf32>
    %46 = vector.shape_cast %45 : vector<1x36x8xf32> to vector<36x8xf32>
    %c0_112 = arith.constant 0 : index
    %c0_113 = arith.constant 0 : index
    %c0_114 = arith.constant 0 : index
    %47 = vector.load %arg7[%c0_112, %c0_113, %c0_114] : memref<1x1x8xf32, #tpu.memory_space<vmem>>, vector<1x1x8xf32>
    %48 = vector.shape_cast %47 : vector<1x1x8xf32> to vector<1x8xf32>
    %c0_115 = arith.constant 0 : index
    %c0_116 = arith.constant 0 : index
    %c0_117 = arith.constant 0 : index
    %49 = vector.load %arg8[%c0_115, %c0_116, %c0_117] : memref<1x1x8xf32, #tpu.memory_space<vmem>>, vector<1x1x8xf32>
    %50 = vector.shape_cast %49 : vector<1x1x8xf32> to vector<1x8xf32>
    %c0_118 = arith.constant 0 : index
    %c0_119 = arith.constant 0 : index
    %c0_120 = arith.constant 0 : index
    %c0_121 = arith.constant 0 : index
    %51 = vector.load %arg15[%c0_118, %c0_119, %c0_120, %c0_121] : memref<2x8x16x72xf32, #tpu.memory_space<vmem>>, vector<2x8x16x36xf32>
    %52 = vector.shape_cast %51 : vector<2x8x16x36xf32> to vector<256x36xf32>
    %cst_122 = arith.constant dense<0.000000e+00> : vector<256x8xf32>
    %53 = tpu.matmul %52, %46, %cst_122 {dimension_numbers = #tpu.dot_dimension_numbers<[1], [0], [0], [1], [0, 0, 1, 1], [], []>} : vector<256x36xf32>, vector<36x8xf32>, vector<256x8xf32> -> vector<256x8xf32>
    %54 = vector.broadcast %48 : vector<1x8xf32> to vector<256x8xf32>
    %55 = arith.mulf %53, %54 : vector<256x8xf32>
    %56 = vector.broadcast %50 : vector<1x8xf32> to vector<256x8xf32>
    %57 = arith.addf %55, %56 : vector<256x8xf32>
    %cst_123 = arith.constant 0.000000e+00 : f32
    %58 = vector.broadcast %cst_123 : f32 to vector<256x8xf32>
    %59 = arith.maximumf %57, %58 : vector<256x8xf32>
    %cst_124 = arith.constant 0.000000e+00 : f32
    %60 = vector.broadcast %cst_124 : f32 to vector<2x1x18x8xf32>
    %c0_125 = arith.constant 0 : index
    %c0_126 = arith.constant 0 : index
    %c0_127 = arith.constant 0 : index
    %c0_128 = arith.constant 0 : index
    %61 = vector.load %arg14[%c0_125, %c0_126, %c0_127, %c0_128] : memref<2x10x18x8xf32, #tpu.memory_space<vmem>>, vector<2x1x18x8xf32>
    tpu.vector_store %arg14[%c0_125, %c0_126, %c0_127, %c0_128], %60 {strides = array<i32>} : memref<2x10x18x8xf32, #tpu.memory_space<vmem>>, vector<2x1x18x8xf32>,
    %cst_129 = arith.constant 0.000000e+00 : f32
    %62 = vector.broadcast %cst_129 : f32 to vector<2x1x18x8xf32>
    %c0_130 = arith.constant 0 : index
    %c9_131 = arith.constant 9 : index
    %c0_132 = arith.constant 0 : index
    %c0_133 = arith.constant 0 : index
    %63 = vector.load %arg14[%c0_130, %c9_131, %c0_132, %c0_133] : memref<2x10x18x8xf32, #tpu.memory_space<vmem>>, vector<2x1x18x8xf32>
    tpu.vector_store %arg14[%c0_130, %c9_131, %c0_132, %c0_133], %62 {strides = array<i32>} : memref<2x10x18x8xf32, #tpu.memory_space<vmem>>, vector<2x1x18x8xf32>,
    %cst_134 = arith.constant 0.000000e+00 : f32
    %64 = vector.broadcast %cst_134 : f32 to vector<2x10x1x8xf32>
    %c0_135 = arith.constant 0 : index
    %c0_136 = arith.constant 0 : index
    %c0_137 = arith.constant 0 : index
    %c0_138 = arith.constant 0 : index
    %65 = vector.load %arg14[%c0_135, %c0_136, %c0_137, %c0_138] : memref<2x10x18x8xf32, #tpu.memory_space<vmem>>, vector<2x10x1x8xf32>
    tpu.vector_store %arg14[%c0_135, %c0_136, %c0_137, %c0_138], %64 {strides = array<i32>} : memref<2x10x18x8xf32, #tpu.memory_space<vmem>>, vector<2x10x1x8xf32>,
    %cst_139 = arith.constant 0.000000e+00 : f32
    %66 = vector.broadcast %cst_139 : f32 to vector<2x10x1x8xf32>
    %c0_140 = arith.constant 0 : index
    %c0_141 = arith.constant 0 : index
    %c17_142 = arith.constant 17 : index
    %c0_143 = arith.constant 0 : index
    %67 = vector.load %arg14[%c0_140, %c0_141, %c17_142, %c0_143] : memref<2x10x18x8xf32, #tpu.memory_space<vmem>>, vector<2x10x1x8xf32>
    tpu.vector_store %arg14[%c0_140, %c0_141, %c17_142, %c0_143], %66 {strides = array<i32>} : memref<2x10x18x8xf32, #tpu.memory_space<vmem>>, vector<2x10x1x8xf32>,
    %68 = vector.shape_cast %59 : vector<256x8xf32> to vector<2x8x16x8xf32>
    %c0_144 = arith.constant 0 : index
    %c1_145 = arith.constant 1 : index
    %c1_146 = arith.constant 1 : index
    %c0_147 = arith.constant 0 : index
    %69 = vector.load %arg14[%c0_144, %c1_145, %c1_146, %c0_147] : memref<2x10x18x8xf32, #tpu.memory_space<vmem>>, vector<2x8x16x8xf32>
    tpu.vector_store %arg14[%c0_144, %c1_145, %c1_146, %c0_147], %68 {strides = array<i32>} : memref<2x10x18x8xf32, #tpu.memory_space<vmem>>, vector<2x8x16x8xf32>,
    %c0_148 = arith.constant 0 : index
    %c0_149 = arith.constant 0 : index
    %c0_150 = arith.constant 0 : index
    %c0_151 = arith.constant 0 : index
    %70 = vector.load %arg14[%c0_148, %c0_149, %c0_150, %c0_151] : memref<2x10x18x8xf32, #tpu.memory_space<vmem>>, vector<2x8x16x8xf32>
    %c0_152 = arith.constant 0 : index
    %c0_153 = arith.constant 0 : index
    %c0_154 = arith.constant 0 : index
    %c0_155 = arith.constant 0 : index
    %71 = vector.load %arg15[%c0_152, %c0_153, %c0_154, %c0_155] : memref<2x8x16x72xf32, #tpu.memory_space<vmem>>, vector<2x8x16x8xf32>
    tpu.vector_store %arg15[%c0_152, %c0_153, %c0_154, %c0_155], %70 {strides = array<i32>} : memref<2x8x16x72xf32, #tpu.memory_space<vmem>>, vector<2x8x16x8xf32>,
    %c0_156 = arith.constant 0 : index
    %c0_157 = arith.constant 0 : index
    %c1_158 = arith.constant 1 : index
    %c0_159 = arith.constant 0 : index
    %72 = vector.load %arg14[%c0_156, %c0_157, %c1_158, %c0_159] : memref<2x10x18x8xf32, #tpu.memory_space<vmem>>, vector<2x8x16x8xf32>
    %c0_160 = arith.constant 0 : index
    %c0_161 = arith.constant 0 : index
    %c0_162 = arith.constant 0 : index
    %c8_163 = arith.constant 8 : index
    %73 = vector.load %arg15[%c0_160, %c0_161, %c0_162, %c8_163] : memref<2x8x16x72xf32, #tpu.memory_space<vmem>>, vector<2x8x16x8xf32>
    tpu.vector_store %arg15[%c0_160, %c0_161, %c0_162, %c8_163], %72 {strides = array<i32>} : memref<2x8x16x72xf32, #tpu.memory_space<vmem>>, vector<2x8x16x8xf32>,
    %c0_164 = arith.constant 0 : index
    %c0_165 = arith.constant 0 : index
    %c2_166 = arith.constant 2 : index
    %c0_167 = arith.constant 0 : index
    %74 = vector.load %arg14[%c0_164, %c0_165, %c2_166, %c0_167] : memref<2x10x18x8xf32, #tpu.memory_space<vmem>>, vector<2x8x16x8xf32>
    %c0_168 = arith.constant 0 : index
    %c0_169 = arith.constant 0 : index
    %c0_170 = arith.constant 0 : index
    %c16_171 = arith.constant 16 : index
    %75 = vector.load %arg15[%c0_168, %c0_169, %c0_170, %c16_171] : memref<2x8x16x72xf32, #tpu.memory_space<vmem>>, vector<2x8x16x8xf32>
    tpu.vector_store %arg15[%c0_168, %c0_169, %c0_170, %c16_171], %74 {strides = array<i32>} : memref<2x8x16x72xf32, #tpu.memory_space<vmem>>, vector<2x8x16x8xf32>,
    %c0_172 = arith.constant 0 : index
    %c1_173 = arith.constant 1 : index
    %c0_174 = arith.constant 0 : index
    %c0_175 = arith.constant 0 : index
    %76 = vector.load %arg14[%c0_172, %c1_173, %c0_174, %c0_175] : memref<2x10x18x8xf32, #tpu.memory_space<vmem>>, vector<2x8x16x8xf32>
    %c0_176 = arith.constant 0 : index
    %c0_177 = arith.constant 0 : index
    %c0_178 = arith.constant 0 : index
    %c24_179 = arith.constant 24 : index
    %77 = vector.load %arg15[%c0_176, %c0_177, %c0_178, %c24_179] : memref<2x8x16x72xf32, #tpu.memory_space<vmem>>, vector<2x8x16x8xf32>
    tpu.vector_store %arg15[%c0_176, %c0_177, %c0_178, %c24_179], %76 {strides = array<i32>} : memref<2x8x16x72xf32, #tpu.memory_space<vmem>>, vector<2x8x16x8xf32>,
    %c0_180 = arith.constant 0 : index
    %c1_181 = arith.constant 1 : index
    %c1_182 = arith.constant 1 : index
    %c0_183 = arith.constant 0 : index
    %78 = vector.load %arg14[%c0_180, %c1_181, %c1_182, %c0_183] : memref<2x10x18x8xf32, #tpu.memory_space<vmem>>, vector<2x8x16x8xf32>
    %c0_184 = arith.constant 0 : index
    %c0_185 = arith.constant 0 : index
    %c0_186 = arith.constant 0 : index
    %c32_187 = arith.constant 32 : index
    %79 = vector.load %arg15[%c0_184, %c0_185, %c0_186, %c32_187] : memref<2x8x16x72xf32, #tpu.memory_space<vmem>>, vector<2x8x16x8xf32>
    tpu.vector_store %arg15[%c0_184, %c0_185, %c0_186, %c32_187], %78 {strides = array<i32>} : memref<2x8x16x72xf32, #tpu.memory_space<vmem>>, vector<2x8x16x8xf32>,
    %c0_188 = arith.constant 0 : index
    %c1_189 = arith.constant 1 : index
    %c2_190 = arith.constant 2 : index
    %c0_191 = arith.constant 0 : index
    %80 = vector.load %arg14[%c0_188, %c1_189, %c2_190, %c0_191] : memref<2x10x18x8xf32, #tpu.memory_space<vmem>>, vector<2x8x16x8xf32>
    %c0_192 = arith.constant 0 : index
    %c0_193 = arith.constant 0 : index
    %c0_194 = arith.constant 0 : index
    %c40 = arith.constant 40 : index
    %81 = vector.load %arg15[%c0_192, %c0_193, %c0_194, %c40] : memref<2x8x16x72xf32, #tpu.memory_space<vmem>>, vector<2x8x16x8xf32>
    tpu.vector_store %arg15[%c0_192, %c0_193, %c0_194, %c40], %80 {strides = array<i32>} : memref<2x8x16x72xf32, #tpu.memory_space<vmem>>, vector<2x8x16x8xf32>,
    %c0_195 = arith.constant 0 : index
    %c2_196 = arith.constant 2 : index
    %c0_197 = arith.constant 0 : index
    %c0_198 = arith.constant 0 : index
    %82 = vector.load %arg14[%c0_195, %c2_196, %c0_197, %c0_198] : memref<2x10x18x8xf32, #tpu.memory_space<vmem>>, vector<2x8x16x8xf32>
    %c0_199 = arith.constant 0 : index
    %c0_200 = arith.constant 0 : index
    %c0_201 = arith.constant 0 : index
    %c48 = arith.constant 48 : index
    %83 = vector.load %arg15[%c0_199, %c0_200, %c0_201, %c48] : memref<2x8x16x72xf32, #tpu.memory_space<vmem>>, vector<2x8x16x8xf32>
    tpu.vector_store %arg15[%c0_199, %c0_200, %c0_201, %c48], %82 {strides = array<i32>} : memref<2x8x16x72xf32, #tpu.memory_space<vmem>>, vector<2x8x16x8xf32>,
    %c0_202 = arith.constant 0 : index
    %c2_203 = arith.constant 2 : index
    %c1_204 = arith.constant 1 : index
    %c0_205 = arith.constant 0 : index
    %84 = vector.load %arg14[%c0_202, %c2_203, %c1_204, %c0_205] : memref<2x10x18x8xf32, #tpu.memory_space<vmem>>, vector<2x8x16x8xf32>
    %c0_206 = arith.constant 0 : index
    %c0_207 = arith.constant 0 : index
    %c0_208 = arith.constant 0 : index
    %c56 = arith.constant 56 : index
    %85 = vector.load %arg15[%c0_206, %c0_207, %c0_208, %c56] : memref<2x8x16x72xf32, #tpu.memory_space<vmem>>, vector<2x8x16x8xf32>
    tpu.vector_store %arg15[%c0_206, %c0_207, %c0_208, %c56], %84 {strides = array<i32>} : memref<2x8x16x72xf32, #tpu.memory_space<vmem>>, vector<2x8x16x8xf32>,
    %c0_209 = arith.constant 0 : index
    %c2_210 = arith.constant 2 : index
    %c2_211 = arith.constant 2 : index
    %c0_212 = arith.constant 0 : index
    %86 = vector.load %arg14[%c0_209, %c2_210, %c2_211, %c0_212] : memref<2x10x18x8xf32, #tpu.memory_space<vmem>>, vector<2x8x16x8xf32>
    %c0_213 = arith.constant 0 : index
    %c0_214 = arith.constant 0 : index
    %c0_215 = arith.constant 0 : index
    %c64 = arith.constant 64 : index
    %87 = vector.load %arg15[%c0_213, %c0_214, %c0_215, %c64] : memref<2x8x16x72xf32, #tpu.memory_space<vmem>>, vector<2x8x16x8xf32>
    tpu.vector_store %arg15[%c0_213, %c0_214, %c0_215, %c64], %86 {strides = array<i32>} : memref<2x8x16x72xf32, #tpu.memory_space<vmem>>, vector<2x8x16x8xf32>,
    %c0_216 = arith.constant 0 : index
    %c0_217 = arith.constant 0 : index
    %c0_218 = arith.constant 0 : index
    %88 = vector.load %arg9[%c0_216, %c0_217, %c0_218] : memref<1x72x8xf32, #tpu.memory_space<vmem>>, vector<1x72x8xf32>
    %89 = vector.shape_cast %88 : vector<1x72x8xf32> to vector<72x8xf32>
    %c0_219 = arith.constant 0 : index
    %c0_220 = arith.constant 0 : index
    %c0_221 = arith.constant 0 : index
    %90 = vector.load %arg10[%c0_219, %c0_220, %c0_221] : memref<1x1x8xf32, #tpu.memory_space<vmem>>, vector<1x1x8xf32>
    %91 = vector.shape_cast %90 : vector<1x1x8xf32> to vector<1x8xf32>
    %c0_222 = arith.constant 0 : index
    %c0_223 = arith.constant 0 : index
    %c0_224 = arith.constant 0 : index
    %92 = vector.load %arg11[%c0_222, %c0_223, %c0_224] : memref<1x1x8xf32, #tpu.memory_space<vmem>>, vector<1x1x8xf32>
    %93 = vector.shape_cast %92 : vector<1x1x8xf32> to vector<1x8xf32>
    %c0_225 = arith.constant 0 : index
    %c0_226 = arith.constant 0 : index
    %c0_227 = arith.constant 0 : index
    %c0_228 = arith.constant 0 : index
    %94 = vector.load %arg15[%c0_225, %c0_226, %c0_227, %c0_228] : memref<2x8x16x72xf32, #tpu.memory_space<vmem>>, vector<2x8x16x72xf32>
    %95 = vector.shape_cast %94 : vector<2x8x16x72xf32> to vector<256x72xf32>
    %cst_229 = arith.constant dense<0.000000e+00> : vector<256x8xf32>
    %96 = tpu.matmul %95, %89, %cst_229 {dimension_numbers = #tpu.dot_dimension_numbers<[1], [0], [0], [1], [0, 0, 1, 1], [], []>} : vector<256x72xf32>, vector<72x8xf32>, vector<256x8xf32> -> vector<256x8xf32>
    %97 = vector.broadcast %91 : vector<1x8xf32> to vector<256x8xf32>
    %98 = arith.mulf %96, %97 : vector<256x8xf32>
    %99 = vector.broadcast %93 : vector<1x8xf32> to vector<256x8xf32>
    %100 = arith.addf %98, %99 : vector<256x8xf32>
    %cst_230 = arith.constant 0.000000e+00 : f32
    %101 = vector.broadcast %cst_230 : f32 to vector<256x8xf32>
    %102 = arith.maximumf %100, %101 : vector<256x8xf32>
    %103 = arith.addf %102, %40 : vector<256x8xf32>
    %104 = vector.shape_cast %103 : vector<256x8xf32> to vector<2x8x16x8xf32>
    %c0_231 = arith.constant 0 : index
    %c0_232 = arith.constant 0 : index
    %c0_233 = arith.constant 0 : index
    %c0_234 = arith.constant 0 : index
    %105 = vector.load %arg12[%c0_231, %c0_232, %c0_233, %c0_234] : memref<2x8x16x8xf32, #tpu.memory_space<vmem>>, vector<2x8x16x8xf32>
    tpu.vector_store %arg12[%c0_231, %c0_232, %c0_233, %c0_234], %104 {strides = array<i32>} : memref<2x8x16x8xf32, #tpu.memory_space<vmem>>, vector<2x8x16x8xf32>,
    return
  }
  func.func @transform_0(%arg0: i32) -> (i32, i32, i32, i32) {
    %c0_i32 = arith.constant 0 : i32
    %c0_i32_0 = arith.constant 0 : i32
    %c0_i32_1 = arith.constant 0 : i32
    %c0_i32_2 = arith.constant 0 : i32
    return %c0_i32, %arg0, %c0_i32_0, %c0_i32_1 : i32, i32, i32, i32
  }
  func.func @transform_1(%arg0: i32) -> (i32, i32, i32, i32) {
    %c0_i32 = arith.constant 0 : i32
    %c0_i32_0 = arith.constant 0 : i32
    %c0_i32_1 = arith.constant 0 : i32
    %c0_i32_2 = arith.constant 0 : i32
    return %arg0, %c0_i32, %c0_i32_0, %c0_i32_1 : i32, i32, i32, i32
  }
  func.func @transform_2(%arg0: i32) -> (i32, i32) {
    %c0_i32 = arith.constant 0 : i32
    %c0_i32_0 = arith.constant 0 : i32
    %c0_i32_1 = arith.constant 0 : i32
    return %c0_i32, %c0_i32_0 : i32, i32
  }
  func.func @transform_3(%arg0: i32) -> (i32, i32) {
    %c0_i32 = arith.constant 0 : i32
    %c0_i32_0 = arith.constant 0 : i32
    %c0_i32_1 = arith.constant 0 : i32
    return %c0_i32, %c0_i32_0 : i32, i32
  }
  func.func @transform_4(%arg0: i32) -> (i32, i32) {
    %c0_i32 = arith.constant 0 : i32
    %c0_i32_0 = arith.constant 0 : i32
    %c0_i32_1 = arith.constant 0 : i32
    return %c0_i32, %c0_i32_0 : i32, i32
  }
  func.func @transform_5(%arg0: i32) -> (i32, i32, i32) {
    %c0_i32 = arith.constant 0 : i32
    %c0_i32_0 = arith.constant 0 : i32
    %c0_i32_1 = arith.constant 0 : i32
    return %arg0, %c0_i32, %c0_i32_0 : i32, i32, i32
  }
  func.func @transform_6(%arg0: i32) -> (i32, i32, i32) {
    %c0_i32 = arith.constant 0 : i32
    %c0_i32_0 = arith.constant 0 : i32
    %c0_i32_1 = arith.constant 0 : i32
    return %arg0, %c0_i32, %c0_i32_0 : i32, i32, i32
  }
  func.func @transform_7(%arg0: i32) -> (i32, i32, i32) {
    %c0_i32 = arith.constant 0 : i32
    %c0_i32_0 = arith.constant 0 : i32
    %c0_i32_1 = arith.constant 0 : i32
    return %arg0, %c0_i32, %c0_i32_0 : i32, i32, i32
  }
  func.func @transform_8(%arg0: i32) -> (i32, i32, i32) {
    %c0_i32 = arith.constant 0 : i32
    %c0_i32_0 = arith.constant 0 : i32
    %c0_i32_1 = arith.constant 0 : i32
    return %arg0, %c0_i32, %c0_i32_0 : i32, i32, i32
  }
  func.func @transform_9(%arg0: i32) -> (i32, i32, i32) {
    %c0_i32 = arith.constant 0 : i32
    %c0_i32_0 = arith.constant 0 : i32
    %c0_i32_1 = arith.constant 0 : i32
    return %arg0, %c0_i32, %c0_i32_0 : i32, i32, i32
  }
  func.func @transform_10(%arg0: i32) -> (i32, i32, i32) {
    %c0_i32 = arith.constant 0 : i32
    %c0_i32_0 = arith.constant 0 : i32
    %c0_i32_1 = arith.constant 0 : i32
    return %arg0, %c0_i32, %c0_i32_0 : i32, i32, i32
  }
  func.func @transform_11(%arg0: i32) -> (i32, i32, i32, i32) {
    %c0_i32 = arith.constant 0 : i32
    %c0_i32_0 = arith.constant 0 : i32
    %c0_i32_1 = arith.constant 0 : i32
    %c0_i32_2 = arith.constant 0 : i32
    return %c0_i32, %arg0, %c0_i32_0, %c0_i32_1 : i32, i32, i32, i32
  }
}

</mosaic_0001>

<bundles_post_ra>
// kernel: frequency_distributed_block.1
= control target key start
LH: loop header
LB: loop body
LE: loop exit
PB: predicated region body
PF: predicated region fallthrough
CT: control target
= control target key end

     0   :  { %s5819_s17 = smov 0   ;;  %s5821_s18 = smov 0   ;;  %s8732_s0 = inlined_call_operand.vmem [shape: f32[2,16,16,4], index: 0, kind: input, shape index: {}]   ;;  %s8733_s1 = inlined_call_operand.vmem [shape: f32[4,2,16,4], index: 1, kind: input, shape index: {}]   ;;  %s8734_s2 = inlined_call_operand.vmem [shape: f32[36,8], index: 2, kind: input, shape index: {}]   ;;  %s8735_s3 = inlined_call_operand.vmem [shape: f32[1,8], index: 3, kind: input, shape index: {}]   ;;  %s8736_s4 = inlined_call_operand.vmem [shape: f32[1,8], index: 4, kind: input, shape index: {}]   ;;  %s8737_s5 = inlined_call_operand.vmem [shape: f32[2,36,8], index: 5, kind: input, shape index: {}]   ;;  %s8738_s6 = inlined_call_operand.vmem [shape: f32[2,1,8], index: 6, kind: input, shape index: {}]   ;;  %s8739_s7 = inlined_call_operand.vmem [shape: f32[2,1,8], index: 7, kind: input, shape index: {}]   ;;  %s8740_s8 = inlined_call_operand.vmem [shape: f32[2,72,8], index: 8, kind: input, shape index: {}]   ;;  %s8741_s9 = inlined_call_operand.vmem [shape: f32[2,1,8], index: 9, kind: input, shape index: {}]   ;;  %s8742_s10 = inlined_call_operand.vmem [shape: f32[2,1,8], index: 10, kind: input, shape index: {}]   ;;  %s8743_s11 = inlined_call_operand.vmem [shape: f32[2,16,16,8], index: 11, kind: output, shape index: {}]  }
   0x1   :  { %s5823_s19 = smov 0  }
   0x2 LB: > { %s5835_s20 = sadd.s32 4294967295, %s5744_s19   ;;  %s5838_s21 = sadd.s32 1, %s5744_s19   ;;  %s5744_s19 = sphi %s5823_s19, %s8838_s19   ;;  %s5740_s18 = sphi %s5821_s18, %s8837_s18   ;;  %s5736_s17 = sphi %s5819_s17, %s8836_s17  }
   0x3   : > { %s25_s22 = ssub.s32 %s5744_s19, %s5838_s21  ;;  %s28_s23 = sadd.s32 1, %s5740_s18 }
   0x4   : > { %p26_p0 = scmp.eq.s32.totalorder %s25_s22, 0  ;;  %p35_p1 = scmp.ne.s32.totalorder %s5740_s18, %s5736_s17 }
   0x5   : > { %p36_p2 = scmp.eq.s32.totalorder %s5744_s19, 0  ;;  %p310_p3 = scmp.eq.s32.totalorder %s5835_s20, 1 }
   0x6   : > { %s5848_s24 = scalar_select %p26_p0, %s5740_s18, %s28_s23  }
   0x7   : > { %p37_p4 = por %p36_p2, %p35_p1  ;;  %p5850_p5 = por %p310_p3, %p35_p1 }
   0x8   : > { %p5533_p6 = scmp.ge.s32.totalorder %s5744_s19, 2 }
   0xa   : > { %341 = sbr.rel (%p5533_p6) target bundleno = 51 (0x33), region = 28 }
   0xf   : > { %344 = sbr.rel (!%p37_p4) target bundleno = 51 (0x33), region = 32  ;;  %s346_s26 = sand.u32 (%p37_p4), 1, %s5740_s18  }
  0x10   : > { %s5651_s27 = sshll.u32 (%p37_p4), %s5744_s19, 7  ;;  %s5534_s28 = sshll.u32 (%p37_p4), %s346_s26, 8 }
  0x11   : > { %s5860_s12 = scalar_lea.vmem (%p37_p4), %s8732_s0, %s5651_s27  ;;  %s5865_s13 = scalar_lea.vmem (%p37_p4), [#allocation5], %s5534_s28 }
  0x12   : > { %v443_v0 = vld [vmem:[%s5860_s12] sm:$0xff] (%p37_p4)  ;;  %v445_v1 = vld [vmem:[%s5860_s12 + $0x8] sm:$0xff] (%p37_p4)  ;;  %v447_v2 = vld [vmem:[%s5860_s12 + $0x10] sm:$0xff] (%p37_p4) }
  0x13   : > { %444 = vst [vmem:[%s5865_s13] sm:$0xff] (%p37_p4), %v443_v0  ;;  %v449_v3 = vld [vmem:[%s5860_s12 + $0x18] sm:$0xff] (%p37_p4)  ;;  %v451_v4 = vld [vmem:[%s5860_s12 + $0x20] sm:$0xff] (%p37_p4)  ;;  %v453_v5 = vld [vmem:[%s5860_s12 + $0x28] sm:$0xff] (%p37_p4) }
  0x14   : > { %446 = vst [vmem:[%s5865_s13 + $0x8] sm:$0xff] %v445_v1  ;;  %v455_v6 = vld [vmem:[%s5860_s12 + $0x30] sm:$0xff]  ;;  %v457_v7 = vld [vmem:[%s5860_s12 + $0x38] sm:$0xff]  ;;  %v459_v8 = vld [vmem:[%s5860_s12 + $0x40] sm:$0xff] }
  0x15   : > { %448 = vst [vmem:[%s5865_s13 + $0x10] sm:$0xff] %v447_v2  ;;  %v461_v9 = vld [vmem:[%s5860_s12 + $0x48] sm:$0xff]  ;;  %v463_v10 = vld [vmem:[%s5860_s12 + $0x50] sm:$0xff]  ;;  %v465_v11 = vld [vmem:[%s5860_s12 + $0x58] sm:$0xff] }
  0x16   : > { %450 = vst [vmem:[%s5865_s13 + $0x18] sm:$0xff] %v449_v3  ;;  %v467_v12 = vld [vmem:[%s5860_s12 + $0x60] sm:$0xff]  ;;  %v469_v13 = vld [vmem:[%s5860_s12 + $0x68] sm:$0xff]  ;;  %v471_v14 = vld [vmem:[%s5860_s12 + $0x70] sm:$0xff] }
  0x17   : > { %452 = vst [vmem:[%s5865_s13 + $0x20] sm:$0xff] %v451_v4  ;;  %v473_v15 = vld [vmem:[%s5860_s12 + $0x78] sm:$0xff]  ;;  %v475_v16 = vld [vmem:[%s5860_s12 + $0x100] sm:$0xff]  ;;  %v477_v17 = vld [vmem:[%s5860_s12 + $0x108] sm:$0xff] }
  0x18   : > { %454 = vst [vmem:[%s5865_s13 + $0x28] sm:$0xff] %v453_v5  ;;  %v479_v18 = vld [vmem:[%s5860_s12 + $0x110] sm:$0xff]  ;;  %v481_v19 = vld [vmem:[%s5860_s12 + $0x118] sm:$0xff]  ;;  %v483_v20 = vld [vmem:[%s5860_s12 + $0x120] sm:$0xff] }
  0x19   : > { %456 = vst [vmem:[%s5865_s13 + $0x30] sm:$0xff] %v455_v6  ;;  %v485_v21 = vld [vmem:[%s5860_s12 + $0x128] sm:$0xff]  ;;  %v487_v22 = vld [vmem:[%s5860_s12 + $0x130] sm:$0xff]  ;;  %v489_v23 = vld [vmem:[%s5860_s12 + $0x138] sm:$0xff] }
  0x1a   : > { %458 = vst [vmem:[%s5865_s13 + $0x38] sm:$0xff] %v457_v7  ;;  %v491_v24 = vld [vmem:[%s5860_s12 + $0x140] sm:$0xff]  ;;  %v493_v25 = vld [vmem:[%s5860_s12 + $0x148] sm:$0xff]  ;;  %v495_v26 = vld [vmem:[%s5860_s12 + $0x150] sm:$0xff] }
  0x1b   : > { %460 = vst [vmem:[%s5865_s13 + $0x40] sm:$0xff] %v459_v8  ;;  %v497_v27 = vld [vmem:[%s5860_s12 + $0x158] sm:$0xff]  ;;  %v499_v28 = vld [vmem:[%s5860_s12 + $0x160] sm:$0xff]  ;;  %v501_v29 = vld [vmem:[%s5860_s12 + $0x168] sm:$0xff] }
  0x1c   : > { %462 = vst [vmem:[%s5865_s13 + $0x48] sm:$0xff] %v461_v9  ;;  %v503_v30 = vld [vmem:[%s5860_s12 + $0x170] sm:$0xff]  ;;  %v505_v31 = vld [vmem:[%s5860_s12 + $0x178] sm:$0xff] }
  0x1d   : > { %464 = vst [vmem:[%s5865_s13 + $0x50] sm:$0xff] %v463_v10 }
  0x1e   : > { %466 = vst [vmem:[%s5865_s13 + $0x58] sm:$0xff] %v465_v11 }
  0x1f   : > { %468 = vst [vmem:[%s5865_s13 + $0x60] sm:$0xff] %v467_v12 }
  0x20   : > { %470 = vst [vmem:[%s5865_s13 + $0x68] sm:$0xff] %v469_v13 }
  0x21   : > { %472 = vst [vmem:[%s5865_s13 + $0x70] sm:$0xff] %v471_v14 }
  0x22   : > { %474 = vst [vmem:[%s5865_s13 + $0x78] sm:$0xff] %v473_v15 }
  0x23   : > { %476 = vst [vmem:[%s5865_s13 + $0x80] sm:$0xff] %v475_v16 }
  0x24   : > { %478 = vst [vmem:[%s5865_s13 + $0x88] sm:$0xff] %v477_v17 }
  0x25   : > { %480 = vst [vmem:[%s5865_s13 + $0x90] sm:$0xff] %v479_v18 }
  0x26   : > { %482 = vst [vmem:[%s5865_s13 + $0x98] sm:$0xff] %v481_v19 }
  0x27   : > { %484 = vst [vmem:[%s5865_s13 + $0xa0] sm:$0xff] %v483_v20 }
  0x28   : > { %486 = vst [vmem:[%s5865_s13 + $0xa8] sm:$0xff] %v485_v21 }
  0x29   : > { %488 = vst [vmem:[%s5865_s13 + $0xb0] sm:$0xff] %v487_v22 }
  0x2a   : > { %490 = vst [vmem:[%s5865_s13 + $0xb8] sm:$0xff] %v489_v23 }
  0x2b   : > { %492 = vst [vmem:[%s5865_s13 + $0xc0] sm:$0xff] %v491_v24 }
  0x2c   : > { %494 = vst [vmem:[%s5865_s13 + $0xc8] sm:$0xff] %v493_v25 }
  0x2d   : > { %496 = vst [vmem:[%s5865_s13 + $0xd0] sm:$0xff] %v495_v26 }
  0x2e   : > { %498 = vst [vmem:[%s5865_s13 + $0xd8] sm:$0xff] %v497_v27 }
  0x2f   : > { %500 = vst [vmem:[%s5865_s13 + $0xe0] sm:$0xff] %v499_v28 }
  0x30   : > { %502 = vst [vmem:[%s5865_s13 + $0xe8] sm:$0xff] %v501_v29 }
  0x31   : > { %504 = vst [vmem:[%s5865_s13 + $0xf0] sm:$0xff] %v503_v30 }
  0x32   : > { %506 = vst [vmem:[%s5865_s13 + $0xf8] sm:$0xff] %v505_v31 }
  0x33 PF: > { %p5538_p7 = scmp.ge.s32.totalorder %s5744_s19, 1  ;;  %p561_p8 = scmp.lt.s32.totalorder %s5744_s19, 3 }
  0x35   : > { %p562_p9 = pnand %p5538_p7, %p561_p8 }
  0x37   : > { %565 = sbr.rel (%p562_p9) target bundleno = 2009 (0x7d9), region = 98 }
  0x3c   : > { %s568_s14 = sand.u32 1, %s5736_s17   ;;  %vm739_vm0 = vcmask 31744   ;;  %s5541_s16 = sshll.u32 %s5835_s20, 1  ;;  %vm665_vm1 = vcmask 24576   ;;  %v8744_v17 = vmov 0.0   ;;  %vm1013_vm2 = vcmask 64544  }
  0x3d   : > { %s5931_s15 = sshll.u32 %s568_s14, 8  ;;  %p636_p10 = scmp.lt.s32.totalorder %s5541_s16, 3  ;;  %686 = vst.msk [vmem:[#allocation2 + $0x11] sm:$0x1] %vm665_vm1, %v8744_v17  ;;  %vm1206_vm3 = vcmask 97344   ;;  %vm1399_vm4 = vcmask 130144  }
  0x3e   : > { %s5935_s22 = scalar_lea.vmem [#allocation5], %s5931_s15  ;;  %s5746_s27 = smov 4   ;;  %666 = vst.msk [vmem:[#allocation2] sm:$0x1] %vm665_vm1, %v8744_v17  ;;  %vm1592_vm5 = vcmask 162944   ;;  %vm1785_vm6 = vcmask 195744  }
  0x3f   : > { %v710_v32 = vld [vmem:[%s5935_s22 + $0x20] sm:$0xff]  ;;  %v707_v34 = vld [vmem:[%s5935_s22 + $0x8] sm:$0xff]  ;;  %s8840_s16 = smov (!%p636_p10, %s5541_s16), 3  ;;  %v713_v35 = vld [vmem:[%s5935_s22 + $0x38] sm:$0xff]  ;;  %667 = vst.msk [vmem:[#allocation2 + $0x18] sm:$0x1] %vm665_vm1, %v8744_v17 }
  0x40   : > { %v706_v33 = vld [vmem:[%s5935_s22] sm:$0xff]  ;;  %744 = vst.msk [vmem:[#allocation2 + $0x49] sm:$0xff] %vm739_vm0, %v710_v32  ;;  %v708_v36 = vld [vmem:[%s5935_s22 + $0x10] sm:$0xff]  ;;  %s5652_s17 = sshll.u32 %s8840_s16, 5  ;;  %v711_v39 = vld [vmem:[%s5935_s22 + $0x28] sm:$0xff]  ;;  %s5748_s28 = smov 8  }
  0x41   : > { %740 = vst.msk [vmem:[#allocation2 + $0x19] sm:$0xff] %vm739_vm0, %v706_v33  ;;  %s5948_s26 = scalar_lea.vmem %s8733_s1, %s5652_s17  ;;  %v716_v40 = vld [vmem:[%s5935_s22 + $0x50] sm:$0xff]  ;;  %v709_v41 = vld [vmem:[%s5935_s22 + $0x18] sm:$0xff]  ;;  %v714_v43 = vld [vmem:[%s5935_s22 + $0x40] sm:$0xff]  ;;  %s5749_s29 = smov 12   ;;  %vm1979_vm7 = vcmask 228544  }
  0x42   : > { %741 = vst.msk [vmem:[#allocation2 + $0x21] sm:$0xff] %vm739_vm0, %v707_v34  ;;  %v772_v37 = vld [vmem:[%s5948_s26] sm:$0xff]  ;;  %v773_v38 = vld [vmem:[%s5948_s26 + $0x8] sm:$0xff]  ;;  %v712_v46 = vld [vmem:[%s5935_s22 + $0x30] sm:$0xff]  ;;  %s5750_s30 = smov 16   ;;  %s5751_s12 = smov 20  }
  0x43   : > { %747 = vst.msk [vmem:[#allocation2 + $0x69] sm:$0xff] %vm739_vm0, %v713_v35  ;;  %v719_v45 = vld [vmem:[%s5935_s22 + $0x68] sm:$0xff]  ;;  %v717_v47 = vld [vmem:[%s5935_s22 + $0x58] sm:$0xff]  ;;  %v722_v51 = vld [vmem:[%s5935_s22 + $0x80] sm:$0xff]  ;;  %s5752_s13 = smov 24   ;;  %s5753_s14 = smov 28  }
  0x44   : > { %742 = vst.msk [vmem:[#allocation2 + $0x31] sm:$0xff] %vm739_vm0, %v708_v36  ;;  %v715_v52 = vld [vmem:[%s5935_s22 + $0x48] sm:$0xff]  ;;  %v776_v53 = vld [vmem:[%s5948_s26 + $0x20] sm:$0xff]  ;;  %v725_v57 = vld [vmem:[%s5935_s22 + $0x98] sm:$0xff]  ;;  %s5754_s16 = smov 32   ;;  %vm2172_vm8 = vcmask 261344  }
  0x45   : > { %780 = vst.msk [vmem:[#allocation2 + $0x1] sm:$0xff] %vm739_vm0, %v772_v37  ;;  %v718_v58 = vld [vmem:[%s5935_s22 + $0x60] sm:$0xff]  ;;  %v723_v59 = vld [vmem:[%s5935_s22 + $0x88] sm:$0xff]  ;;  %v728_v63 = vld [vmem:[%s5935_s22 + $0xb0] sm:$0xff]  ;;  %p642_p11 = scmp.lt.s32.totalorder %s5835_s20, 1  ;;  %vm2534_vm9 = vcmask 1043456  }
  0x46   : > { %781 = vst.msk [vmem:[#allocation2 + $0x9] sm:$0xff] %vm739_vm0, %v773_v38  ;;  %v777_v0 = vld [vmem:[%s5948_s26 + $0x28] sm:$0xff]  ;;  %v726_v1 = vld [vmem:[%s5935_s22 + $0xa0] sm:$0xff]  ;;  %v724_v6 = vld [vmem:[%s5935_s22 + $0x90] sm:$0xff]  ;;  %vm2365_vm10 = vcmask 294144   ;;  %vm2437_vm11 = vcmask 293888  }
  0x47   : > { %v5959_v42 = vld [vmem:[#allocation2 + $0x49] sm:$0xff]  ;;  %745 = vst.msk [vmem:[#allocation2 + $0x51] sm:$0xff] %vm739_vm0, %v711_v39  ;;  %v729_v7 = vld [vmem:[%s5935_s22 + $0xb8] sm:$0xff]  ;;  %v734_v11 = vld [vmem:[%s5935_s22 + $0xe0] sm:$0xff]  ;;  %vm2753_vm12 = vcmask 97280   ;;  %vm2759_vm13 = vcmask 294080  }
  0x48   : > { %929 = vrot.lane.b32.xlu0 %v5959_v42, %s5746_s27  ;;  %v5965_v44 = vld [vmem:[#allocation2 + $0x19] sm:$0xff]  ;;  %750 = vst.msk [vmem:[#allocation2 + $0x91] sm:$0xff] %vm739_vm0, %v716_v40  ;;  %v731_v5 = vld [vmem:[%s5935_s22 + $0xc8] sm:$0xff]  ;;  %v732_v13 = vld [vmem:[%s5935_s22 + $0xd0] sm:$0xff]  ;;  %vm3117_vm14 = vcmask 64512   ;;  %vm3132_vm15 = vcmask 57344  }
  0x49   : > { %921 = vrot.lane.b32.xlu1 %v5965_v44, %s5746_s27  ;;  %743 = vst.msk [vmem:[#allocation2 + $0x39] sm:$0xff] %vm739_vm0, %v709_v41  ;;  %v5982_v50 = vld [vmem:[#allocation2 + $0x21] sm:$0xff]  ;;  %v733_v30 = vld [vmem:[%s5935_s22 + $0xd8] sm:$0xff] }
  0x4a   : > { %748 = vst.msk [vmem:[#allocation2 + $0x79] sm:$0xff] %vm739_vm0, %v714_v43  ;;  %v6012_v61 = vld [vmem:[#allocation2 + $0x69] sm:$0xff]  ;;  %v730_v28 = vld [vmem:[%s5935_s22 + $0xc0] sm:$0xff]  ;;  %v6215_v39 = vld [vmem:[#allocation2 + $0x18] sm:$0xff] }
  0x4b   : > { %v5975_v48 = vld [vmem:[#allocation2 + $0x31] sm:$0xff]  ;;  %753 = vst.msk [vmem:[#allocation2 + $0xb1] sm:$0xff] %vm739_vm0, %v719_v45  ;;  %v727_v12 = vld [vmem:[%s5935_s22 + $0xa8] sm:$0xff]  ;;  %v6225_v43 = vld [vmem:[#allocation2 + $0x1a] sm:$0xff] }
  0x4c   : > { %925 = vrot.lane.b32.xlu2 %v5975_v48, %s5746_s27  ;;  %746 = vst.msk [vmem:[#allocation2 + $0x61] sm:$0xff] %vm739_vm0, %v712_v46  ;;  %v853_v49 = vld [vmem:[#allocation2 + $0x1] sm:$0xff] }
  0x4d   : > { %751 = vst.msk [vmem:[#allocation2 + $0x99] sm:$0xff] %vm739_vm0, %v717_v47  ;;  %v854_v55 = vld [vmem:[#allocation2 + $0x9] sm:$0xff]  ;;  %v789_v37 = vld [vmem:[#allocation2] sm:$0xff] }
  0x4e   : > { %756 = vst.msk [vmem:[#allocation2 + $0x109] sm:$0xff] %vm739_vm0, %v722_v51  ;;  %v5997_v56 = vld [vmem:[#allocation2 + $0x51] sm:$0xff]  ;;  %v735_v29 = vld [vmem:[%s5935_s22 + $0xe8] sm:$0xff] }
  0x4f   : > { %749 = vst.msk [vmem:[#allocation2 + $0x81] sm:$0xff] %vm739_vm0, %v715_v52  ;;  %v6030_v3 = vld [vmem:[#allocation2 + $0x91] sm:$0xff]  ;;  %v790_v46 = vld [vmem:[#allocation2 + $0x8] sm:$0xff] }
  0x50   : > { %917 = vrot.lane.b32.xlu0 %v853_v49, %s5746_s27  ;;  %v5991_v54 = vld [vmem:[#allocation2 + $0x39] sm:$0xff]  ;;  %782 = vst.msk [vmem:[#allocation2 + $0xf1] sm:$0xff] %vm739_vm0, %v776_v53  ;;  %v1047_v27 = vld [vmem:[#allocation2 + $0xa] sm:$0xff]  ;;  %v1046_v51 = vld [vmem:[#allocation2 + $0x2] sm:$0xff] }
  0x51   : > { %923 = vrot.lane.b32.xlu1 %v5982_v50, %s5746_s27  ;;  %759 = vst.msk [vmem:[#allocation2 + $0x129] sm:$0xff] %vm739_vm0, %v725_v57  ;;  %v6014_v62 = vld [vmem:[#allocation2 + $0x79] sm:$0xff] }
  0x52   : > { %752 = vst.msk [vmem:[#allocation2 + $0xa9] sm:$0xff] %vm739_vm0, %v718_v58  ;;  %v6048_v9 = vld [vmem:[#allocation2 + $0xb1] sm:$0xff]  ;;  %v6236_v49 = vld [vmem:[#allocation2 + $0x20] sm:$0xff] }
  0x53   : > { %v6006_v60 = vld [vmem:[#allocation2 + $0x61] sm:$0xff]  ;;  %757 = vst.msk [vmem:[#allocation2 + $0x111] sm:$0xff] %vm739_vm0, %v723_v59  ;;  %v6199_v33 = vld [vmem:[#allocation2 + $0x32] sm:$0xff] }
  0x54   : > { %927 = vrot.lane.b32.xlu2 %v5991_v54, %s5746_s27  ;;  %762 = vst.msk [vmem:[#allocation2 + $0x151] sm:$0xff] %vm739_vm0, %v728_v63  ;;  %v6032_v4 = vld [vmem:[#allocation2 + $0x99] sm:$0xff]  ;;  %v6253_v57 = vld [vmem:[#allocation2 + $0x68] sm:$0xff] }
  0x55   : > { %783 = vst.msk [vmem:[#allocation2 + $0xf9] sm:$0xff] %vm739_vm0, %v777_v0  ;;  %v6060_v15 = vld [vmem:[#allocation2 + $0x109] sm:$0xff]  ;;  %v6212_v38 = vld [vmem:[#allocation2 + $0x38] sm:$0xff] }
  0x56   : > { %v6024_v2 = vld [vmem:[#allocation2 + $0x81] sm:$0xff]  ;;  %760 = vst.msk [vmem:[#allocation2 + $0x139] sm:$0xff] %vm739_vm0, %v726_v1  ;;  %v6260_v0 = vld [vmem:[#allocation2 + $0x50] sm:$0xff] }
  0x57   : > { %765 = vst.msk [vmem:[#allocation2 + $0x171] sm:$0xff] %vm739_vm0, %v731_v5  ;;  %v869_v10 = vld [vmem:[#allocation2 + $0xf1] sm:$0xff]  ;;  %v6243_v52 = vld [vmem:[#allocation2 + $0x7a] sm:$0xff] }
  0x58   : > { %919 = vrot.lane.b32.xlu0 %v854_v55, %s5746_s27  ;;  %758 = vst.msk [vmem:[#allocation2 + $0x121] sm:$0xff] %vm739_vm0, %v724_v6  ;;  %v6082_v19 = vld [vmem:[#allocation2 + $0x129] sm:$0xff]  ;;  %v6257_v59 = vld [vmem:[#allocation2 + $0x80] sm:$0xff] }
  0x59   : > { %931 = vrot.lane.b32.xlu1 %v5997_v56, %s5746_s27  ;;  %v6042_v8 = vld [vmem:[#allocation2 + $0xa9] sm:$0xff]  ;;  %763 = vst.msk [vmem:[#allocation2 + $0x159] sm:$0xff] %vm739_vm0, %v729_v7 }
  0x5a   : > { %768 = vst.msk [vmem:[#allocation2 + $0x199] sm:$0xff] %vm739_vm0, %v734_v11  ;;  %v6062_v16 = vld [vmem:[#allocation2 + $0x111] sm:$0xff]  ;;  %v6269_v6 = vld [vmem:[#allocation2 + $0x62] sm:$0xff] }
  0x5b   : > { %761 = vst.msk [vmem:[#allocation2 + $0x141] sm:$0xff] %vm739_vm0, %v727_v12  ;;  %v6110_v22 = vld [vmem:[#allocation2 + $0x151] sm:$0xff] }
  0x5c   : > { %933 = vrot.lane.b32.xlu2 %v6006_v60, %s5746_s27  ;;  %v870_v14 = vld [vmem:[#allocation2 + $0xf9] sm:$0xff]  ;;  %766 = vst.msk [vmem:[#allocation2 + $0x181] sm:$0xff] %vm739_vm0, %v732_v13 }
  0x5d   : > { %668 = vst.msk [vmem:[#allocation2 + $0x30] sm:$0x1] %vm665_vm1, %v8744_v17  ;;  %v6086_v20 = vld [vmem:[#allocation2 + $0x139] sm:$0xff] }
  0x5e   : > { %669 = vst.msk [vmem:[#allocation2 + $0x48] sm:$0x1] %vm665_vm1, %v8744_v17  ;;  %v6134_v24 = vld [vmem:[#allocation2 + $0x171] sm:$0xff] }
  0x5f   : > { %v6070_v18 = vld [vmem:[#allocation2 + $0x121] sm:$0xff]  ;;  %670 = vst.msk [vmem:[#allocation2 + $0x60] sm:$0x1] %vm665_vm1, %v8744_v17 }
  0x60   : > { %935 = vrot.lane.b32.xlu0 %v6012_v61, %s5746_s27  ;;  %671 = vst.msk [vmem:[#allocation2 + $0x78] sm:$0x1] %vm665_vm1, %v8744_v17  ;;  %v6114_v23 = vld [vmem:[#allocation2 + $0x159] sm:$0xff] }
  0x61   : > { %937 = vrot.lane.b32.xlu1 %v6014_v62, %s5746_s27  ;;  %672 = vst.msk [vmem:[#allocation2 + $0x90] sm:$0x1] %vm665_vm1, %v8744_v17  ;;  %v6158_v26 = vld [vmem:[#allocation2 + $0x199] sm:$0xff] }
  0x62   : > { %673 = vst.msk [vmem:[#allocation2 + $0xa8] sm:$0x1] %vm665_vm1, %v8744_v17  ;;  %v6098_v21 = vld [vmem:[#allocation2 + $0x141] sm:$0xff] }
  0x63   : > { %674 = vst.msk [vmem:[#allocation2 + $0xc0] sm:$0x1] %vm665_vm1, %v8744_v17  ;;  %v6138_v25 = vld [vmem:[#allocation2 + $0x181] sm:$0xff] }
  0x64   : > { %939 = vrot.lane.b32.xlu2 %v6024_v2, %s5746_s27  ;;  %675 = vst.msk [vmem:[#allocation2 + $0xd8] sm:$0x1] %vm665_vm1, %v8744_v17  ;;  %v6192_v32 = vld [vmem:[#allocation2 + $0x30] sm:$0xff] }
  0x65   : > { %676 = vst.msk [vmem:[#allocation2 + $0xf0] sm:$0x1] %vm665_vm1, %v8744_v17  ;;  %v6190_v31 = vld [vmem:[#allocation2 + $0x48] sm:$0xff] }
  0x66   : > { %677 = vst.msk [vmem:[#allocation2 + $0x108] sm:$0x1] %vm665_vm1, %v8744_v17  ;;  %v6234_v47 = vld [vmem:[#allocation2 + $0x60] sm:$0xff] }
  0x67   : > { %678 = vst.msk [vmem:[#allocation2 + $0x120] sm:$0x1] %vm665_vm1, %v8744_v17 }
  0x68   : > { %941 = vrot.lane.b32.xlu0 %v6030_v3, %s5746_s27  ;;  %679 = vst.msk [vmem:[#allocation2 + $0x138] sm:$0x1] %vm665_vm1, %v8744_v17 }
  0x69   : > { %943 = vrot.lane.b32.xlu1 %v6032_v4, %s5746_s27  ;;  %680 = vst.msk [vmem:[#allocation2 + $0x150] sm:$0x1] %vm665_vm1, %v8744_v17  ;;  %v6284_v12 = vld [vmem:[#allocation2 + $0xa8] sm:$0xff] }
  0x6a   : > { %681 = vst.msk [vmem:[#allocation2 + $0x168] sm:$0x1] %vm665_vm1, %v8744_v17 }
  0x6b   : > { %682 = vst.msk [vmem:[#allocation2 + $0x180] sm:$0x1] %vm665_vm1, %v8744_v17 }
  0x6c   : > { %945 = vrot.lane.b32.xlu2 %v6042_v8, %s5746_s27  ;;  %683 = vst.msk [vmem:[#allocation2 + $0x198] sm:$0x1] %vm665_vm1, %v8744_v17 }
  0x6d   : > { %684 = vst.msk [vmem:[#allocation2 + $0x1b0] sm:$0x1] %vm665_vm1, %v8744_v17 }
  0x6e   : > { %685 = vst.msk [vmem:[#allocation2 + $0x1c8] sm:$0x1] %vm665_vm1, %v8744_v17 }
  0x6f   : > { %687 = vst.msk [vmem:[#allocation2 + $0x29] sm:$0x1] %vm665_vm1, %v8744_v17 }
  0x70   : > { %947 = vrot.lane.b32.xlu0 %v6048_v9, %s5746_s27  ;;  %688 = vst.msk [vmem:[#allocation2 + $0x41] sm:$0x1] %vm665_vm1, %v8744_v17 }
  0x71   : > { %949 = vrot.lane.b32.xlu1 %v869_v10, %s5746_s27  ;;  %689 = vst.msk [vmem:[#allocation2 + $0x59] sm:$0x1] %vm665_vm1, %v8744_v17  ;;  %v6280_v10 = vld [vmem:[#allocation2 + $0x90] sm:$0xff] }
  0x72   : > { %690 = vst.msk [vmem:[#allocation2 + $0x71] sm:$0x1] %vm665_vm1, %v8744_v17 }
  0x73   : > { %691 = vst.msk [vmem:[#allocation2 + $0x89] sm:$0x1] %vm665_vm1, %v8744_v17 }
  0x74   : > { %951 = vrot.lane.b32.xlu2 %v870_v14, %s5746_s27  ;;  %692 = vst.msk [vmem:[#allocation2 + $0xa1] sm:$0x1] %vm665_vm1, %v8744_v17  ;;  %v6287_v14 = vld [vmem:[#allocation2 + $0x78] sm:$0xff] }
  0x75   : > { %693 = vst.msk [vmem:[#allocation2 + $0xb9] sm:$0x1] %vm665_vm1, %v8744_v17 }
  0x76   : > { %694 = vst.msk [vmem:[#allocation2 + $0xd1] sm:$0x1] %vm665_vm1, %v8744_v17  ;;  %v6263_v1 = vld [vmem:[#allocation2 + $0x22] sm:$0xff] }
  0x77   : > { %695 = vst.msk [vmem:[#allocation2 + $0xe9] sm:$0x1] %vm665_vm1, %v8744_v17  ;;  %v6245_v53 = vld [vmem:[#allocation2 + $0x3a] sm:$0xff] }
  0x78   : > { %953 = vrot.lane.b32.xlu0 %v6060_v15, %s5746_s27  ;;  %696 = vst.msk [vmem:[#allocation2 + $0x101] sm:$0x1] %vm665_vm1, %v8744_v17  ;;  %v6223_v41 = vld [vmem:[#allocation2 + $0x52] sm:$0xff] }
  0x79   : > { %955 = vrot.lane.b32.xlu1 %v6062_v16, %s5746_s27  ;;  %697 = vst.msk [vmem:[#allocation2 + $0x119] sm:$0x1] %vm665_vm1, %v8744_v17 }
  0x7a   : > { %698 = vst.msk [vmem:[#allocation2 + $0x131] sm:$0x1] %vm665_vm1, %v8744_v17 }
  0x7b   : > { %699 = vst.msk [vmem:[#allocation2 + $0x149] sm:$0x1] %vm665_vm1, %v8744_v17  ;;  %v6265_v5 = vld [vmem:[#allocation2 + $0x9a] sm:$0xff] }
  0x7c   : > { %957 = vrot.lane.b32.xlu2 %v6070_v18, %s5746_s27  ;;  %700 = vst.msk [vmem:[#allocation2 + $0x161] sm:$0x1] %vm665_vm1, %v8744_v17 }
  0x7d   : > { %701 = vst.msk [vmem:[#allocation2 + $0x179] sm:$0x1] %vm665_vm1, %v8744_v17 }
  0x7e   : > { %702 = vst.msk [vmem:[#allocation2 + $0x191] sm:$0x1] %vm665_vm1, %v8744_v17 }
  0x7f   : > { %703 = vst.msk [vmem:[#allocation2 + $0x1a9] sm:$0x1] %vm665_vm1, %v8744_v17 }
  0x80   : > { %959 = vrot.lane.b32.xlu0 %v6082_v19, %s5746_s27  ;;  %704 = vst.msk [vmem:[#allocation2 + $0x1c1] sm:$0x1] %vm665_vm1, %v8744_v17 }
  0x81   : > { %961 = vrot.lane.b32.xlu1 %v6086_v20, %s5746_s27  ;;  %705 = vst.msk [vmem:[#allocation2 + $0x1d9] sm:$0x1] %vm665_vm1, %v8744_v17  ;;  %vm3430_vm1 = vcmask 130112  }
  0x82   : > { %764 = vst.msk [vmem:[#allocation2 + $0x169] sm:$0xff] %vm739_vm0, %v730_v28  ;;  %v1062_v28 = vld [vmem:[#allocation2 + $0xf2] sm:$0xff] }
  0x83   : > { %769 = vst.msk [vmem:[#allocation2 + $0x1a1] sm:$0xff] %vm739_vm0, %v735_v29  ;;  %v6294_v29 = vld [vmem:[#allocation2 + $0x82] sm:$0xff] }
  0x84   : > { %963 = vrot.lane.b32.xlu2 %v6098_v21, %s5746_s27  ;;  %767 = vst.msk [vmem:[#allocation2 + $0x189] sm:$0xff] %vm739_vm0, %v733_v30 }
  0x85   : > { %827 = vst.msk [vmem:[#allocation4 + $0x30] sm:$0xff] %vm739_vm0, %v6190_v31 }
  0x86   : > { %825 = vst.msk [vmem:[#allocation4 + $0x20] sm:$0xff] %vm739_vm0, %v6192_v32 }
  0x87   : > { %8771 = vst [vmem:[#allocation7_spill] sm:$0xff] %v6199_v33 }
  0x88   : > { %965 = vrot.lane.b32.xlu0 %v6110_v22, %s5746_s27  ;;  %821 = vst.msk [vmem:[#allocation4] sm:$0xff] %vm739_vm0, %v789_v37 }
  0x89   : > { %967 = vrot.lane.b32.xlu1 %v6114_v23, %s5746_s27  ;;  %v6201_v35 = vld [vmem:[#allocation2 + $0x169] sm:$0xff]  ;;  %826 = vst.msk [vmem:[#allocation4 + $0x28] sm:$0xff] %vm739_vm0, %v6212_v38 }
  0x8a   : > { %v6206_v36 = vld [vmem:[#allocation2 + $0x1a1] sm:$0xff]  ;;  %823 = vst.msk [vmem:[#allocation4 + $0x10] sm:$0xff] %vm739_vm0, %v6215_v39 }
  0x8b   : > { %v6221_v40 = vld [vmem:[#allocation2 + $0x189] sm:$0xff]  ;;  %8772 = vst [vmem:[#allocation8_spill] sm:$0xff] %v6223_v41 }
  0x8c   : > { %969 = vrot.lane.b32.xlu2 %v6201_v35, %s5746_s27  ;;  %8773 = vst [vmem:[#allocation9_spill] sm:$0xff] %v6225_v43 }
  0x8d   : > { %822 = vst.msk [vmem:[#allocation4 + $0x8] sm:$0xff] %vm739_vm0, %v790_v46 }
  0x8e   : > { %829 = vst.msk [vmem:[#allocation4 + $0x40] sm:$0xff] %vm739_vm0, %v6234_v47 }
  0x8f   : > { %824 = vst.msk [vmem:[#allocation4 + $0x18] sm:$0xff] %vm739_vm0, %v6236_v49 }
  0x90   : > { %971 = vrot.lane.b32.xlu0 %v6134_v24, %s5746_s27  ;;  %8774 = vst [vmem:[#allocation10_spill] sm:$0xff] %v6243_v52 }
  0x91   : > { %973 = vrot.lane.b32.xlu1 %v6138_v25, %s5746_s27  ;;  %8775 = vst [vmem:[#allocation11_spill] sm:$0xff] %v6245_v53 }
  0x92   : > { %830 = vst.msk [vmem:[#allocation4 + $0x48] sm:$0xff] %vm739_vm0, %v6253_v57 }
  0x93   : > { %8776 = vst [vmem:[#allocation12_spill] sm:$0xff] %v6265_v5 }
  0x94   : > { %975 = vrot.lane.b32.xlu2 %v6221_v40, %s5746_s27  ;;  %832 = vst.msk [vmem:[#allocation4 + $0x58] sm:$0xff] %vm739_vm0, %v6257_v59 }
  0x95   : > { %8777 = vst [vmem:[#allocation13_spill] sm:$0xff] %v6269_v6 }
  0x96   : > { %828 = vst.msk [vmem:[#allocation4 + $0x38] sm:$0xff] %vm739_vm0, %v6260_v0 }
  0x97   : > { %833 = vst.msk [vmem:[#allocation4 + $0x60] sm:$0xff] %vm739_vm0, %v6280_v10 }
  0x98   : > { %977 = vrot.lane.b32.xlu0 %v6158_v26, %s5746_s27  ;;  %835 = vst.msk [vmem:[#allocation4 + $0x70] sm:$0xff] %vm739_vm0, %v6284_v12 }
  0x99   : > { %979 = vrot.lane.b32.xlu1 %v6206_v36, %s5746_s27  ;;  %8778 = vst [vmem:[#allocation14_spill] sm:$0xff] %v6294_v29 }
  0x9a   : > { %831 = vst.msk [vmem:[#allocation4 + $0x50] sm:$0xff] %vm739_vm0, %v6287_v14 }
  0x9c   : > { %1110 = vrot.lane.b32.xlu2 %v1046_v51, %s5748_s28  ;;  %v6309_v51 = vld [vmem:[#allocation2 + $0x98] sm:$0xff] }
  0x9d   : > { %834 = vst.msk [vmem:[#allocation4 + $0x68] sm:$0xff] %vm739_vm0, %v6309_v51 }
  0xa0   : > { %1112 = vrot.lane.b32.xlu0 %v1047_v27, %s5748_s28  ;;  %v6290_v27 = vld [vmem:[#allocation2 + $0x4a] sm:$0xff] }
  0xa1   : > { %1114 = vrot.lane.b32.xlu1 %v6225_v43, %s5748_s28  ;;  %v6433_v43 = vld [vmem:[#allocation2 + $0x180] sm:$0xff] }
  0xa2   : > { %849 = vst.msk [vmem:[#allocation4 + $0xe0] sm:$0xff] %vm739_vm0, %v6433_v43 }
  0xa4   : > { %1116 = vrot.lane.b32.xlu2 %v6263_v1, %s5748_s28 }
  0xa6   : > { %v926_v34 = vpop.permute.xlu2 %925 }
  0xa7   : > { %1018 = vst.msk [vmem:[#allocation4 + $0x20] sm:$0xff] %vm1013_vm2, %v926_v34  ;;  %v6304_v34 = vld [vmem:[#allocation2 + $0xb0] sm:$0xff] }
  0xa8   : > { %1118 = vrot.lane.b32.xlu0 %v6199_v33, %s5748_s28  ;;  %836 = vst.msk [vmem:[#allocation4 + $0x78] sm:$0xff] %vm739_vm0, %v6304_v34  ;;  %v6451_v33 = vld [vmem:[#allocation2 + $0x1a0] sm:$0xff] }
  0xa9   : > { %1120 = vrot.lane.b32.xlu1 %v6245_v53, %s5748_s28  ;;  %852 = vst.msk [vmem:[#allocation4 + $0xf8] sm:$0xff] %vm739_vm0, %v6451_v33 }
  0xac   : > { %1122 = vrot.lane.b32.xlu2 %v6290_v27, %s5748_s28 }
  0xae   : > { %v928_v45 = vpop.permute.xlu2 %927 }
  0xaf   : > { %1019 = vst.msk [vmem:[#allocation4 + $0x28] sm:$0xff] %vm1013_vm2, %v928_v45  ;;  %v806_v45 = vld [vmem:[#allocation2 + $0xf8] sm:$0xff] }
  0xb0   : > { %1124 = vrot.lane.b32.xlu0 %v6223_v41, %s5748_s28  ;;  %838 = vst.msk [vmem:[#allocation4 + $0x88] sm:$0xff] %vm739_vm0, %v806_v45  ;;  %v6336_v45 = vld [vmem:[#allocation2 + $0x92] sm:$0xff] }
  0xb1   : > { %1126 = vrot.lane.b32.xlu1 %v6269_v6, %s5748_s28  ;;  %8782 = vst [vmem:[#allocation18_spill] sm:$0xff] %v6336_v45  ;;  %v6383_v6 = vld [vmem:[#allocation2 + $0x138] sm:$0xff] }
  0xb2   : > { %843 = vst.msk [vmem:[#allocation4 + $0xb0] sm:$0xff] %vm739_vm0, %v6383_v6  ;;  %v6409_v41 = vld [vmem:[#allocation2 + $0x158] sm:$0xff] }
  0xb3   : > { %846 = vst.msk [vmem:[#allocation4 + $0xc8] sm:$0xff] %vm739_vm0, %v6409_v41 }
  0xb6   : > { %v934_v55 = vpop.permute.xlu2 %933 }
  0xb7   : > { %1022 = vst.msk [vmem:[#allocation4 + $0x40] sm:$0xff] %vm1013_vm2, %v934_v55  ;;  %v6312_v55 = vld [vmem:[#allocation2 + $0x6a] sm:$0xff] }
  0xb8   : > { %1130 = vrot.lane.b32.xlu0 %v6243_v52, %s5748_s28  ;;  %8779 = vst [vmem:[#allocation15_spill] sm:$0xff] %v6312_v55  ;;  %1128 = vrot.lane.b32.xlu2 %v6312_v55, %s5748_s28  ;;  %v6386_v52 = vld [vmem:[#allocation2 + $0x10a] sm:$0xff]  ;;  %v6454_v55 = vld [vmem:[#allocation2 + $0x172] sm:$0xff] }
  0xb9   : > { %1132 = vrot.lane.b32.xlu1 %v6294_v29, %s5748_s28  ;;  %8787 = vst [vmem:[#allocation23_spill] sm:$0xff] %v6386_v52 }
  0xba   : > { %v930_v58 = vpop.permute.xlu0 %929 }
  0xbb   : > { %1020 = vst.msk [vmem:[#allocation4 + $0x30] sm:$0xff] %vm1013_vm2, %v930_v58  ;;  %v922_v63 = vpop.permute.xlu1 %921  ;;  %v6314_v58 = vld [vmem:[#allocation2 + $0x112] sm:$0xff] }
  0xbc   : > { %1016 = vst.msk [vmem:[#allocation4 + $0x10] sm:$0xff] %vm1013_vm2, %v922_v63  ;;  %v6317_v63 = vld [vmem:[#allocation2 + $0xaa] sm:$0xff] }
  0xbd   : > { %8780 = vst [vmem:[#allocation16_spill] sm:$0xff] %v6314_v58 }
  0xbe   : > { %v940_v7 = vpop.permute.xlu2 %939  ;;  %8781 = vst [vmem:[#allocation17_spill] sm:$0xff] %v6317_v63 }
  0xbf   : > { %1025 = vst.msk [vmem:[#allocation4 + $0x58] sm:$0xff] %vm1013_vm2, %v940_v7 }
  0xc0   : > { %1136 = vrot.lane.b32.xlu0 %v6265_v5, %s5748_s28  ;;  %1134 = vrot.lane.b32.xlu2 %v6336_v45, %s5748_s28  ;;  %v6380_v5 = vld [vmem:[#allocation2 + $0x168] sm:$0xff] }
  0xc1   : > { %1138 = vrot.lane.b32.xlu1 %v6317_v63, %s5748_s28  ;;  %v6359_v63 = vld [vmem:[#allocation2 + $0xb2] sm:$0xff]  ;;  %847 = vst.msk [vmem:[#allocation4 + $0xd0] sm:$0xff] %vm739_vm0, %v6380_v5 }
  0xc2   : > { %v918_v11 = vpop.permute.xlu0 %917  ;;  %8784 = vst [vmem:[#allocation20_spill] sm:$0xff] %v6359_v63 }
  0xc3   : > { %1014 = vst.msk [vmem:[#allocation4] sm:$0xff] %vm1013_vm2, %v918_v11  ;;  %v924_v13 = vpop.permute.xlu1 %923  ;;  %v6328_v11 = vld [vmem:[#allocation2 + $0x108] sm:$0xff] }
  0xc4   : > { %1017 = vst.msk [vmem:[#allocation4 + $0x18] sm:$0xff] %vm1013_vm2, %v924_v13 }
  0xc5   : > { %839 = vst.msk [vmem:[#allocation4 + $0x90] sm:$0xff] %vm739_vm0, %v6328_v11 }
  0xc6   : > { %v946_v30 = vpop.permute.xlu2 %945 }
  0xc7   : > { %1028 = vst.msk [vmem:[#allocation4 + $0x70] sm:$0xff] %vm1013_vm2, %v946_v30 }
  0xc8   : > { %1142 = vrot.lane.b32.xlu0 %v1062_v28, %s5748_s28  ;;  %v6332_v28 = vld [vmem:[#allocation2 + $0x120] sm:$0xff]  ;;  %1140 = vrot.lane.b32.xlu2 %v6359_v63, %s5748_s28  ;;  %v6406_v63 = vld [vmem:[#allocation2 + $0x188] sm:$0xff] }
  0xc9   : > { %841 = vst.msk [vmem:[#allocation4 + $0xa0] sm:$0xff] %vm739_vm0, %v6332_v28 }
  0xca   : > { %v920_v37 = vpop.permute.xlu0 %919  ;;  %850 = vst.msk [vmem:[#allocation4 + $0xe8] sm:$0xff] %vm739_vm0, %v6406_v63 }
  0xcb   : > { %1015 = vst.msk [vmem:[#allocation4 + $0x8] sm:$0xff] %vm1013_vm2, %v920_v37  ;;  %v932_v46 = vpop.permute.xlu1 %931  ;;  %v805_v37 = vld [vmem:[#allocation2 + $0xf0] sm:$0xff] }
  0xcc   : > { %1021 = vst.msk [vmem:[#allocation4 + $0x38] sm:$0xff] %vm1013_vm2, %v932_v46  ;;  %v6338_v46 = vld [vmem:[#allocation2 + $0x13a] sm:$0xff] }
  0xcd   : > { %8783 = vst [vmem:[#allocation19_spill] sm:$0xff] %v6338_v46 }
  0xce   : > { %v952_v7 = vpop.permute.xlu2 %951  ;;  %837 = vst.msk [vmem:[#allocation4 + $0x80] sm:$0xff] %vm739_vm0, %v805_v37 }
  0xcf   : > { %1031 = vst.msk [vmem:[#allocation4 + $0x88] sm:$0xff] %vm1013_vm2, %v952_v7  ;;  %v1063_v7 = vld [vmem:[#allocation2 + $0xfa] sm:$0xff] }
  0xd0   : > { %1148 = vrot.lane.b32.xlu0 %v6314_v58, %s5748_s28  ;;  %1144 = vrot.lane.b32.xlu1 %v1063_v7, %s5748_s28  ;;  %v6353_v58 = vld [vmem:[#allocation2 + $0x140] sm:$0xff] }
  0xd1   : > { %844 = vst.msk [vmem:[#allocation4 + $0xb8] sm:$0xff] %vm739_vm0, %v6353_v58  ;;  %v6365_v7 = vld [vmem:[#allocation2 + $0x122] sm:$0xff]  ;;  %1146 = vrot.lane.b32.xlu2 %v6386_v52, %s5748_s28  ;;  %v6412_v52 = vld [vmem:[#allocation2 + $0x12a] sm:$0xff] }
  0xd2   : > { %v936_v13 = vpop.permute.xlu0 %935  ;;  %8786 = vst [vmem:[#allocation22_spill] sm:$0xff] %v6365_v7 }
  0xd3   : > { %1023 = vst.msk [vmem:[#allocation4 + $0x48] sm:$0xff] %vm1013_vm2, %v936_v13  ;;  %v938_v30 = vpop.permute.xlu1 %937  ;;  %v6349_v13 = vld [vmem:[#allocation2 + $0x128] sm:$0xff] }
  0xd4   : > { %1024 = vst.msk [vmem:[#allocation4 + $0x50] sm:$0xff] %vm1013_vm2, %v938_v30 }
  0xd5   : > { %842 = vst.msk [vmem:[#allocation4 + $0xa8] sm:$0xff] %vm739_vm0, %v6349_v13 }
  0xd6   : > { %v958_v17 = vpop.permute.xlu2 %957  ;;  %8790 = vst [vmem:[#allocation26_spill] sm:$0xff] %v6412_v52 }
  0xd7   : > { %1034 = vst.msk [vmem:[#allocation4 + $0xa0] sm:$0xff] %vm1013_vm2, %v958_v17  ;;  %v6356_v17 = vld [vmem:[#allocation2 + $0x110] sm:$0xff] }
  0xd8   : > { %1154 = vrot.lane.b32.xlu0 %v6338_v46, %s5748_s28  ;;  %v6361_v46 = vld [vmem:[#allocation2 + $0x15a] sm:$0xff]  ;;  %840 = vst.msk [vmem:[#allocation4 + $0x98] sm:$0xff] %vm739_vm0, %v6356_v17  ;;  %1150 = vrot.lane.b32.xlu1 %v6365_v7, %s5748_s28  ;;  %v6392_v7 = vld [vmem:[#allocation2 + $0x142] sm:$0xff] }
  0xd9   : > { %8785 = vst [vmem:[#allocation21_spill] sm:$0xff] %v6361_v46  ;;  %1152 = vrot.lane.b32.xlu2 %v6412_v52, %s5748_s28  ;;  %v6436_v52 = vld [vmem:[#allocation2 + $0x152] sm:$0xff] }
  0xda   : > { %v942_v30 = vpop.permute.xlu0 %941  ;;  %8789 = vst [vmem:[#allocation25_spill] sm:$0xff] %v6392_v7 }
  0xdb   : > { %1026 = vst.msk [vmem:[#allocation4 + $0x60] sm:$0xff] %vm1013_vm2, %v942_v30  ;;  %v944_v37 = vpop.permute.xlu1 %943  ;;  %v6376_v30 = vld [vmem:[#allocation2 + $0x150] sm:$0xff] }
  0xdc   : > { %1027 = vst.msk [vmem:[#allocation4 + $0x68] sm:$0xff] %vm1013_vm2, %v944_v37 }
  0xdd   : > { %845 = vst.msk [vmem:[#allocation4 + $0xc0] sm:$0xff] %vm739_vm0, %v6376_v30 }
  0xde   : > { %v964_v29 = vpop.permute.xlu2 %963 }
  0xdf   : > { %1037 = vst.msk [vmem:[#allocation4 + $0xb8] sm:$0xff] %vm1013_vm2, %v964_v29 }
  0xe0   : > { %1160 = vrot.lane.b32.xlu0 %v6361_v46, %s5748_s28  ;;  %v6388_v46 = vld [vmem:[#allocation2 + $0x182] sm:$0xff]  ;;  %1156 = vrot.lane.b32.xlu1 %v6392_v7, %s5748_s28  ;;  %v6418_v7 = vld [vmem:[#allocation2 + $0x16a] sm:$0xff] }
  0xe1   : > { %8788 = vst [vmem:[#allocation24_spill] sm:$0xff] %v6388_v46  ;;  %1158 = vrot.lane.b32.xlu2 %v6436_v52, %s5748_s28 }
  0xe2   : > { %v948_v37 = vpop.permute.xlu0 %947  ;;  %8792 = vst [vmem:[#allocation28_spill] sm:$0xff] %v6418_v7 }
  0xe3   : > { %1029 = vst.msk [vmem:[#allocation4 + $0x78] sm:$0xff] %vm1013_vm2, %v948_v37  ;;  %v950_v29 = vpop.permute.xlu1 %949  ;;  %v6402_v37 = vld [vmem:[#allocation2 + $0x170] sm:$0xff] }
  0xe4   : > { %1030 = vst.msk [vmem:[#allocation4 + $0x80] sm:$0xff] %vm1013_vm2, %v950_v29 }
  0xe5   : > { %848 = vst.msk [vmem:[#allocation4 + $0xd8] sm:$0xff] %vm739_vm0, %v6402_v37 }
  0xe8   : > { %1166 = vrot.lane.b32.xlu0 %v6388_v46, %s5748_s28  ;;  %v6414_v46 = vld [vmem:[#allocation2 + $0x1a2] sm:$0xff]  ;;  %1162 = vrot.lane.b32.xlu1 %v6418_v7, %s5748_s28 }
  0xe9   : > { %8791 = vst [vmem:[#allocation27_spill] sm:$0xff] %v6414_v46  ;;  %1164 = vrot.lane.b32.xlu2 %v6454_v55, %s5748_s28 }
  0xea   : > { %v954_v29 = vpop.permute.xlu0 %953 }
  0xeb   : > { %1032 = vst.msk [vmem:[#allocation4 + $0x90] sm:$0xff] %vm1013_vm2, %v954_v29  ;;  %v956_v53 = vpop.permute.xlu1 %955 }
  0xec   : > { %1033 = vst.msk [vmem:[#allocation4 + $0x98] sm:$0xff] %vm1013_vm2, %v956_v53  ;;  %v6428_v53 = vld [vmem:[#allocation2 + $0x198] sm:$0xff] }
  0xed   : > { %851 = vst.msk [vmem:[#allocation4 + $0xf0] sm:$0xff] %vm739_vm0, %v6428_v53 }
  0xf0   : > { %1172 = vrot.lane.b32.xlu0 %v6414_v46, %s5748_s28  ;;  %v6440_v46 = vld [vmem:[#allocation2 + $0x18a] sm:$0xff] }
  0xf1   : > { %8793 = vst [vmem:[#allocation29_spill] sm:$0xff] %v6440_v46  ;;  %1168 = vrot.lane.b32.xlu1 %v6440_v46, %s5748_s28  ;;  %v6468_v46 = vld [vmem:[#allocation2 + $0x19a] sm:$0xff] }
  0xf2   : > { %v960_v29 = vpop.permute.xlu0 %959  ;;  %1170 = vrot.lane.b32.xlu2 %v6468_v46, %s5748_s28 }
  0xf3   : > { %1035 = vst.msk [vmem:[#allocation4 + $0xa8] sm:$0xff] %vm1013_vm2, %v960_v29  ;;  %v962_v45 = vpop.permute.xlu1 %961  ;;  %v720_v29 = vld [vmem:[%s5935_s22 + $0x70] sm:$0xff] }
  0xf4   : > { %1036 = vst.msk [vmem:[#allocation4 + $0xb0] sm:$0xff] %vm1013_vm2, %v962_v45 }
  0xf5   : > { %754 = vst.msk [vmem:[#allocation2 + $0xc1] sm:$0xff] %vm739_vm0, %v720_v29  ;;  %v970_v29 = vpop.permute.xlu2 %969 }
  0xf6   : > { %1040 = vst.msk [vmem:[#allocation4 + $0xd0] sm:$0xff] %vm1013_vm2, %v970_v29 }
  0xf8   : > { %1307 = vrot.lane.b32.xlu0 %v6192_v32, %s5749_s29  ;;  %v721_v32 = vld [vmem:[%s5935_s22 + $0x78] sm:$0xff] }
  0xf9   : > { %1303 = vrot.lane.b32.xlu1 %v6215_v39, %s5749_s29  ;;  %755 = vst.msk [vmem:[#allocation2 + $0xc9] sm:$0xff] %vm739_vm0, %v721_v32 }
  0xfa   : > { %v966_v45 = vpop.permute.xlu0 %965  ;;  %1305 = vrot.lane.b32.xlu2 %v6236_v49, %s5749_s29 }
  0xfb   : > { %1038 = vst.msk [vmem:[#allocation4 + $0xc0] sm:$0xff] %vm1013_vm2, %v966_v45  ;;  %v968_v7 = vpop.permute.xlu1 %967 }
  0xfc   : > { %1039 = vst.msk [vmem:[#allocation4 + $0xc8] sm:$0xff] %vm1013_vm2, %v968_v7 }
  0xfd   : > { %v976_v39 = vpop.permute.xlu2 %975 }
  0xfe   : > { %1043 = vst.msk [vmem:[#allocation4 + $0xe8] sm:$0xff] %vm1013_vm2, %v976_v39 }
 0x100   : > { %1313 = vrot.lane.b32.xlu0 %v6260_v0, %s5749_s29 }
 0x101   : > { %1309 = vrot.lane.b32.xlu1 %v6212_v38, %s5749_s29  ;;  %v6487_v38 = vld [vmem:[#allocation2 + $0xc0] sm:$0xff] }
 0x102   : > { %v972_v45 = vpop.permute.xlu0 %971  ;;  %1311 = vrot.lane.b32.xlu2 %v6190_v31, %s5749_s29 }
 0x103   : > { %1041 = vst.msk [vmem:[#allocation4 + $0xd8] sm:$0xff] %vm1013_vm2, %v972_v45  ;;  %v974_v7 = vpop.permute.xlu1 %973 }
 0x104   : > { %1042 = vst.msk [vmem:[#allocation4 + $0xe0] sm:$0xff] %vm1013_vm2, %v974_v7 }
 0x105   : > { %v1111_v29 = vpop.permute.xlu2 %1110 }
 0x106   : > { %1207 = vst.msk [vmem:[#allocation4] sm:$0xff] %vm1206_vm3, %v1111_v29 }
 0x108   : > { %1319 = vrot.lane.b32.xlu0 %v6287_v14, %s5749_s29 }
 0x109   : > { %1315 = vrot.lane.b32.xlu1 %v6234_v47, %s5749_s29 }
 0x10a   : > { %v978_v32 = vpop.permute.xlu0 %977  ;;  %1317 = vrot.lane.b32.xlu2 %v6253_v57, %s5749_s29  ;;  %v736_v57 = vld [vmem:[%s5935_s22 + $0xf0] sm:$0xff] }
 0x10b   : > { %1044 = vst.msk [vmem:[#allocation4 + $0xf0] sm:$0xff] %vm1013_vm2, %v978_v32  ;;  %v980_v47 = vpop.permute.xlu1 %979  ;;  %v6507_v32 = vld [vmem:[#allocation2 + $0xc8] sm:$0xff] }
 0x10c   : > { %1045 = vst.msk [vmem:[#allocation4 + $0xf8] sm:$0xff] %vm1013_vm2, %v980_v47  ;;  %v737_v47 = vld [vmem:[%s5935_s22 + $0xf8] sm:$0xff]  ;;  %s6988_s22 = scalar_select %p642_p11, %s5835_s20, 1  ;;  %vm3623_vm2 = vcmask 195712  }
 0x10d   : > { %v1117_v49 = vpop.permute.xlu2 %1116  ;;  %770 = vst.msk [vmem:[#allocation2 + $0x1b1] sm:$0xff] %vm739_vm0, %v736_v57 }
 0x10e   : > { %1210 = vst.msk [vmem:[#allocation4 + $0x18] sm:$0xff] %vm1206_vm3, %v1117_v49  ;;  %s5674_s23 = smul.u32 40, %s6988_s22  ;;  %s649_s17 = scalar_lea.vmem %s8738_s6, %s6988_s22 }
 0x10f   : > { %771 = vst.msk [vmem:[#allocation2 + $0x1b9] sm:$0xff] %vm739_vm0, %v737_v47  ;;  %s660_s27 = scalar_lea.vmem %s8741_s9, %s6988_s22 }
 0x110   : > { %1325 = vrot.lane.b32.xlu0 %v6309_v51, %s5749_s29 }
 0x111   : > { %1321 = vrot.lane.b32.xlu1 %v6257_v59, %s5749_s29 }
 0x112   : > { %v1113_v45 = vpop.permute.xlu0 %1112  ;;  %1323 = vrot.lane.b32.xlu2 %v6280_v10, %s5749_s29 }
 0x113   : > { %1208 = vst.msk [vmem:[#allocation4 + $0x8] sm:$0xff] %vm1206_vm3, %v1113_v45  ;;  %v1115_v39 = vpop.permute.xlu1 %1114 }
 0x114   : > { %1209 = vst.msk [vmem:[#allocation4 + $0x10] sm:$0xff] %vm1206_vm3, %v1115_v39 }
 0x115   : > { %v1123_v31 = vpop.permute.xlu2 %1122 }
 0x116   : > { %1213 = vst.msk [vmem:[#allocation4 + $0x30] sm:$0xff] %vm1206_vm3, %v1123_v31 }
 0x118   : > { %1331 = vrot.lane.b32.xlu0 %v6487_v38, %s5749_s29 }
 0x119   : > { %1327 = vrot.lane.b32.xlu1 %v6284_v12, %s5749_s29 }
 0x11a   : > { %v1119_v7 = vpop.permute.xlu0 %1118  ;;  %1329 = vrot.lane.b32.xlu2 %v6304_v34, %s5749_s29 }
 0x11b   : > { %1211 = vst.msk [vmem:[#allocation4 + $0x20] sm:$0xff] %vm1206_vm3, %v1119_v7  ;;  %v1121_v29 = vpop.permute.xlu1 %1120 }
 0x11c   : > { %1212 = vst.msk [vmem:[#allocation4 + $0x28] sm:$0xff] %vm1206_vm3, %v1121_v29 }
 0x11d   : > { %v1129_v12 = vpop.permute.xlu2 %1128 }
 0x11e   : > { %1216 = vst.msk [vmem:[#allocation4 + $0x48] sm:$0xff] %vm1206_vm3, %v1129_v12 }
 0x120   : > { %1337 = vrot.lane.b32.xlu0 %v6356_v17, %s5749_s29 }
 0x121   : > { %1333 = vrot.lane.b32.xlu1 %v6507_v32, %s5749_s29 }
 0x122   : > { %v1125_v59 = vpop.permute.xlu0 %1124  ;;  %1335 = vrot.lane.b32.xlu2 %v6328_v11, %s5749_s29 }
 0x123   : > { %1214 = vst.msk [vmem:[#allocation4 + $0x38] sm:$0xff] %vm1206_vm3, %v1125_v59  ;;  %v1127_v7 = vpop.permute.xlu1 %1126 }
 0x124   : > { %1215 = vst.msk [vmem:[#allocation4 + $0x40] sm:$0xff] %vm1206_vm3, %v1127_v7  ;;  %v6577_v7 = vld [vmem:[#allocation2 + $0x1b8] sm:$0xff] }
 0x125   : > { %v1135_v45 = vpop.permute.xlu2 %1134 }
 0x126   : > { %1219 = vst.msk [vmem:[#allocation4 + $0x60] sm:$0xff] %vm1206_vm3, %v1135_v45 }
 0x128   : > { %1343 = vrot.lane.b32.xlu0 %v6383_v6, %s5749_s29 }
 0x129   : > { %1339 = vrot.lane.b32.xlu1 %v6332_v28, %s5749_s29 }
 0x12a   : > { %v1131_v17 = vpop.permute.xlu0 %1130  ;;  %1341 = vrot.lane.b32.xlu2 %v6349_v13, %s5749_s29 }
 0x12b   : > { %1217 = vst.msk [vmem:[#allocation4 + $0x50] sm:$0xff] %vm1206_vm3, %v1131_v17  ;;  %v1133_v59 = vpop.permute.xlu1 %1132  ;;  %v6558_v17 = vld [vmem:[#allocation2 + $0x1b0] sm:$0xff] }
 0x12c   : > { %1218 = vst.msk [vmem:[#allocation4 + $0x58] sm:$0xff] %vm1206_vm3, %v1133_v59 }
 0x12d   : > { %v1141_v28 = vpop.permute.xlu2 %1140 }
 0x12e   : > { %1222 = vst.msk [vmem:[#allocation4 + $0x78] sm:$0xff] %vm1206_vm3, %v1141_v28 }
 0x130   : > { %1349 = vrot.lane.b32.xlu0 %v6409_v41, %s5749_s29 }
 0x131   : > { %1345 = vrot.lane.b32.xlu1 %v6353_v58, %s5749_s29 }
 0x132   : > { %v1137_v49 = vpop.permute.xlu0 %1136  ;;  %1347 = vrot.lane.b32.xlu2 %v6376_v30, %s5749_s29 }
 0x133   : > { %1220 = vst.msk [vmem:[#allocation4 + $0x68] sm:$0xff] %vm1206_vm3, %v1137_v49  ;;  %v1139_v39 = vpop.permute.xlu1 %1138 }
 0x134   : > { %1221 = vst.msk [vmem:[#allocation4 + $0x70] sm:$0xff] %vm1206_vm3, %v1139_v39  ;;  %v6647_v39 = vld [vmem:[#allocation2 + $0x1b1] sm:$0xff] }
 0x135   : > { %v1147_v58 = vpop.permute.xlu2 %1146 }
 0x136   : > { %1225 = vst.msk [vmem:[#allocation4 + $0x90] sm:$0xff] %vm1206_vm3, %v1147_v58  ;;  %v6626_v58 = vld [vmem:[#allocation2 + $0xc1] sm:$0xff] }
 0x138   : > { %1355 = vrot.lane.b32.xlu0 %v6433_v43, %s5749_s29 }
 0x139   : > { %1351 = vrot.lane.b32.xlu1 %v6380_v5, %s5749_s29 }
 0x13a   : > { %v1143_v31 = vpop.permute.xlu0 %1142  ;;  %1353 = vrot.lane.b32.xlu2 %v6402_v37, %s5749_s29 }
 0x13b   : > { %1223 = vst.msk [vmem:[#allocation4 + $0x80] sm:$0xff] %vm1206_vm3, %v1143_v31  ;;  %v6598_v31 = vld [vmem:[#allocation2 + $0xc9] sm:$0xff] }
 0x13d   : > { %v1153_v5 = vpop.permute.xlu2 %1152 }
 0x13e   : > { %1228 = vst.msk [vmem:[#allocation4 + $0xa8] sm:$0xff] %vm1206_vm3, %v1153_v5 }
 0x140   : > { %1361 = vrot.lane.b32.xlu0 %v6451_v33, %s5749_s29 }
 0x141   : > { %1357 = vrot.lane.b32.xlu1 %v6406_v63, %s5749_s29 }
 0x142   : > { %v1149_v11 = vpop.permute.xlu0 %1148  ;;  %v1145_v12 = vpop.permute.xlu1 %1144  ;;  %1359 = vrot.lane.b32.xlu2 %v6428_v53, %s5749_s29 }
 0x143   : > { %1226 = vst.msk [vmem:[#allocation4 + $0x98] sm:$0xff] %vm1206_vm3, %v1149_v11 }
 0x144   : > { %1224 = vst.msk [vmem:[#allocation4 + $0x88] sm:$0xff] %vm1206_vm3, %v1145_v12 }
 0x148   : > { %1496 = vrot.lane.b32.xlu0 %v5965_v44, %s5750_s30  ;;  %v1159_v44 = vpop.permute.xlu2 %1158 }
 0x149   : > { %1363 = vrot.lane.b32.xlu1 %v6558_v17, %s5749_s29  ;;  %1231 = vst.msk [vmem:[#allocation4 + $0xc0] sm:$0xff] %vm1206_vm3, %v1159_v44 }
 0x14a   : > { %v1155_v57 = vpop.permute.xlu0 %1154  ;;  %v1151_v29 = vpop.permute.xlu1 %1150  ;;  %1365 = vrot.lane.b32.xlu2 %v6577_v7, %s5749_s29  ;;  %s7004_s29 = scalar_lea.vmem %s8737_s5, %s5674_s23 }
 0x14b   : > { %1229 = vst.msk [vmem:[#allocation4 + $0xb0] sm:$0xff] %vm1206_vm3, %v1155_v57  ;;  %v6667_v57 = vld [vmem:[#allocation2 + $0x1b9] sm:$0xff] }
 0x14c   : > { %1227 = vst.msk [vmem:[#allocation4 + $0xa0] sm:$0xff] %vm1206_vm3, %v1151_v29  ;;  %v8796_v29 = vld [vmem:[#allocation9_spill] sm:$0xff] }
 0x150   : > { %1502 = vrot.lane.b32.xlu0 %v5991_v54, %s5750_s30  ;;  %v1165_v54 = vpop.permute.xlu2 %1164 }
 0x151   : > { %1498 = vrot.lane.b32.xlu1 %v5982_v50, %s5750_s30  ;;  %1234 = vst.msk [vmem:[#allocation4 + $0xd8] sm:$0xff] %vm1206_vm3, %v1165_v54  ;;  %v8798_v54 = vld [vmem:[#allocation8_spill] sm:$0xff] }
 0x152   : > { %v1161_v63 = vpop.permute.xlu0 %1160  ;;  %v1157_v49 = vpop.permute.xlu1 %1156  ;;  %1500 = vrot.lane.b32.xlu2 %v5975_v48, %s5750_s30 }
 0x153   : > { %1232 = vst.msk [vmem:[#allocation4 + $0xc8] sm:$0xff] %vm1206_vm3, %v1161_v63 }
 0x154   : > { %1230 = vst.msk [vmem:[#allocation4 + $0xb8] sm:$0xff] %vm1206_vm3, %v1157_v49 }
 0x158   : > { %1508 = vrot.lane.b32.xlu0 %v6006_v60, %s5750_s30  ;;  %v1171_v50 = vpop.permute.xlu2 %1170 }
 0x159   : > { %1504 = vrot.lane.b32.xlu1 %v5959_v42, %s5750_s30  ;;  %1237 = vst.msk [vmem:[#allocation4 + $0xf0] sm:$0xff] %vm1206_vm3, %v1171_v50 }
 0x15a   : > { %v1167_v45 = vpop.permute.xlu0 %1166  ;;  %v1163_v47 = vpop.permute.xlu1 %1162  ;;  %1506 = vrot.lane.b32.xlu2 %v5997_v56, %s5750_s30 }
 0x15b   : > { %1235 = vst.msk [vmem:[#allocation4 + $0xe0] sm:$0xff] %vm1206_vm3, %v1167_v45 }
 0x15c   : > { %1233 = vst.msk [vmem:[#allocation4 + $0xd0] sm:$0xff] %vm1206_vm3, %v1163_v47  ;;  %v8800_v47 = vld [vmem:[#allocation20_spill] sm:$0xff] }
 0x160   : > { %1514 = vrot.lane.b32.xlu0 %v6024_v2, %s5750_s30  ;;  %v1306_v42 = vpop.permute.xlu2 %1305 }
 0x161   : > { %1510 = vrot.lane.b32.xlu1 %v6012_v61, %s5750_s30  ;;  %1401 = vst.msk [vmem:[#allocation4 + $0x8] sm:$0xff] %vm1399_vm4, %v1306_v42  ;;  %v8801_v42 = vld [vmem:[#allocation10_spill] sm:$0xff] }
 0x162   : > { %v1173_v60 = vpop.permute.xlu0 %1172  ;;  %1512 = vrot.lane.b32.xlu2 %v6014_v62, %s5750_s30 }
 0x163   : > { %1238 = vst.msk [vmem:[#allocation4 + $0xf8] sm:$0xff] %vm1206_vm3, %v1173_v60  ;;  %v1169_v28 = vpop.permute.xlu1 %1168  ;;  %v8799_v60 = vld [vmem:[#allocation11_spill] sm:$0xff] }
 0x164   : > { %1236 = vst.msk [vmem:[#allocation4 + $0xe8] sm:$0xff] %vm1206_vm3, %v1169_v28  ;;  %vm3816_vm3 = vcmask 261312  }
 0x168   : > { %1520 = vrot.lane.b32.xlu0 %v6042_v8, %s5750_s30  ;;  %v1312_v48 = vpop.permute.xlu2 %1311 }
 0x169   : > { %1516 = vrot.lane.b32.xlu1 %v6030_v3, %s5750_s30  ;;  %1404 = vst.msk [vmem:[#allocation4 + $0x20] sm:$0xff] %vm1399_vm4, %v1312_v48 }
 0x16a   : > { %v1308_v2 = vpop.permute.xlu0 %1307  ;;  %1518 = vrot.lane.b32.xlu2 %v6032_v4, %s5750_s30 }
 0x16b   : > { %1402 = vst.msk [vmem:[#allocation4 + $0x10] sm:$0xff] %vm1399_vm4, %v1308_v2  ;;  %v1304_v8 = vpop.permute.xlu1 %1303 }
 0x16c   : > { %1400 = vst.msk [vmem:[#allocation4] sm:$0xff] %vm1399_vm4, %v1304_v8  ;;  %v8803_v8 = vld [vmem:[#allocation23_spill] sm:$0xff] }
 0x170   : > { %1526 = vrot.lane.b32.xlu0 %v6598_v31, %s5750_s30  ;;  %v1318_v56 = vpop.permute.xlu2 %1317 }
 0x171   : > { %1522 = vrot.lane.b32.xlu1 %v6048_v9, %s5750_s30  ;;  %1407 = vst.msk [vmem:[#allocation4 + $0x38] sm:$0xff] %vm1399_vm4, %v1318_v56  ;;  %v8804_v56 = vld [vmem:[#allocation12_spill] sm:$0xff] }
 0x172   : > { %v1314_v61 = vpop.permute.xlu0 %1313  ;;  %1524 = vrot.lane.b32.xlu2 %v6626_v58, %s5750_s30 }
 0x173   : > { %1405 = vst.msk [vmem:[#allocation4 + $0x28] sm:$0xff] %vm1399_vm4, %v1314_v61  ;;  %v1310_v59 = vpop.permute.xlu1 %1309  ;;  %v8802_v61 = vld [vmem:[#allocation13_spill] sm:$0xff] }
 0x174   : > { %1403 = vst.msk [vmem:[#allocation4 + $0x18] sm:$0xff] %vm1399_vm4, %v1310_v59 }
 0x178   : > { %1532 = vrot.lane.b32.xlu0 %v6070_v18, %s5750_s30  ;;  %v1324_v62 = vpop.permute.xlu2 %1323 }
 0x179   : > { %1528 = vrot.lane.b32.xlu1 %v6060_v15, %s5750_s30  ;;  %1410 = vst.msk [vmem:[#allocation4 + $0x50] sm:$0xff] %vm1399_vm4, %v1324_v62 }
 0x17a   : > { %v1320_v3 = vpop.permute.xlu0 %1319  ;;  %1530 = vrot.lane.b32.xlu2 %v6062_v16, %s5750_s30 }
 0x17b   : > { %1408 = vst.msk [vmem:[#allocation4 + $0x40] sm:$0xff] %vm1399_vm4, %v1320_v3  ;;  %v1316_v18 = vpop.permute.xlu1 %1315 }
 0x17c   : > { %1406 = vst.msk [vmem:[#allocation4 + $0x30] sm:$0xff] %vm1399_vm4, %v1316_v18  ;;  %v8805_v18 = vld [vmem:[#allocation14_spill] sm:$0xff] }
 0x180   : > { %1538 = vrot.lane.b32.xlu0 %v6098_v21, %s5750_s30  ;;  %v1330_v4 = vpop.permute.xlu2 %1329 }
 0x181   : > { %1534 = vrot.lane.b32.xlu1 %v6082_v19, %s5750_s30  ;;  %1413 = vst.msk [vmem:[#allocation4 + $0x68] sm:$0xff] %vm1399_vm4, %v1330_v4  ;;  %v8806_v4 = vld [vmem:[#allocation26_spill] sm:$0xff] }
 0x182   : > { %v1326_v9 = vpop.permute.xlu0 %1325  ;;  %1536 = vrot.lane.b32.xlu2 %v6086_v20, %s5750_s30 }
 0x183   : > { %1411 = vst.msk [vmem:[#allocation4 + $0x58] sm:$0xff] %vm1399_vm4, %v1326_v9  ;;  %v1322_v21 = vpop.permute.xlu1 %1321  ;;  %v6714_v9 = vld [vmem:[#allocation2 + $0xc2] sm:$0xff] }
 0x184   : > { %1409 = vst.msk [vmem:[#allocation4 + $0x48] sm:$0xff] %vm1399_vm4, %v1322_v21 }
 0x188   : > { %1544 = vrot.lane.b32.xlu0 %v6201_v35, %s5750_s30  ;;  %v1336_v35 = vpop.permute.xlu2 %1335 }
 0x189   : > { %1540 = vrot.lane.b32.xlu1 %v6110_v22, %s5750_s30  ;;  %1416 = vst.msk [vmem:[#allocation4 + $0x80] sm:$0xff] %vm1399_vm4, %v1336_v35 }
 0x18a   : > { %v1332_v15 = vpop.permute.xlu0 %1331  ;;  %1542 = vrot.lane.b32.xlu2 %v6114_v23, %s5750_s30 }
 0x18b   : > { %1414 = vst.msk [vmem:[#allocation4 + $0x70] sm:$0xff] %vm1399_vm4, %v1332_v15  ;;  %v1328_v11 = vpop.permute.xlu1 %1327 }
 0x18c   : > { %1412 = vst.msk [vmem:[#allocation4 + $0x60] sm:$0xff] %vm1399_vm4, %v1328_v11  ;;  %v8808_v11 = vld [vmem:[#allocation16_spill] sm:$0xff] }
 0x190   : > { %1550 = vrot.lane.b32.xlu0 %v6221_v40, %s5750_s30  ;;  %v1342_v16 = vpop.permute.xlu2 %1341 }
 0x191   : > { %1546 = vrot.lane.b32.xlu1 %v6134_v24, %s5750_s30  ;;  %1419 = vst.msk [vmem:[#allocation4 + $0x98] sm:$0xff] %vm1399_vm4, %v1342_v16 }
 0x192   : > { %v1338_v19 = vpop.permute.xlu0 %1337  ;;  %1548 = vrot.lane.b32.xlu2 %v6138_v25, %s5750_s30  ;;  %v8794_v25 = vld [vmem:[#allocation15_spill] sm:$0xff] }
 0x193   : > { %1417 = vst.msk [vmem:[#allocation4 + $0x88] sm:$0xff] %vm1399_vm4, %v1338_v19  ;;  %v1334_v40 = vpop.permute.xlu1 %1333  ;;  %v8807_v19 = vld [vmem:[#allocation17_spill] sm:$0xff] }
 0x194   : > { %1415 = vst.msk [vmem:[#allocation4 + $0x78] sm:$0xff] %vm1399_vm4, %v1334_v40 }
 0x198   : > { %1556 = vrot.lane.b32.xlu0 %v6647_v39, %s5750_s30  ;;  %v1348_v20 = vpop.permute.xlu2 %1347 }
 0x199   : > { %1552 = vrot.lane.b32.xlu1 %v6158_v26, %s5750_s30  ;;  %1422 = vst.msk [vmem:[#allocation4 + $0xb0] sm:$0xff] %vm1399_vm4, %v1348_v20  ;;  %v6733_v20 = vld [vmem:[#allocation2 + $0xca] sm:$0xff] }
 0x19a   : > { %v1344_v22 = vpop.permute.xlu0 %1343  ;;  %1554 = vrot.lane.b32.xlu2 %v6206_v36, %s5750_s30  ;;  %v8797_v36 = vld [vmem:[#allocation18_spill] sm:$0xff] }
 0x19b   : > { %1420 = vst.msk [vmem:[#allocation4 + $0xa0] sm:$0xff] %vm1399_vm4, %v1344_v22  ;;  %v1340_v5 = vpop.permute.xlu1 %1339 }
 0x19c   : > { %1418 = vst.msk [vmem:[#allocation4 + $0x90] sm:$0xff] %vm1399_vm4, %v1340_v5 }
 0x1a0   : > { %1691 = vrot.lane.b32.xlu0 %v6263_v1, %s5751_s12  ;;  %v1354_v23 = vpop.permute.xlu2 %1353 }
 0x1a1   : > { %1558 = vrot.lane.b32.xlu1 %v6667_v57, %s5750_s30  ;;  %1425 = vst.msk [vmem:[#allocation4 + $0xc8] sm:$0xff] %vm1399_vm4, %v1354_v23 }
 0x1a2   : > { %v1350_v24 = vpop.permute.xlu0 %1349  ;;  %1689 = vrot.lane.b32.xlu2 %v8796_v29, %s5751_s12 }
 0x1a3   : > { %1423 = vst.msk [vmem:[#allocation4 + $0xb8] sm:$0xff] %vm1399_vm4, %v1350_v24  ;;  %v1346_v1 = vpop.permute.xlu1 %1345 }
 0x1a4   : > { %1421 = vst.msk [vmem:[#allocation4 + $0xa8] sm:$0xff] %vm1399_vm4, %v1346_v1 }
 0x1a8   : > { %1697 = vrot.lane.b32.xlu0 %v6290_v27, %s5751_s12  ;;  %v8795_v27 = vld [vmem:[#allocation7_spill] sm:$0xff]  ;;  %v1360_v12 = vpop.permute.xlu2 %1359 }
 0x1a9   : > { %1693 = vrot.lane.b32.xlu1 %v8795_v27, %s5751_s12  ;;  %1428 = vst.msk [vmem:[#allocation4 + $0xe0] sm:$0xff] %vm1399_vm4, %v1360_v12  ;;  %v6754_v12 = vld [vmem:[#allocation2 + $0x1ba] sm:$0xff] }
 0x1aa   : > { %v1356_v26 = vpop.permute.xlu0 %1355  ;;  %1695 = vrot.lane.b32.xlu2 %v8799_v60, %s5751_s12 }
 0x1ab   : > { %1426 = vst.msk [vmem:[#allocation4 + $0xd0] sm:$0xff] %vm1399_vm4, %v1356_v26  ;;  %v1352_v63 = vpop.permute.xlu1 %1351  ;;  %v8810_v26 = vld [vmem:[#allocation22_spill] sm:$0xff] }
 0x1ac   : > { %1424 = vst.msk [vmem:[#allocation4 + $0xc0] sm:$0xff] %vm1399_vm4, %v1352_v63 }
 0x1b0   : > { %1703 = vrot.lane.b32.xlu0 %v8794_v25, %s5751_s12  ;;  %v1366_v45 = vpop.permute.xlu2 %1365 }
 0x1b1   : > { %1699 = vrot.lane.b32.xlu1 %v8798_v54, %s5751_s12  ;;  %1431 = vst.msk [vmem:[#allocation4 + $0xf8] sm:$0xff] %vm1399_vm4, %v1366_v45  ;;  %v1821_v54 = vld [vmem:[#allocation2 + $0x48] sm:$0xff] }
 0x1b2   : > { %v1362_v44 = vpop.permute.xlu0 %1361  ;;  %1701 = vrot.lane.b32.xlu2 %v8802_v61, %s5751_s12  ;;  %v8814_v45 = vld [vmem:[#allocation28_spill] sm:$0xff]  ;;  %v775_v61 = vld [vmem:[%s5948_s26 + $0x18] sm:$0xff] }
 0x1b3   : > { %1429 = vst.msk [vmem:[#allocation4 + $0xe8] sm:$0xff] %vm1399_vm4, %v1362_v44  ;;  %v1358_v50 = vpop.permute.xlu1 %1357  ;;  %v8812_v44 = vld [vmem:[#allocation25_spill] sm:$0xff] }
 0x1b4   : > { %1427 = vst.msk [vmem:[#allocation4 + $0xd8] sm:$0xff] %vm1399_vm4, %v1358_v50  ;;  %v8815_v50 = vld [vmem:[#allocation27_spill] sm:$0xff] }
 0x1b5   : > { %786 = vst.msk [vmem:[#allocation2 + $0xe1] sm:$0xff] %vm739_vm0, %v775_v61  ;;  %v2021_v61 = vld [vmem:[#allocation2 + $0x99] sm:$0xff] }
 0x1b8   : > { %1709 = vrot.lane.b32.xlu0 %v8797_v36, %s5751_s12  ;;  %v1501_v2 = vpop.permute.xlu2 %1500 }
 0x1b9   : > { %1705 = vrot.lane.b32.xlu1 %v8801_v42, %s5751_s12  ;;  %1595 = vst.msk [vmem:[#allocation4 + $0x10] sm:$0xff] %vm1592_vm5, %v1501_v2  ;;  %v1824_v2 = vld [vmem:[#allocation2 + $0x68] sm:$0xff] }
 0x1ba   : > { %v1497_v49 = vpop.permute.xlu0 %1496  ;;  %1707 = vrot.lane.b32.xlu2 %v8805_v18, %s5751_s12 }
 0x1bb   : > { %1593 = vst.msk [vmem:[#allocation4] sm:$0xff] %vm1592_vm5, %v1497_v49  ;;  %v1364_v48 = vpop.permute.xlu1 %1363  ;;  %v774_v49 = vld [vmem:[%s5948_s26 + $0x10] sm:$0xff] }
 0x1bc   : > { %1430 = vst.msk [vmem:[#allocation4 + $0xf0] sm:$0xff] %vm1399_vm4, %v1364_v48  ;;  %v8816_v48 = vld [vmem:[#allocation29_spill] sm:$0xff]  ;;  %vm4009_vm4 = vcmask 326912  }
 0x1bd   : > { %785 = vst.msk [vmem:[#allocation2 + $0xd9] sm:$0xff] %vm739_vm0, %v774_v49 }
 0x1c0   : > { %1715 = vrot.lane.b32.xlu0 %v8800_v47, %s5751_s12  ;;  %v1507_v3 = vpop.permute.xlu2 %1506 }
 0x1c1   : > { %1711 = vrot.lane.b32.xlu1 %v8804_v56, %s5751_s12  ;;  %1598 = vst.msk [vmem:[#allocation4 + $0x28] sm:$0xff] %vm1592_vm5, %v1507_v3 }
 0x1c2   : > { %v1503_v28 = vpop.permute.xlu0 %1502  ;;  %1713 = vrot.lane.b32.xlu2 %v8807_v19, %s5751_s12 }
 0x1c3   : > { %1596 = vst.msk [vmem:[#allocation4 + $0x18] sm:$0xff] %vm1592_vm5, %v1503_v28  ;;  %v1499_v62 = vpop.permute.xlu1 %1498  ;;  %v1819_v28 = vld [vmem:[#allocation2 + $0x30] sm:$0xff] }
 0x1c4   : > { %1594 = vst.msk [vmem:[#allocation4 + $0x8] sm:$0xff] %vm1592_vm5, %v1499_v62  ;;  %v1833_v19 = vld [vmem:[#allocation2 + $0xd8] sm:$0xff] }
 0x1c8   : > { %1721 = vrot.lane.b32.xlu0 %v8803_v8, %s5751_s12  ;;  %v1513_v15 = vpop.permute.xlu2 %1512 }
 0x1c9   : > { %1717 = vrot.lane.b32.xlu1 %v6714_v9, %s5751_s12  ;;  %1601 = vst.msk [vmem:[#allocation4 + $0x40] sm:$0xff] %vm1592_vm5, %v1513_v15  ;;  %v1820_v15 = vld [vmem:[#allocation2 + $0x38] sm:$0xff] }
 0x1ca   : > { %v1509_v59 = vpop.permute.xlu0 %1508  ;;  %1719 = vrot.lane.b32.xlu2 %v6733_v20, %s5751_s12 }
 0x1cb   : > { %1599 = vst.msk [vmem:[#allocation4 + $0x30] sm:$0xff] %vm1592_vm5, %v1509_v59  ;;  %v1505_v35 = vpop.permute.xlu1 %1504  ;;  %v6783_v59 = vld [vmem:[#allocation2 + $0x1b2] sm:$0xff] }
 0x1cc   : > { %1597 = vst.msk [vmem:[#allocation4 + $0x20] sm:$0xff] %vm1592_vm5, %v1505_v35  ;;  %v1823_v35 = vld [vmem:[#allocation2 + $0x60] sm:$0xff] }
 0x1d0   : > { %1727 = vrot.lane.b32.xlu0 %v8806_v4, %s5751_s12  ;;  %v1519_v16 = vpop.permute.xlu2 %1518 }
 0x1d1   : > { %1723 = vrot.lane.b32.xlu1 %v8808_v11, %s5751_s12  ;;  %1604 = vst.msk [vmem:[#allocation4 + $0x58] sm:$0xff] %vm1592_vm5, %v1519_v16  ;;  %v1826_v16 = vld [vmem:[#allocation2 + $0x80] sm:$0xff] }
 0x1d2   : > { %v1515_v21 = vpop.permute.xlu0 %1514  ;;  %1725 = vrot.lane.b32.xlu2 %v8810_v26, %s5751_s12 }
 0x1d3   : > { %1602 = vst.msk [vmem:[#allocation4 + $0x48] sm:$0xff] %vm1592_vm5, %v1515_v21  ;;  %v1511_v40 = vpop.permute.xlu1 %1510 }
 0x1d4   : > { %1600 = vst.msk [vmem:[#allocation4 + $0x38] sm:$0xff] %vm1592_vm5, %v1511_v40 }
 0x1d8   : > { %1733 = vrot.lane.b32.xlu0 %v6436_v52, %s5751_s12  ;;  %v8809_v52 = vld [vmem:[#allocation19_spill] sm:$0xff]  ;;  %v1525_v24 = vpop.permute.xlu2 %1524 }
 0x1d9   : > { %1729 = vrot.lane.b32.xlu1 %v8809_v52, %s5751_s12  ;;  %1607 = vst.msk [vmem:[#allocation4 + $0x70] sm:$0xff] %vm1592_vm5, %v1525_v24  ;;  %v1829_v52 = vld [vmem:[#allocation2 + $0xa8] sm:$0xff]  ;;  %v1834_v24 = vld [vmem:[#allocation2 + $0xe0] sm:$0xff] }
 0x1da   : > { %v1521_v22 = vpop.permute.xlu0 %1520  ;;  %1731 = vrot.lane.b32.xlu2 %v8812_v44, %s5751_s12 }
 0x1db   : > { %1605 = vst.msk [vmem:[#allocation4 + $0x60] sm:$0xff] %vm1592_vm5, %v1521_v22  ;;  %v1517_v23 = vpop.permute.xlu1 %1516 }
 0x1dc   : > { %1603 = vst.msk [vmem:[#allocation4 + $0x50] sm:$0xff] %vm1592_vm5, %v1517_v23 }
 0x1e0   : > { %1739 = vrot.lane.b32.xlu0 %v6454_v55, %s5751_s12  ;;  %v8811_v55 = vld [vmem:[#allocation21_spill] sm:$0xff]  ;;  %v1531_v1 = vpop.permute.xlu2 %1530 }
 0x1e1   : > { %1735 = vrot.lane.b32.xlu1 %v8811_v55, %s5751_s12  ;;  %1610 = vst.msk [vmem:[#allocation4 + $0x88] sm:$0xff] %vm1592_vm5, %v1531_v1  ;;  %v1835_v1 = vld [vmem:[#allocation2 + $0x120] sm:$0xff] }
 0x1e2   : > { %v1527_v5 = vpop.permute.xlu0 %1526  ;;  %1737 = vrot.lane.b32.xlu2 %v8814_v45, %s5751_s12 }
 0x1e3   : > { %1608 = vst.msk [vmem:[#allocation4 + $0x78] sm:$0xff] %vm1592_vm5, %v1527_v5  ;;  %v1523_v27 = vpop.permute.xlu1 %1522 }
 0x1e4   : > { %1606 = vst.msk [vmem:[#allocation4 + $0x68] sm:$0xff] %vm1592_vm5, %v1523_v27  ;;  %v1838_v27 = vld [vmem:[#allocation2 + $0x140] sm:$0xff] }
 0x1e8   : > { %1745 = vrot.lane.b32.xlu0 %v6468_v46, %s5751_s12  ;;  %v8813_v46 = vld [vmem:[#allocation24_spill] sm:$0xff]  ;;  %v1537_v63 = vpop.permute.xlu2 %1536 }
 0x1e9   : > { %1741 = vrot.lane.b32.xlu1 %v8813_v46, %s5751_s12  ;;  %1613 = vst.msk [vmem:[#allocation4 + $0xa0] sm:$0xff] %vm1592_vm5, %v1537_v63  ;;  %v1841_v46 = vld [vmem:[#allocation2 + $0x168] sm:$0xff]  ;;  %v2012_v63 = vld [vmem:[#allocation2 + $0x31] sm:$0xff] }
 0x1ea   : > { %v1533_v25 = vpop.permute.xlu0 %1532  ;;  %1743 = vrot.lane.b32.xlu2 %v8816_v48, %s5751_s12 }
 0x1eb   : > { %1611 = vst.msk [vmem:[#allocation4 + $0x90] sm:$0xff] %vm1592_vm5, %v1533_v25  ;;  %v1529_v36 = vpop.permute.xlu1 %1528 }
 0x1ec   : > { %1609 = vst.msk [vmem:[#allocation4 + $0x80] sm:$0xff] %vm1592_vm5, %v1529_v36  ;;  %v1844_v36 = vld [vmem:[#allocation2 + $0x188] sm:$0xff] }
 0x1f0   : > { %1751 = vrot.lane.b32.xlu0 %v6754_v12, %s5751_s12  ;;  %v1543_v60 = vpop.permute.xlu2 %1542 }
 0x1f1   : > { %1747 = vrot.lane.b32.xlu1 %v8815_v50, %s5751_s12  ;;  %1616 = vst.msk [vmem:[#allocation4 + $0xb8] sm:$0xff] %vm1592_vm5, %v1543_v60  ;;  %v2018_v60 = vld [vmem:[#allocation2 + $0x79] sm:$0xff] }
 0x1f2   : > { %v1539_v29 = vpop.permute.xlu0 %1538  ;;  %1749 = vrot.lane.b32.xlu2 %v6783_v59, %s5751_s12 }
 0x1f3   : > { %1614 = vst.msk [vmem:[#allocation4 + $0xa8] sm:$0xff] %vm1592_vm5, %v1539_v29  ;;  %v1535_v42 = vpop.permute.xlu1 %1534 }
 0x1f4   : > { %1612 = vst.msk [vmem:[#allocation4 + $0x98] sm:$0xff] %vm1592_vm5, %v1535_v42 }
 0x1f8   : > { %1887 = vrot.lane.b32.xlu0 %v1821_v54, %s5752_s13  ;;  %v1549_v8 = vpop.permute.xlu2 %1548  ;;  %v2015_v54 = vld [vmem:[#allocation2 + $0x51] sm:$0xff] }
 0x1f9   : > { %1883 = vrot.lane.b32.xlu1 %v1819_v28, %s5752_s13  ;;  %1619 = vst.msk [vmem:[#allocation4 + $0xd0] sm:$0xff] %vm1592_vm5, %v1549_v8  ;;  %v2016_v8 = vld [vmem:[#allocation2 + $0x61] sm:$0xff] }
 0x1fa   : > { %v1545_v47 = vpop.permute.xlu0 %1544  ;;  %1885 = vrot.lane.b32.xlu2 %v1820_v15, %s5752_s13 }
 0x1fb   : > { %1617 = vst.msk [vmem:[#allocation4 + $0xc0] sm:$0xff] %vm1592_vm5, %v1545_v47  ;;  %v1541_v3 = vpop.permute.xlu1 %1540  ;;  %v2013_v47 = vld [vmem:[#allocation2 + $0x39] sm:$0xff] }
 0x1fc   : > { %1615 = vst.msk [vmem:[#allocation4 + $0xb0] sm:$0xff] %vm1592_vm5, %v1541_v3 }
 0x200   : > { %1893 = vrot.lane.b32.xlu0 %v1824_v2, %s5752_s13  ;;  %v1555_v62 = vpop.permute.xlu2 %1554 }
 0x201   : > { %1889 = vrot.lane.b32.xlu1 %v6260_v0, %s5752_s13  ;;  %1622 = vst.msk [vmem:[#allocation4 + $0xe8] sm:$0xff] %vm1592_vm5, %v1555_v62  ;;  %v2014_v62 = vld [vmem:[#allocation2 + $0x49] sm:$0xff] }
 0x202   : > { %v1551_v56 = vpop.permute.xlu0 %1550  ;;  %1891 = vrot.lane.b32.xlu2 %v1823_v35, %s5752_s13  ;;  %v2022_v35 = vld [vmem:[#allocation2 + $0xa9] sm:$0xff] }
 0x203   : > { %1620 = vst.msk [vmem:[#allocation4 + $0xd8] sm:$0xff] %vm1592_vm5, %v1551_v56  ;;  %v1547_v4 = vpop.permute.xlu1 %1546 }
 0x204   : > { %1618 = vst.msk [vmem:[#allocation4 + $0xc8] sm:$0xff] %vm1592_vm5, %v1547_v4 }
 0x208   : > { %1899 = vrot.lane.b32.xlu0 %v6280_v10, %s5752_s13  ;;  %v1690_v0 = vpop.permute.xlu2 %1689 }
 0x209   : > { %1895 = vrot.lane.b32.xlu1 %v6287_v14, %s5752_s13  ;;  %1786 = vst.msk [vmem:[#allocation4] sm:$0xff] %vm1785_vm6, %v1690_v0 }
 0x20a   : > { %v1557_v18 = vpop.permute.xlu0 %1556  ;;  %1897 = vrot.lane.b32.xlu2 %v1826_v16, %s5752_s13 }
 0x20b   : > { %1623 = vst.msk [vmem:[#allocation4 + $0xf0] sm:$0xff] %vm1592_vm5, %v1557_v18  ;;  %v1553_v21 = vpop.permute.xlu1 %1552  ;;  %v2019_v18 = vld [vmem:[#allocation2 + $0x81] sm:$0xff] }
 0x20c   : > { %1621 = vst.msk [vmem:[#allocation4 + $0xe0] sm:$0xff] %vm1592_vm5, %v1553_v21  ;;  %v2027_v21 = vld [vmem:[#allocation2 + $0xe1] sm:$0xff] }
 0x210   : > { %1905 = vrot.lane.b32.xlu0 %v6304_v34, %s5752_s13  ;;  %v1696_v34 = vpop.permute.xlu2 %1695 }
 0x211   : > { %1901 = vrot.lane.b32.xlu1 %v6309_v51, %s5752_s13  ;;  %1789 = vst.msk [vmem:[#allocation4 + $0x18] sm:$0xff] %vm1785_vm6, %v1696_v34 }
 0x212   : > { %v1692_v10 = vpop.permute.xlu0 %1691  ;;  %1903 = vrot.lane.b32.xlu2 %v1829_v52, %s5752_s13  ;;  %v2033_v52 = vld [vmem:[#allocation2 + $0x159] sm:$0xff] }
 0x213   : > { %1787 = vst.msk [vmem:[#allocation4 + $0x8] sm:$0xff] %vm1785_vm6, %v1692_v10  ;;  %v1559_v11 = vpop.permute.xlu1 %1558  ;;  %v2017_v10 = vld [vmem:[#allocation2 + $0x69] sm:$0xff] }
 0x214   : > { %1624 = vst.msk [vmem:[#allocation4 + $0xf8] sm:$0xff] %vm1592_vm5, %v1559_v11  ;;  %v2030_v11 = vld [vmem:[#allocation2 + $0x139] sm:$0xff]  ;;  %vm4202_vm5 = vcmask 392512  }
 0x218   : > { %1911 = vrot.lane.b32.xlu0 %v1833_v19, %s5752_s13  ;;  %v1702_v51 = vpop.permute.xlu2 %1701 }
 0x219   : > { %1907 = vrot.lane.b32.xlu1 %v6487_v38, %s5752_s13  ;;  %1792 = vst.msk [vmem:[#allocation4 + $0x30] sm:$0xff] %vm1785_vm6, %v1702_v51 }
 0x21a   : > { %v1698_v14 = vpop.permute.xlu0 %1697  ;;  %1909 = vrot.lane.b32.xlu2 %v6507_v32, %s5752_s13  ;;  %v779_v32 = vld [vmem:[%s5948_s26 + $0x38] sm:$0xff] }
 0x21b   : > { %1790 = vst.msk [vmem:[#allocation4 + $0x20] sm:$0xff] %vm1785_vm6, %v1698_v14  ;;  %v1694_v40 = vpop.permute.xlu1 %1693  ;;  %v2020_v14 = vld [vmem:[#allocation2 + $0x91] sm:$0xff] }
 0x21c   : > { %1788 = vst.msk [vmem:[#allocation4 + $0x10] sm:$0xff] %vm1785_vm6, %v1694_v40  ;;  %v2023_v40 = vld [vmem:[#allocation2 + $0xb1] sm:$0xff] }
 0x21d   : > { %788 = vst.msk [vmem:[#allocation2 + $0x1d1] sm:$0xff] %vm739_vm0, %v779_v32  ;;  %v2029_v32 = vld [vmem:[#allocation2 + $0x129] sm:$0xff] }
 0x220   : > { %1917 = vrot.lane.b32.xlu0 %v6349_v13, %s5752_s13  ;;  %v778_v13 = vld [vmem:[%s5948_s26 + $0x30] sm:$0xff]  ;;  %v1708_v38 = vpop.permute.xlu2 %1707  ;;  %s7062_s26 = scalar_lea.vmem %s8739_s7, %s6988_s22 }
 0x221   : > { %1913 = vrot.lane.b32.xlu1 %v1834_v24, %s5752_s13  ;;  %787 = vst.msk [vmem:[#allocation2 + $0x1c9] sm:$0xff] %vm739_vm0, %v778_v13  ;;  %v2028_v24 = vld [vmem:[#allocation2 + $0x121] sm:$0xff]  ;;  %vm3120_vm0 = vcmask 58368  }
 0x222   : > { %v1704_v22 = vpop.permute.xlu0 %1703  ;;  %1795 = vst.msk [vmem:[#allocation4 + $0x48] sm:$0xff] %vm1785_vm6, %v1708_v38  ;;  %1915 = vrot.lane.b32.xlu2 %v1835_v1, %s5752_s13 }
 0x223   : > { %1793 = vst.msk [vmem:[#allocation4 + $0x38] sm:$0xff] %vm1785_vm6, %v1704_v22  ;;  %v1700_v23 = vpop.permute.xlu1 %1699 }
 0x224   : > { %1791 = vst.msk [vmem:[#allocation4 + $0x28] sm:$0xff] %vm1785_vm6, %v1700_v23  ;;  %v2036_v23 = vld [vmem:[#allocation2 + $0x181] sm:$0xff] }
 0x228   : > { %1923 = vrot.lane.b32.xlu0 %v6376_v30, %s5752_s13  ;;  %v1714_v30 = vpop.permute.xlu2 %1713  ;;  %v1849_v45 = vld [vmem:[#allocation2 + $0x1c8] sm:$0xff]  ;;  %v1850_v48 = vld [vmem:[#allocation2 + $0x1d0] sm:$0xff] }
 0x229   : > { %1919 = vrot.lane.b32.xlu1 %v6383_v6, %s5752_s13  ;;  %1798 = vst.msk [vmem:[#allocation4 + $0x60] sm:$0xff] %vm1785_vm6, %v1714_v30  ;;  %v2031_v30 = vld [vmem:[#allocation2 + $0x141] sm:$0xff] }
 0x22a   : > { %v1710_v5 = vpop.permute.xlu0 %1709  ;;  %1921 = vrot.lane.b32.xlu2 %v1838_v27, %s5752_s13 }
 0x22b   : > { %1796 = vst.msk [vmem:[#allocation4 + $0x50] sm:$0xff] %vm1785_vm6, %v1710_v5  ;;  %v1706_v55 = vpop.permute.xlu1 %1705  ;;  %v2026_v5 = vld [vmem:[#allocation2 + $0xd9] sm:$0xff] }
 0x22c   : > { %1794 = vst.msk [vmem:[#allocation4 + $0x40] sm:$0xff] %vm1785_vm6, %v1706_v55 }
 0x230   : > { %1929 = vrot.lane.b32.xlu0 %v6402_v37, %s5752_s13  ;;  %v1720_v6 = vpop.permute.xlu2 %1719 }
 0x231   : > { %1925 = vrot.lane.b32.xlu1 %v6409_v41, %s5752_s13  ;;  %1801 = vst.msk [vmem:[#allocation4 + $0x78] sm:$0xff] %vm1785_vm6, %v1720_v6  ;;  %v2039_v6 = vld [vmem:[#allocation2 + $0x1a1] sm:$0xff] }
 0x232   : > { %v1716_v26 = vpop.permute.xlu0 %1715  ;;  %1927 = vrot.lane.b32.xlu2 %v1841_v46, %s5752_s13  ;;  %v2037_v46 = vld [vmem:[#allocation2 + $0x189] sm:$0xff] }
 0x233   : > { %1799 = vst.msk [vmem:[#allocation4 + $0x68] sm:$0xff] %vm1785_vm6, %v1716_v26  ;;  %v1712_v25 = vpop.permute.xlu1 %1711 }
 0x234   : > { %1797 = vst.msk [vmem:[#allocation4 + $0x58] sm:$0xff] %vm1785_vm6, %v1712_v25 }
 0x238   : > { %1935 = vrot.lane.b32.xlu0 %v6428_v53, %s5752_s13  ;;  %v1726_v41 = vpop.permute.xlu2 %1725 }
 0x239   : > { %1931 = vrot.lane.b32.xlu1 %v6433_v43, %s5752_s13  ;;  %1804 = vst.msk [vmem:[#allocation4 + $0x90] sm:$0xff] %vm1785_vm6, %v1726_v41 }
 0x23a   : > { %v1722_v37 = vpop.permute.xlu0 %1721  ;;  %1933 = vrot.lane.b32.xlu2 %v1844_v36, %s5752_s13  ;;  %v2206_v36 = vld [vmem:[#allocation2 + $0x3a] sm:$0xff] }
 0x23b   : > { %1802 = vst.msk [vmem:[#allocation4 + $0x80] sm:$0xff] %vm1785_vm6, %v1722_v37  ;;  %v1718_v44 = vpop.permute.xlu1 %1717  ;;  %v2034_v37 = vld [vmem:[#allocation2 + $0x169] sm:$0xff] }
 0x23c   : > { %1800 = vst.msk [vmem:[#allocation4 + $0x70] sm:$0xff] %vm1785_vm6, %v1718_v44  ;;  %v2042_v44 = vld [vmem:[#allocation2 + $0x1c9] sm:$0xff] }
 0x240   : > { %1941 = vrot.lane.b32.xlu0 %v6577_v7, %s5752_s13  ;;  %v1732_v43 = vpop.permute.xlu2 %1731 }
 0x241   : > { %1937 = vrot.lane.b32.xlu1 %v6451_v33, %s5752_s13  ;;  %1807 = vst.msk [vmem:[#allocation4 + $0xa8] sm:$0xff] %vm1785_vm6, %v1732_v43 }
 0x242   : > { %v1728_v53 = vpop.permute.xlu0 %1727  ;;  %1939 = vrot.lane.b32.xlu2 %v6558_v17, %s5752_s13 }
 0x243   : > { %1805 = vst.msk [vmem:[#allocation4 + $0x98] sm:$0xff] %vm1785_vm6, %v1728_v53  ;;  %v1724_v29 = vpop.permute.xlu1 %1723  ;;  %v2032_v53 = vld [vmem:[#allocation2 + $0x151] sm:$0xff] }
 0x244   : > { %1803 = vst.msk [vmem:[#allocation4 + $0x88] sm:$0xff] %vm1785_vm6, %v1724_v29  ;;  %v2035_v29 = vld [vmem:[#allocation2 + $0x171] sm:$0xff] }
 0x248   : > { %2076 = vrot.lane.b32.xlu0 %v2012_v63, %s5753_s14  ;;  %v1738_v49 = vpop.permute.xlu2 %1737 }
 0x249   : > { %1943 = vrot.lane.b32.xlu1 %v1849_v45, %s5752_s13  ;;  %1810 = vst.msk [vmem:[#allocation4 + $0xc0] sm:$0xff] %vm1785_vm6, %v1738_v49 }
 0x24a   : > { %v1734_v7 = vpop.permute.xlu0 %1733  ;;  %1945 = vrot.lane.b32.xlu2 %v1850_v48, %s5752_s13 }
 0x24b   : > { %1808 = vst.msk [vmem:[#allocation4 + $0xb0] sm:$0xff] %vm1785_vm6, %v1734_v7  ;;  %v1730_v50 = vpop.permute.xlu1 %1729 }
 0x24c   : > { %1806 = vst.msk [vmem:[#allocation4 + $0xa0] sm:$0xff] %vm1785_vm6, %v1730_v50  ;;  %v2209_v50 = vld [vmem:[#allocation2 + $0x62] sm:$0xff] }
 0x250   : > { %2082 = vrot.lane.b32.xlu0 %v2015_v54, %s5753_s14  ;;  %v1744_v42 = vpop.permute.xlu2 %1743 }
 0x251   : > { %2078 = vrot.lane.b32.xlu1 %v2013_v47, %s5753_s14  ;;  %1813 = vst.msk [vmem:[#allocation4 + $0xd8] sm:$0xff] %vm1785_vm6, %v1744_v42 }
 0x252   : > { %v1740_v33 = vpop.permute.xlu0 %1739  ;;  %2080 = vrot.lane.b32.xlu2 %v2014_v62, %s5753_s14 }
 0x253   : > { %1811 = vst.msk [vmem:[#allocation4 + $0xc8] sm:$0xff] %vm1785_vm6, %v1740_v33  ;;  %v1736_v28 = vpop.permute.xlu1 %1735  ;;  %v2038_v33 = vld [vmem:[#allocation2 + $0x199] sm:$0xff] }
 0x254   : > { %1809 = vst.msk [vmem:[#allocation4 + $0xb8] sm:$0xff] %vm1785_vm6, %v1736_v28  ;;  %v2207_v28 = vld [vmem:[#allocation2 + $0x4a] sm:$0xff] }
 0x258   : > { %2088 = vrot.lane.b32.xlu0 %v2018_v60, %s5753_s14  ;;  %v1750_v17 = vpop.permute.xlu2 %1749  ;;  %v2043_v60 = vld [vmem:[#allocation2 + $0x1d1] sm:$0xff] }
 0x259   : > { %2084 = vrot.lane.b32.xlu1 %v2016_v8, %s5753_s14  ;;  %1816 = vst.msk [vmem:[#allocation4 + $0xf0] sm:$0xff] %vm1785_vm6, %v1750_v17  ;;  %v2205_v17 = vld [vmem:[#allocation2 + $0x32] sm:$0xff] }
 0x25a   : > { %v1746_v2 = vpop.permute.xlu0 %1745  ;;  %2086 = vrot.lane.b32.xlu2 %v2017_v10, %s5753_s14 }
 0x25b   : > { %1814 = vst.msk [vmem:[#allocation4 + $0xe0] sm:$0xff] %vm1785_vm6, %v1746_v2  ;;  %v1742_v3 = vpop.permute.xlu1 %1741  ;;  %v2212_v2 = vld [vmem:[#allocation2 + $0x82] sm:$0xff] }
 0x25c   : > { %1812 = vst.msk [vmem:[#allocation4 + $0xd0] sm:$0xff] %vm1785_vm6, %v1742_v3  ;;  %v2210_v3 = vld [vmem:[#allocation2 + $0x6a] sm:$0xff] }
 0x260   : > { %2094 = vrot.lane.b32.xlu0 %v2021_v61, %s5753_s14  ;;  %v1886_v4 = vpop.permute.xlu2 %1885 }
 0x261   : > { %2090 = vrot.lane.b32.xlu1 %v2019_v18, %s5753_s14  ;;  %1981 = vst.msk [vmem:[#allocation4 + $0x8] sm:$0xff] %vm1979_vm7, %v1886_v4  ;;  %v2208_v4 = vld [vmem:[#allocation2 + $0x52] sm:$0xff] }
 0x262   : > { %v1752_v56 = vpop.permute.xlu0 %1751  ;;  %2092 = vrot.lane.b32.xlu2 %v2020_v14, %s5753_s14 }
 0x263   : > { %1817 = vst.msk [vmem:[#allocation4 + $0xf8] sm:$0xff] %vm1785_vm6, %v1752_v56  ;;  %v1748_v0 = vpop.permute.xlu1 %1747  ;;  %v2215_v56 = vld [vmem:[#allocation2 + $0xaa] sm:$0xff] }
 0x264   : > { %1815 = vst.msk [vmem:[#allocation4 + $0xe8] sm:$0xff] %vm1785_vm6, %v1748_v0  ;;  %vm4396_vm6 = vcmask 458112  }
 0x268   : > { %2100 = vrot.lane.b32.xlu0 %v6626_v58, %s5753_s14  ;;  %v1892_v58 = vpop.permute.xlu2 %1891 }
 0x269   : > { %2096 = vrot.lane.b32.xlu1 %v2022_v35, %s5753_s14  ;;  %1984 = vst.msk [vmem:[#allocation4 + $0x20] sm:$0xff] %vm1979_vm7, %v1892_v58  ;;  %v2221_v35 = vld [vmem:[#allocation2 + $0x122] sm:$0xff]  ;;  %v2211_v58 = vld [vmem:[#allocation2 + $0x7a] sm:$0xff] }
 0x26a   : > { %v1888_v15 = vpop.permute.xlu0 %1887  ;;  %2098 = vrot.lane.b32.xlu2 %v2023_v40, %s5753_s14 }
 0x26b   : > { %1982 = vst.msk [vmem:[#allocation4 + $0x10] sm:$0xff] %vm1979_vm7, %v1888_v15  ;;  %v1884_v34 = vpop.permute.xlu1 %1883  ;;  %v2213_v15 = vld [vmem:[#allocation2 + $0x92] sm:$0xff] }
 0x26c   : > { %1980 = vst.msk [vmem:[#allocation4] sm:$0xff] %vm1979_vm7, %v1884_v34 }
 0x270   : > { %2106 = vrot.lane.b32.xlu0 %v2027_v21, %s5753_s14  ;;  %v1898_v16 = vpop.permute.xlu2 %1897 }
 0x271   : > { %2102 = vrot.lane.b32.xlu1 %v6598_v31, %s5753_s14  ;;  %1987 = vst.msk [vmem:[#allocation4 + $0x38] sm:$0xff] %vm1979_vm7, %v1898_v16  ;;  %v2214_v16 = vld [vmem:[#allocation2 + $0x9a] sm:$0xff] }
 0x272   : > { %v1894_v19 = vpop.permute.xlu0 %1893  ;;  %2104 = vrot.lane.b32.xlu2 %v2026_v5, %s5753_s14 }
 0x273   : > { %1985 = vst.msk [vmem:[#allocation4 + $0x28] sm:$0xff] %vm1979_vm7, %v1894_v19  ;;  %v1890_v22 = vpop.permute.xlu1 %1889  ;;  %v2216_v19 = vld [vmem:[#allocation2 + $0xb2] sm:$0xff] }
 0x274   : > { %1983 = vst.msk [vmem:[#allocation4 + $0x18] sm:$0xff] %vm1979_vm7, %v1890_v22 }
 0x278   : > { %2112 = vrot.lane.b32.xlu0 %v2030_v11, %s5753_s14  ;;  %v1904_v13 = vpop.permute.xlu2 %1903  ;;  %v2224_v11 = vld [vmem:[#allocation2 + $0x142] sm:$0xff] }
 0x279   : > { %2108 = vrot.lane.b32.xlu1 %v2028_v24, %s5753_s14  ;;  %1990 = vst.msk [vmem:[#allocation4 + $0x50] sm:$0xff] %vm1979_vm7, %v1904_v13  ;;  %v2227_v24 = vld [vmem:[#allocation2 + $0x16a] sm:$0xff] }
 0x27a   : > { %v1900_v51 = vpop.permute.xlu0 %1899  ;;  %2110 = vrot.lane.b32.xlu2 %v2029_v32, %s5753_s14  ;;  %v2222_v13 = vld [vmem:[#allocation2 + $0x12a] sm:$0xff]  ;;  %v2223_v32 = vld [vmem:[#allocation2 + $0x13a] sm:$0xff] }
 0x27b   : > { %1988 = vst.msk [vmem:[#allocation4 + $0x40] sm:$0xff] %vm1979_vm7, %v1900_v51  ;;  %v1896_v38 = vpop.permute.xlu1 %1895  ;;  %v2219_v51 = vld [vmem:[#allocation2 + $0xda] sm:$0xff] }
 0x27c   : > { %1986 = vst.msk [vmem:[#allocation4 + $0x30] sm:$0xff] %vm1979_vm7, %v1896_v38 }
 0x280   : > { %2118 = vrot.lane.b32.xlu0 %v2033_v52, %s5753_s14  ;;  %v1910_v26 = vpop.permute.xlu2 %1909 }
 0x281   : > { %2114 = vrot.lane.b32.xlu1 %v2031_v30, %s5753_s14  ;;  %1993 = vst.msk [vmem:[#allocation4 + $0x68] sm:$0xff] %vm1979_vm7, %v1910_v26  ;;  %v2220_v30 = vld [vmem:[#allocation2 + $0xe2] sm:$0xff]  ;;  %v2225_v26 = vld [vmem:[#allocation2 + $0x152] sm:$0xff] }
 0x282   : > { %v1906_v31 = vpop.permute.xlu0 %1905  ;;  %2116 = vrot.lane.b32.xlu2 %v2032_v53, %s5753_s14  ;;  %v2231_v53 = vld [vmem:[#allocation2 + $0x19a] sm:$0xff] }
 0x283   : > { %1991 = vst.msk [vmem:[#allocation4 + $0x58] sm:$0xff] %vm1979_vm7, %v1906_v31  ;;  %v1902_v1 = vpop.permute.xlu1 %1901 }
 0x284   : > { %1989 = vst.msk [vmem:[#allocation4 + $0x48] sm:$0xff] %vm1979_vm7, %v1902_v1 }
 0x288   : > { %2124 = vrot.lane.b32.xlu0 %v2036_v23, %s5753_s14  ;;  %v1916_v25 = vpop.permute.xlu2 %1915  ;;  %v2230_v23 = vld [vmem:[#allocation2 + $0x18a] sm:$0xff] }
 0x289   : > { %2120 = vrot.lane.b32.xlu1 %v2034_v37, %s5753_s14  ;;  %1996 = vst.msk [vmem:[#allocation4 + $0x80] sm:$0xff] %vm1979_vm7, %v1916_v25 }
 0x28a   : > { %v1912_v55 = vpop.permute.xlu0 %1911  ;;  %2122 = vrot.lane.b32.xlu2 %v2035_v29, %s5753_s14  ;;  %v2229_v29 = vld [vmem:[#allocation2 + $0x182] sm:$0xff] }
 0x28b   : > { %1994 = vst.msk [vmem:[#allocation4 + $0x70] sm:$0xff] %vm1979_vm7, %v1912_v55  ;;  %v1908_v41 = vpop.permute.xlu1 %1907 }
 0x28c   : > { %1992 = vst.msk [vmem:[#allocation4 + $0x60] sm:$0xff] %vm1979_vm7, %v1908_v41  ;;  %v2402_v41 = vld [vmem:[%s8734_s2 + $0x20] sm:$0xf] }
 0x28d   : > { %5546 = vmatpush.msk.msra.mxu0 %vm2534_vm9, %v2402_v41  ;;  %5655 = vmatpush.msk.msra.mxu3 %vm2534_vm9, %v2402_v41 }
 0x290   : > { %2130 = vrot.lane.b32.xlu0 %v2039_v6, %s5753_s14  ;;  %v1922_v63 = vpop.permute.xlu2 %1921  ;;  %v2228_v6 = vld [vmem:[#allocation2 + $0x172] sm:$0xff] }
 0x291   : > { %2126 = vrot.lane.b32.xlu1 %v2037_v46, %s5753_s14  ;;  %1999 = vst.msk [vmem:[#allocation4 + $0x98] sm:$0xff] %vm1979_vm7, %v1922_v63 }
 0x292   : > { %v1918_v27 = vpop.permute.xlu0 %1917  ;;  %2128 = vrot.lane.b32.xlu2 %v2038_v33, %s5753_s14 }
 0x293   : > { %1997 = vst.msk [vmem:[#allocation4 + $0x88] sm:$0xff] %vm1979_vm7, %v1918_v27  ;;  %v1914_v7 = vpop.permute.xlu1 %1913 }
 0x294   : > { %1995 = vst.msk [vmem:[#allocation4 + $0x78] sm:$0xff] %vm1979_vm7, %v1914_v7  ;;  %v2400_v7 = vld [vmem:[%s8734_s2 + $0x10] sm:$0xff] }
 0x298   : > { %2136 = vrot.lane.b32.xlu0 %v2042_v44, %s5753_s14  ;;  %v1928_v54 = vpop.permute.xlu2 %1927 }
 0x299   : > { %2132 = vrot.lane.b32.xlu1 %v6647_v39, %s5753_s14  ;;  %2002 = vst.msk [vmem:[#allocation4 + $0xb0] sm:$0xff] %vm1979_vm7, %v1928_v54  ;;  %v2768_v54 = vld [vmem:[%s7004_s29 + $0x20] sm:$0xf] }
 0x29a   : > { %v1924_v43 = vpop.permute.xlu0 %1923  ;;  %2134 = vrot.lane.b32.xlu2 %v6667_v57, %s5753_s14  ;;  %5579 = vmatpush.msk.msra.mxu1 %vm2534_vm9, %v2768_v54 }
 0x29b   : > { %2000 = vst.msk [vmem:[#allocation4 + $0xa0] sm:$0xff] %vm1979_vm7, %v1924_v43  ;;  %v1920_v49 = vpop.permute.xlu1 %1919  ;;  %v2401_v43 = vld [vmem:[%s8734_s2 + $0x18] sm:$0xff] }
 0x29c   : > { %1998 = vst.msk [vmem:[#allocation4 + $0x90] sm:$0xff] %vm1979_vm7, %v1920_v49  ;;  %2550 = vmatpush.msra.mxu0 %v2401_v43  ;;  %5656 = vmatpush.msra.mxu3 %v2401_v43  ;;  %v2398_v49 = vld [vmem:[%s8734_s2] sm:$0xff] }
 0x29e   : > { %2551 = vmatpush.msra.mxu0 %v2400_v7  ;;  %5657 = vmatpush.msra.mxu3 %v2400_v7 }
 0x2a0   : > { %2271 = vrot.lane.b32.xlu0 %v2206_v36, %s5754_s16  ;;  %v1934_v47 = vpop.permute.xlu2 %1933  ;;  %v2236_v36 = vld [vmem:[#allocation2 + $0x1d2] sm:$0xff] }
 0x2a1   : > { %2138 = vrot.lane.b32.xlu1 %v2043_v60, %s5753_s14  ;;  %2005 = vst.msk [vmem:[#allocation4 + $0xc8] sm:$0xff] %vm1979_vm7, %v1934_v47  ;;  %v2767_v47 = vld [vmem:[%s7004_s29 + $0x18] sm:$0xff]  ;;  %s663_s14 = scalar_lea.vmem %s8742_s10, %s6988_s22 }
 0x2a2   : > { %v1930_v45 = vpop.permute.xlu0 %1929  ;;  %2269 = vrot.lane.b32.xlu2 %v2205_v17, %s5754_s16  ;;  %2914 = vmatpush.msra.mxu1 %v2767_v47 }
 0x2a3   : > { %2003 = vst.msk [vmem:[#allocation4 + $0xb8] sm:$0xff] %vm1979_vm7, %v1930_v45  ;;  %v1926_v42 = vpop.permute.xlu1 %1925  ;;  %v2399_v45 = vld [vmem:[%s8734_s2 + $0x8] sm:$0xff] }
 0x2a4   : > { %2001 = vst.msk [vmem:[#allocation4 + $0xa8] sm:$0xff] %vm1979_vm7, %v1926_v42  ;;  %2552 = vmatpush.msra.mxu0 %v2399_v45  ;;  %5658 = vmatpush.msra.mxu3 %v2399_v45  ;;  %v2232_v42 = vld [vmem:[#allocation2 + $0x1a2] sm:$0xff] }
 0x2a6   : > { %2553 = vmatpush.msra.mxu0 %v2398_v49  ;;  %5659 = vmatpush.msra.mxu3 %v2398_v49 }
 0x2a8   : > { %2277 = vrot.lane.b32.xlu0 %v2209_v50, %s5754_s16  ;;  %v1940_v48 = vpop.permute.xlu2 %1939  ;;  %5660 = vmatpush.msk.msrb.mxu3 %vm2534_vm9, %v2768_v54  ;;  %vm4858_vm9 = vcmask 588800  }
 0x2a9   : > { %2273 = vrot.lane.b32.xlu1 %v2207_v28, %s5754_s16  ;;  %2008 = vst.msk [vmem:[#allocation4 + $0xe0] sm:$0xff] %vm1979_vm7, %v1940_v48 }
 0x2aa   : > { %v1936_v39 = vpop.permute.xlu0 %1935  ;;  %2275 = vrot.lane.b32.xlu2 %v2208_v4, %s5754_s16  ;;  %5661 = vmatpush.msrb.mxu3 %v2767_v47 }
 0x2ab   : > { %2006 = vst.msk [vmem:[#allocation4 + $0xd0] sm:$0xff] %vm1979_vm7, %v1936_v39  ;;  %v1932_v8 = vpop.permute.xlu1 %1931  ;;  %v2766_v39 = vld [vmem:[%s7004_s29 + $0x10] sm:$0xff] }
 0x2ac   : > { %2004 = vst.msk [vmem:[#allocation4 + $0xc0] sm:$0xff] %vm1979_vm7, %v1932_v8  ;;  %2915 = vmatpush.msra.mxu1 %v2766_v39  ;;  %5662 = vmatpush.msrb.mxu3 %v2766_v39  ;;  %v2235_v8 = vld [vmem:[#allocation2 + $0x1ca] sm:$0xff] }
 0x2b0   : > { %2283 = vrot.lane.b32.xlu0 %v2212_v2, %s5754_s16  ;;  %v1946_v57 = vpop.permute.xlu2 %1945  ;;  %v2764_v2 = vld [vmem:[%s7004_s29] sm:$0xff] }
 0x2b1   : > { %2279 = vrot.lane.b32.xlu1 %v2210_v3, %s5754_s16  ;;  %2011 = vst.msk [vmem:[#allocation4 + $0xf8] sm:$0xff] %vm1979_vm7, %v1946_v57 }
 0x2b2   : > { %v1942_v61 = vpop.permute.xlu0 %1941  ;;  %2281 = vrot.lane.b32.xlu2 %v2211_v58, %s5754_s16 }
 0x2b3   : > { %2009 = vst.msk [vmem:[#allocation4 + $0xe8] sm:$0xff] %vm1979_vm7, %v1942_v61  ;;  %v1938_v18 = vpop.permute.xlu1 %1937 }
 0x2b4   : > { %2007 = vst.msk [vmem:[#allocation4 + $0xd8] sm:$0xff] %vm1979_vm7, %v1938_v18 }
 0x2b8   : > { %2289 = vrot.lane.b32.xlu0 %v2215_v56, %s5754_s16  ;;  %v2081_v0 = vpop.permute.xlu2 %2080 }
 0x2b9   : > { %2285 = vrot.lane.b32.xlu1 %v2213_v15, %s5754_s16  ;;  %2175 = vst.msk [vmem:[#allocation4 + $0x10] sm:$0xff] %vm2172_vm8, %v2081_v0 }
 0x2ba   : > { %v2077_v62 = vpop.permute.xlu0 %2076  ;;  %2287 = vrot.lane.b32.xlu2 %v2214_v16, %s5754_s16 }
 0x2bb   : > { %2173 = vst.msk [vmem:[#allocation4] sm:$0xff] %vm2172_vm8, %v2077_v62  ;;  %v1944_v21 = vpop.permute.xlu1 %1943 }
 0x2bc   : > { %2010 = vst.msk [vmem:[#allocation4 + $0xf0] sm:$0xff] %vm1979_vm7, %v1944_v21  ;;  %v8817_v21 = vmov 0.0   ;;  %vm4589_vm7 = vcmask 523712  }
 0x2bd   : > { %3118 = vst.msk [vmem:[#allocation3] sm:$0xff] %vm3117_vm14, %v8817_v21 }
 0x2be   : > { %3119 = vst.msk [vmem:[#allocation3 + $0x8] sm:$0xff] %vm3117_vm14, %v8817_v21 }
 0x2bf   : > { %3122 = vst.msk [vmem:[#allocation3 + $0xf0] sm:$0xff] %vm3117_vm14, %v8817_v21 }
 0x2c0   : > { %2295 = vrot.lane.b32.xlu0 %v6733_v20, %s5754_s16  ;;  %v2087_v20 = vpop.permute.xlu2 %2086  ;;  %3123 = vst.msk [vmem:[#allocation3 + $0xf8] sm:$0xff] %vm3117_vm14, %v8817_v21 }
 0x2c1   : > { %2291 = vrot.lane.b32.xlu1 %v2216_v19, %s5754_s16  ;;  %2178 = vst.msk [vmem:[#allocation4 + $0x28] sm:$0xff] %vm2172_vm8, %v2087_v20 }
 0x2c2   : > { %v2083_v10 = vpop.permute.xlu0 %2082  ;;  %2293 = vrot.lane.b32.xlu2 %v6714_v9, %s5754_s16  ;;  %3126 = vst.msk [vmem:[#allocation3 + $0xd8] sm:$0xff] %vm3117_vm14, %v8817_v21 }
 0x2c3   : > { %2176 = vst.msk [vmem:[#allocation4 + $0x18] sm:$0xff] %vm2172_vm8, %v2083_v10  ;;  %v2079_v14 = vpop.permute.xlu1 %2078 }
 0x2c4   : > { %2174 = vst.msk [vmem:[#allocation4 + $0x8] sm:$0xff] %vm2172_vm8, %v2079_v14 }
 0x2c5   : > { %3127 = vst.msk [vmem:[#allocation3 + $0xe0] sm:$0xff] %vm3117_vm14, %v8817_v21 }
 0x2c6   : > { %3129 = vst.msk [vmem:[#allocation3 + $0x1c8] sm:$0xff] %vm3117_vm14, %v8817_v21 }
 0x2c7   : > { %3130 = vst.msk [vmem:[#allocation3 + $0x1d0] sm:$0xff] %vm3117_vm14, %v8817_v21 }
 0x2c8   : > { %2301 = vrot.lane.b32.xlu0 %v2221_v35, %s5754_s16  ;;  %v2093_v22 = vpop.permute.xlu2 %2092  ;;  %3133 = vst.msk [vmem:[#allocation3] sm:$0x1] %vm3132_vm15, %v8817_v21 }
 0x2c9   : > { %2297 = vrot.lane.b32.xlu1 %v2219_v51, %s5754_s16  ;;  %2181 = vst.msk [vmem:[#allocation4 + $0x40] sm:$0xff] %vm2172_vm8, %v2093_v22 }
 0x2ca   : > { %v2089_v34 = vpop.permute.xlu0 %2088  ;;  %2299 = vrot.lane.b32.xlu2 %v2220_v30, %s5754_s16  ;;  %3134 = vst.msk [vmem:[#allocation3 + $0x18] sm:$0x1] %vm3132_vm15, %v8817_v21 }
 0x2cb   : > { %2179 = vst.msk [vmem:[#allocation4 + $0x30] sm:$0xff] %vm2172_vm8, %v2089_v34  ;;  %v2085_v52 = vpop.permute.xlu1 %2084 }
 0x2cc   : > { %2177 = vst.msk [vmem:[#allocation4 + $0x20] sm:$0xff] %vm2172_vm8, %v2085_v52 }
 0x2cd   : > { %3135 = vst.msk [vmem:[#allocation3 + $0x30] sm:$0x1] %vm3132_vm15, %v8817_v21 }
 0x2ce   : > { %3136 = vst.msk [vmem:[#allocation3 + $0x48] sm:$0x1] %vm3132_vm15, %v8817_v21 }
 0x2cf   : > { %3137 = vst.msk [vmem:[#allocation3 + $0x60] sm:$0x1] %vm3132_vm15, %v8817_v21 }
 0x2d0   : > { %2307 = vrot.lane.b32.xlu0 %v2224_v11, %s5754_s16  ;;  %v2099_v31 = vpop.permute.xlu2 %2098  ;;  %3138 = vst.msk [vmem:[#allocation3 + $0x78] sm:$0x1] %vm3132_vm15, %v8817_v21 }
 0x2d1   : > { %2303 = vrot.lane.b32.xlu1 %v2222_v13, %s5754_s16  ;;  %2184 = vst.msk [vmem:[#allocation4 + $0x58] sm:$0xff] %vm2172_vm8, %v2099_v31 }
 0x2d2   : > { %v2095_v40 = vpop.permute.xlu0 %2094  ;;  %2305 = vrot.lane.b32.xlu2 %v2223_v32, %s5754_s16  ;;  %3139 = vst.msk [vmem:[#allocation3 + $0x90] sm:$0x1] %vm3132_vm15, %v8817_v21 }
 0x2d3   : > { %2182 = vst.msk [vmem:[#allocation4 + $0x48] sm:$0xff] %vm2172_vm8, %v2095_v40  ;;  %v2091_v5 = vpop.permute.xlu1 %2090 }
 0x2d4   : > { %2180 = vst.msk [vmem:[#allocation4 + $0x38] sm:$0xff] %vm2172_vm8, %v2091_v5 }
 0x2d5   : > { %3140 = vst.msk [vmem:[#allocation3 + $0xa8] sm:$0x1] %vm3132_vm15, %v8817_v21 }
 0x2d6   : > { %3141 = vst.msk [vmem:[#allocation3 + $0xc0] sm:$0x1] %vm3132_vm15, %v8817_v21 }
 0x2d7   : > { %3142 = vst.msk [vmem:[#allocation3 + $0xd8] sm:$0x1] %vm3132_vm15, %v8817_v21 }
 0x2d8   : > { %2313 = vrot.lane.b32.xlu0 %v2227_v24, %s5754_s16  ;;  %v2105_v9 = vpop.permute.xlu2 %2104  ;;  %3143 = vst.msk [vmem:[#allocation3 + $0xf0] sm:$0x1] %vm3132_vm15, %v8817_v21 }
 0x2d9   : > { %2309 = vrot.lane.b32.xlu1 %v2225_v26, %s5754_s16  ;;  %2187 = vst.msk [vmem:[#allocation4 + $0x70] sm:$0xff] %vm2172_vm8, %v2105_v9 }
 0x2da   : > { %v2101_v38 = vpop.permute.xlu0 %2100  ;;  %3144 = vst.msk [vmem:[#allocation3 + $0x108] sm:$0x1] %vm3132_vm15, %v8817_v21 }
 0x2db   : > { %2185 = vst.msk [vmem:[#allocation4 + $0x60] sm:$0xff] %vm2172_vm8, %v2101_v38  ;;  %v2097_v1 = vpop.permute.xlu1 %2096 }
 0x2dc   : > { %2183 = vst.msk [vmem:[#allocation4 + $0x50] sm:$0xff] %vm2172_vm8, %v2097_v1 }
 0x2dd   : > { %3145 = vst.msk [vmem:[#allocation3 + $0x120] sm:$0x1] %vm3132_vm15, %v8817_v21 }
 0x2de   : > { %3146 = vst.msk [vmem:[#allocation3 + $0x138] sm:$0x1] %vm3132_vm15, %v8817_v21 }
 0x2df   : > { %3147 = vst.msk [vmem:[#allocation3 + $0x150] sm:$0x1] %vm3132_vm15, %v8817_v21 }
 0x2e0   : > { %2319 = vrot.lane.b32.xlu0 %v2230_v23, %s5754_s16  ;;  %v2111_v37 = vpop.permute.xlu2 %2110  ;;  %3148 = vst.msk [vmem:[#allocation3 + $0x168] sm:$0x1] %vm3132_vm15, %v8817_v21 }
 0x2e1   : > { %2315 = vrot.lane.b32.xlu1 %v2228_v6, %s5754_s16  ;;  %2190 = vst.msk [vmem:[#allocation4 + $0x88] sm:$0xff] %vm2172_vm8, %v2111_v37 }
 0x2e2   : > { %v2107_v55 = vpop.permute.xlu0 %2106  ;;  %3149 = vst.msk [vmem:[#allocation3 + $0x180] sm:$0x1] %vm3132_vm15, %v8817_v21 }
 0x2e3   : > { %2188 = vst.msk [vmem:[#allocation4 + $0x78] sm:$0xff] %vm2172_vm8, %v2107_v55  ;;  %v2103_v27 = vpop.permute.xlu1 %2102 }
 0x2e4   : > { %2186 = vst.msk [vmem:[#allocation4 + $0x68] sm:$0xff] %vm2172_vm8, %v2103_v27 }
 0x2e5   : > { %3150 = vst.msk [vmem:[#allocation3 + $0x198] sm:$0x1] %vm3132_vm15, %v8817_v21 }
 0x2e6   : > { %3151 = vst.msk [vmem:[#allocation3 + $0x1b0] sm:$0x1] %vm3132_vm15, %v8817_v21 }
 0x2e7   : > { %3152 = vst.msk [vmem:[#allocation3 + $0x1c8] sm:$0x1] %vm3132_vm15, %v8817_v21 }
 0x2e8   : > { %2325 = vrot.lane.b32.xlu0 %v6783_v59, %s5754_s16  ;;  %v2226_v59 = vld [vmem:[#allocation2 + $0x15a] sm:$0xff]  ;;  %v2117_v44 = vpop.permute.xlu2 %2116  ;;  %3154 = vst.msk [vmem:[#allocation3 + $0x29] sm:$0x1] %vm3132_vm15, %v8817_v21 }
 0x2e9   : > { %2311 = vrot.lane.b32.xlu2 %v2226_v59, %s5754_s16  ;;  %2321 = vrot.lane.b32.xlu1 %v2231_v53, %s5754_s16  ;;  %2193 = vst.msk [vmem:[#allocation4 + $0xa0] sm:$0xff] %vm2172_vm8, %v2117_v44 }
 0x2ea   : > { %v2113_v25 = vpop.permute.xlu0 %2112  ;;  %3155 = vst.msk [vmem:[#allocation3 + $0x41] sm:$0x1] %vm3132_vm15, %v8817_v21 }
 0x2eb   : > { %2191 = vst.msk [vmem:[#allocation4 + $0x90] sm:$0xff] %vm2172_vm8, %v2113_v25  ;;  %v2109_v63 = vpop.permute.xlu1 %2108 }
 0x2ec   : > { %2189 = vst.msk [vmem:[#allocation4 + $0x80] sm:$0xff] %vm2172_vm8, %v2109_v63 }
 0x2ed   : > { %3156 = vst.msk [vmem:[#allocation3 + $0x59] sm:$0x1] %vm3132_vm15, %v8817_v21 }
 0x2ee   : > { %3157 = vst.msk [vmem:[#allocation3 + $0x71] sm:$0x1] %vm3132_vm15, %v8817_v21 }
 0x2ef   : > { %3158 = vst.msk [vmem:[#allocation3 + $0x89] sm:$0x1] %vm3132_vm15, %v8817_v21 }
 0x2f0   : > { %2331 = vrot.lane.b32.xlu0 %v2236_v36, %s5754_s16  ;;  %v2123_v33 = vpop.permute.xlu2 %2122  ;;  %3159 = vst.msk [vmem:[#allocation3 + $0xa1] sm:$0x1] %vm3132_vm15, %v8817_v21 }
 0x2f1   : > { %2317 = vrot.lane.b32.xlu2 %v2229_v29, %s5754_s16  ;;  %2327 = vrot.lane.b32.xlu1 %v6754_v12, %s5754_s16  ;;  %2196 = vst.msk [vmem:[#allocation4 + $0xb8] sm:$0xff] %vm2172_vm8, %v2123_v33  ;;  %v2765_v12 = vld [vmem:[%s7004_s29 + $0x8] sm:$0xff]  ;;  %s5675_s29 = smul.u32 72, %s6988_s22  ;;  %s8277_s22 = scalar_lea.vmem [#allocation6], %s5931_s15 }
 0x2f2   : > { %v2119_v46 = vpop.permute.xlu0 %2118  ;;  %2916 = vmatpush.msra.mxu1 %v2765_v12  ;;  %5663 = vmatpush.msrb.mxu3 %v2765_v12  ;;  %3160 = vst.msk [vmem:[#allocation3 + $0xb9] sm:$0x1] %vm3132_vm15, %v8817_v21 }
 0x2f3   : > { %2194 = vst.msk [vmem:[#allocation4 + $0xa8] sm:$0xff] %vm2172_vm8, %v2119_v46  ;;  %v2115_v60 = vpop.permute.xlu1 %2114  ;;  %s8021_s19 = scalar_lea.vmem %s8740_s8, %s5675_s29 }
 0x2f4   : > { %2192 = vst.msk [vmem:[#allocation4 + $0x98] sm:$0xff] %vm2172_vm8, %v2115_v60  ;;  %2917 = vmatpush.msra.mxu1 %v2764_v2  ;;  %5664 = vmatpush.msrb.mxu3 %v2764_v2 }
 0x2f5   : > { %3161 = vst.msk [vmem:[#allocation3 + $0xd1] sm:$0x1] %vm3132_vm15, %v8817_v21 }
 0x2f6   : > { %3164 = vst.msk [vmem:[#allocation3 + $0x119] sm:$0x1] %vm3132_vm15, %v8817_v21 }
 0x2f7   : > { %3165 = vst.msk [vmem:[#allocation3 + $0x131] sm:$0x1] %vm3132_vm15, %v8817_v21 }
 0x2f8   : > { %v2129_v28 = vpop.permute.xlu2 %2128  ;;  %3166 = vst.msk [vmem:[#allocation3 + $0x149] sm:$0x1] %vm3132_vm15, %v8817_v21 }
 0x2f9   : > { %2323 = vrot.lane.b32.xlu2 %v2232_v42, %s5754_s16  ;;  %2199 = vst.msk [vmem:[#allocation4 + $0xd0] sm:$0xff] %vm2172_vm8, %v2129_v28 }
 0x2fa   : > { %v2125_v50 = vpop.permute.xlu0 %2124  ;;  %3167 = vst.msk [vmem:[#allocation3 + $0x161] sm:$0x1] %vm3132_vm15, %v8817_v21 }
 0x2fb   : > { %2197 = vst.msk [vmem:[#allocation4 + $0xc0] sm:$0xff] %vm2172_vm8, %v2125_v50  ;;  %v2121_v61 = vpop.permute.xlu1 %2120 }
 0x2fc   : > { %2195 = vst.msk [vmem:[#allocation4 + $0xb0] sm:$0xff] %vm2172_vm8, %v2121_v61 }
 0x2fd   : > { %3168 = vst.msk [vmem:[#allocation3 + $0x179] sm:$0x1] %vm3132_vm15, %v8817_v21 }
 0x2fe   : > { %3169 = vst.msk [vmem:[#allocation3 + $0x191] sm:$0x1] %vm3132_vm15, %v8817_v21 }
 0x2ff   : > { %3170 = vst.msk [vmem:[#allocation3 + $0x1a9] sm:$0x1] %vm3132_vm15, %v8817_v21 }
 0x300   : > { %v2135_v17 = vpop.permute.xlu2 %2134  ;;  %3171 = vst.msk [vmem:[#allocation3 + $0x1c1] sm:$0x1] %vm3132_vm15, %v8817_v21 }
 0x301   : > { %2329 = vrot.lane.b32.xlu2 %v2235_v8, %s5754_s16  ;;  %2202 = vst.msk [vmem:[#allocation4 + $0xe8] sm:$0xff] %vm2172_vm8, %v2135_v17 }
 0x302   : > { %v2131_v48 = vpop.permute.xlu0 %2130  ;;  %3121 = vst.msk [vmem:[#allocation3 + $0x10] sm:$0x3] %vm3120_vm0, %v8817_v21 }
 0x303   : > { %2200 = vst.msk [vmem:[#allocation4 + $0xd8] sm:$0xff] %vm2172_vm8, %v2131_v48  ;;  %v2127_v3 = vpop.permute.xlu1 %2126 }
 0x304   : > { %2198 = vst.msk [vmem:[#allocation4 + $0xc8] sm:$0xff] %vm2172_vm8, %v2127_v3 }
 0x305   : > { %3124 = vst.msk [vmem:[#allocation3 + $0x100] sm:$0x3] %vm3120_vm0, %v8817_v21 }
 0x306   : > { %3128 = vst.msk [vmem:[#allocation3 + $0xe8] sm:$0x3] %vm3120_vm0, %v8817_v21 }
 0x307   : > { %3131 = vst.msk [vmem:[#allocation3 + $0x1d8] sm:$0x3] %vm3120_vm0, %v8817_v21 }
 0x308   : > { %v2270_v57 = vpop.permute.xlu2 %2269  ;;  %3153 = vst.msk [vmem:[#allocation3 + $0x11] sm:$0x1] %vm3132_vm15, %v8817_v21 }
 0x309   : > { %2366 = vst.msk [vmem:[#allocation4] sm:$0xff] %vm2365_vm10, %v2270_v57 }
 0x30a   : > { %v2137_v56 = vpop.permute.xlu0 %2136  ;;  %3162 = vst.msk [vmem:[#allocation3 + $0xe9] sm:$0x1] %vm3132_vm15, %v8817_v21 }
 0x30b   : > { %2203 = vst.msk [vmem:[#allocation4 + $0xf0] sm:$0xff] %vm2172_vm8, %v2137_v56  ;;  %v2133_v18 = vpop.permute.xlu1 %2132  ;;  %v3270_v56 = vld [vmem:[#allocation3 + $0x1] sm:$0xff] }
 0x30c   : > { %2201 = vst.msk [vmem:[#allocation4 + $0xe0] sm:$0xff] %vm2172_vm8, %v2133_v18  ;;  %3334 = vrot.lane.b32.xlu1 %v3270_v56, %s5748_s28  ;;  %v7224_v18 = vld [vmem:[%s7062_s26] ss:$0 sm:$0xff] }
 0x30d   : > { %3163 = vst.msk [vmem:[#allocation3 + $0x101] sm:$0x1] %vm3132_vm15, %v8817_v21 }
 0x30e   : > { %3172 = vst.msk [vmem:[#allocation3 + $0x1d9] sm:$0x1] %vm3132_vm15, %v8817_v21 }
 0x310   : > { %v2405_v4 = vld [vmem:[#allocation4] sm:$0xff]  ;;  %v2276_v0 = vpop.permute.xlu2 %2275 }
 0x311   : > { %5547 = vmatmul.msk.f32.vlgmr.msra.gmra.mxu0 %vm2437_vm11, %v2405_v4  ;;  %2754 = vst.msk [vmem:[#allocation4] sm:$0xff] %vm2753_vm12, %v8817_v21 }
 0x312   : > { %v2272_v62 = vpop.permute.xlu0 %2271  ;;  %2369 = vst.msk [vmem:[#allocation4 + $0x18] sm:$0xff] %vm2365_vm10, %v2276_v0 }
 0x313   : > { %2367 = vst.msk [vmem:[#allocation4 + $0x8] sm:$0xff] %vm2365_vm10, %v2272_v62  ;;  %v2139_v10 = vpop.permute.xlu1 %2138  ;;  %v7217_v62 = vld [vmem:[%s649_s17] ss:$0 sm:$0xff] }
 0x314   : > { %2204 = vst.msk [vmem:[#allocation4 + $0xf8] sm:$0xff] %vm2172_vm8, %v2139_v10  ;;  %vm4782_vm8 = vcmask 589312  }
 0x318   : > { %v2771_v58 = vld [vmem:[#allocation4] sm:$0xff]  ;;  %v2282_v20 = vpop.permute.xlu2 %2281 }
 0x319   : > { %5580 = vmatmul.msk.f32.vlgmr.msra.gmra.mxu1 %vm2437_vm11, %v2771_v58  ;;  %2372 = vst.msk [vmem:[#allocation4 + $0x30] sm:$0xff] %vm2365_vm10, %v2282_v20  ;;  %v2408_v40 = vld [vmem:[#allocation4 + $0x18] sm:$0xff] }
 0x31a   : > { %v2278_v15 = vpop.permute.xlu0 %2277  ;;  %v2406_v35 = vld [vmem:[#allocation4 + $0x8] sm:$0xff] }
 0x31b   : > { %2370 = vst.msk [vmem:[#allocation4 + $0x20] sm:$0xff] %vm2365_vm10, %v2278_v15  ;;  %v2274_v34 = vpop.permute.xlu1 %2273  ;;  %5548 = vmatmul.msk.f32.gmra.mxu0 %vm2437_vm11, %v2406_v35 }
 0x31c   : > { %2755 = vst.msk [vmem:[#allocation4 + $0x8] sm:$0xff] %vm2753_vm12, %v8817_v21 }
 0x31d   : > { %2368 = vst.msk [vmem:[#allocation4 + $0x10] sm:$0xff] %vm2365_vm10, %v2274_v34 }
 0x320   : > { %v2288_v16 = vpop.permute.xlu2 %2287  ;;  %v2411_v1 = vld [vmem:[#allocation4 + $0x30] sm:$0xff] }
 0x321   : > { %2375 = vst.msk [vmem:[#allocation4 + $0x48] sm:$0xff] %vm2365_vm10, %v2288_v16 }
 0x322   : > { %v2284_v19 = vpop.permute.xlu0 %2283  ;;  %v2409_v31 = vld [vmem:[#allocation4 + $0x20] sm:$0xff] }
 0x323   : > { %2373 = vst.msk [vmem:[#allocation4 + $0x38] sm:$0xff] %vm2365_vm10, %v2284_v19  ;;  %v2772_v14 = vld [vmem:[#allocation4 + $0x8] sm:$0xff]  ;;  %v2280_v51 = vpop.permute.xlu1 %2279 }
 0x324   : > { %v2407_v22 = vld [vmem:[#allocation4 + $0x10] sm:$0xff]  ;;  %5581 = vmatmul.msk.f32.gmra.mxu1 %vm2437_vm11, %v2772_v14  ;;  %2371 = vst.msk [vmem:[#allocation4 + $0x28] sm:$0xff] %vm2365_vm10, %v2280_v51 }
 0x325   : > { %5549 = vmatmul.msk.f32.gmra.mxu0 %vm2437_vm11, %v2407_v22 }
 0x328   : > { %v2294_v24 = vpop.permute.xlu2 %2293  ;;  %v2414_v29 = vld [vmem:[#allocation4 + $0x48] sm:$0xff] }
 0x329   : > { %2378 = vst.msk [vmem:[#allocation4 + $0x60] sm:$0xff] %vm2365_vm10, %v2294_v24 }
 0x32a   : > { %v2290_v11 = vpop.permute.xlu0 %2289  ;;  %v2412_v25 = vld [vmem:[#allocation4 + $0x38] sm:$0xff] }
 0x32b   : > { %2376 = vst.msk [vmem:[#allocation4 + $0x50] sm:$0xff] %vm2365_vm10, %v2290_v11  ;;  %v2286_v13 = vpop.permute.xlu1 %2285  ;;  %v2410_v30 = vld [vmem:[#allocation4 + $0x28] sm:$0xff] }
 0x32c   : > { %5582 = vmatmul.msk.f32.gmra.mxu1 %vm2437_vm11, %v2407_v22  ;;  %2374 = vst.msk [vmem:[#allocation4 + $0x40] sm:$0xff] %vm2365_vm10, %v2286_v13 }
 0x32d   : > { %5550 = vmatmul.msk.f32.gmra.mxu0 %vm2437_vm11, %v2408_v40 }
 0x330   : > { %v2300_v5 = vpop.permute.xlu2 %2299  ;;  %v2417_v48 = vld [vmem:[#allocation4 + $0x60] sm:$0xff] }
 0x331   : > { %2381 = vst.msk [vmem:[#allocation4 + $0x78] sm:$0xff] %vm2365_vm10, %v2300_v5 }
 0x332   : > { %v2296_v52 = vpop.permute.xlu0 %2295  ;;  %v2415_v33 = vld [vmem:[#allocation4 + $0x50] sm:$0xff] }
 0x333   : > { %2379 = vst.msk [vmem:[#allocation4 + $0x68] sm:$0xff] %vm2365_vm10, %v2296_v52  ;;  %v2292_v23 = vpop.permute.xlu1 %2291  ;;  %v2413_v53 = vld [vmem:[#allocation4 + $0x40] sm:$0xff] }
 0x334   : > { %5583 = vmatmul.msk.f32.gmra.mxu1 %vm2437_vm11, %v2408_v40  ;;  %2377 = vst.msk [vmem:[#allocation4 + $0x58] sm:$0xff] %vm2365_vm10, %v2292_v23  ;;  %v3271_v23 = vld [vmem:[#allocation3 + $0x9] sm:$0xff] }
 0x335   : > { %5551 = vmatmul.msk.f32.gmra.mxu0 %vm2437_vm11, %v2409_v31  ;;  %3336 = vrot.lane.b32.xlu2 %v3271_v23, %s5748_s28 }
 0x338   : > { %v2306_v9 = vpop.permute.xlu2 %2305  ;;  %v2420_v42 = vld [vmem:[#allocation4 + $0x78] sm:$0xff] }
 0x339   : > { %2384 = vst.msk [vmem:[#allocation4 + $0x90] sm:$0xff] %vm2365_vm10, %v2306_v9 }
 0x33a   : > { %v2302_v38 = vpop.permute.xlu0 %2301  ;;  %2761 = vst.msk [vmem:[#allocation4 + $0x78] sm:$0xff] %vm2759_vm13, %v8817_v21  ;;  %v2418_v17 = vld [vmem:[#allocation4 + $0x68] sm:$0xff] }
 0x33b   : > { %2382 = vst.msk [vmem:[#allocation4 + $0x80] sm:$0xff] %vm2365_vm10, %v2302_v38  ;;  %v2298_v55 = vpop.permute.xlu1 %2297  ;;  %v2416_v12 = vld [vmem:[#allocation4 + $0x58] sm:$0xff] }
 0x33c   : > { %5584 = vmatmul.msk.f32.gmra.mxu1 %vm2437_vm11, %v2409_v31  ;;  %2380 = vst.msk [vmem:[#allocation4 + $0x70] sm:$0xff] %vm2365_vm10, %v2298_v55 }
 0x33d   : > { %5552 = vmatmul.msk.f32.gmra.mxu0 %vm2437_vm11, %v2410_v30 }
 0x340   : > { %v2423_v14 = vld [vmem:[#allocation4 + $0x90] sm:$0xff] }
 0x341   : > { %v2786_v57 = vld [vmem:[#allocation4 + $0x78] sm:$0xff] }
 0x342   : > { %v2308_v26 = vpop.permute.xlu0 %2307  ;;  %v7108_v7 = vld [vmem:[#allocation4 + $0x80] sm:$0xff] }
 0x343   : > { %2385 = vst.msk [vmem:[#allocation4 + $0x98] sm:$0xff] %vm2365_vm10, %v2308_v26  ;;  %v2312_v6 = vpop.permute.xlu2 %2311  ;;  %v2304_v37 = vpop.permute.xlu1 %2303  ;;  %v2419_v47 = vld [vmem:[#allocation4 + $0x70] sm:$0xff] }
 0x344   : > { %5585 = vmatmul.msk.f32.gmra.mxu1 %vm2437_vm11, %v2410_v30  ;;  %2383 = vst.msk [vmem:[#allocation4 + $0x88] sm:$0xff] %vm2365_vm10, %v2304_v37 }
 0x345   : > { %5553 = vmatmul.msk.f32.gmra.mxu0 %vm2437_vm11, %v2411_v1  ;;  %2387 = vst.msk [vmem:[#allocation4 + $0xa8] sm:$0xff] %vm2365_vm10, %v2312_v6 }
 0x346   : > { %2756 = vst.msk [vmem:[#allocation4 + $0x80] sm:$0xff] %vm2753_vm12, %v8817_v21 }
 0x347   : > { %2760 = vst.msk [vmem:[#allocation4 + $0x70] sm:$0xff] %vm2759_vm13, %v8817_v21 }
 0x34a   : > { %v2314_v32 = vpop.permute.xlu0 %2313  ;;  %v2424_v52 = vld [vmem:[#allocation4 + $0x98] sm:$0xff] }
 0x34b   : > { %2388 = vst.msk [vmem:[#allocation4 + $0xb0] sm:$0xff] %vm2365_vm10, %v2314_v32  ;;  %v2318_v41 = vpop.permute.xlu2 %2317  ;;  %v2310_v59 = vpop.permute.xlu1 %2309  ;;  %v7116_v45 = vld [vmem:[#allocation4 + $0x88] sm:$0xff] }
 0x34c   : > { %5586 = vmatmul.msk.f32.gmra.mxu1 %vm2437_vm11, %v2411_v1  ;;  %2386 = vst.msk [vmem:[#allocation4 + $0xa0] sm:$0xff] %vm2365_vm10, %v2310_v59 }
 0x34d   : > { %5554 = vmatmul.msk.f32.gmra.mxu0 %vm2437_vm11, %v2412_v25  ;;  %2390 = vst.msk [vmem:[#allocation4 + $0xc0] sm:$0xff] %vm2365_vm10, %v2318_v41  ;;  %v2787_v15 = vld [vmem:[#allocation4 + $0x80] sm:$0xff] }
 0x34e   : > { %2757 = vst.msk [vmem:[#allocation4 + $0x88] sm:$0xff] %vm2753_vm12, %v8817_v21  ;;  %v2785_v3 = vld [vmem:[#allocation4 + $0x70] sm:$0xff] }
 0x352   : > { %v2320_v27 = vpop.permute.xlu0 %2319 }
 0x353   : > { %2391 = vst.msk [vmem:[#allocation4 + $0xc8] sm:$0xff] %vm2365_vm10, %v2320_v27  ;;  %v2324_v46 = vpop.permute.xlu2 %2323  ;;  %v2316_v43 = vpop.permute.xlu1 %2315  ;;  %v2425_v26 = vld [vmem:[#allocation4 + $0xa0] sm:$0xff] }
 0x354   : > { %5587 = vmatmul.msk.f32.gmra.mxu1 %vm2437_vm11, %v2412_v25  ;;  %2393 = vst.msk [vmem:[#allocation4 + $0xd8] sm:$0xff] %vm2365_vm10, %v2324_v46  ;;  %v2426_v25 = vld [vmem:[#allocation4 + $0xa8] sm:$0xff] }
 0x355   : > { %2389 = vst.msk [vmem:[#allocation4 + $0xb8] sm:$0xff] %vm2365_vm10, %v2316_v43  ;;  %5555 = vmatmul.msk.f32.gmra.mxu0 %vm2437_vm11, %v2413_v53  ;;  %v2788_v19 = vld [vmem:[#allocation4 + $0x88] sm:$0xff] }
 0x35a   : > { %v7099_v44 = vld [vmem:[#allocation4 + $0xc8] sm:$0xff]  ;;  %v2326_v63 = vpop.permute.xlu0 %2325 }
 0x35b   : > { %5572 = vmatmul.msk.f32.vlgmr.msra.gmra.mxu3 %vm2437_vm11, %v7099_v44  ;;  %2394 = vst.msk [vmem:[#allocation4 + $0xe0] sm:$0xff] %vm2365_vm10, %v2326_v63  ;;  %v2330_v36 = vpop.permute.xlu2 %2329  ;;  %v2322_v54 = vpop.permute.xlu1 %2321  ;;  %v7134_v2 = vld [vmem:[#allocation4 + $0xd8] sm:$0xff]  ;;  %v2427_v63 = vld [vmem:[#allocation4 + $0xb0] sm:$0xff] }
 0x35c   : > { %5588 = vmatmul.msk.f32.gmra.mxu1 %vm2437_vm11, %v2413_v53  ;;  %2396 = vst.msk [vmem:[#allocation4 + $0xf0] sm:$0xff] %vm2365_vm10, %v2330_v36 }
 0x35d   : > { %2392 = vst.msk [vmem:[#allocation4 + $0xd0] sm:$0xff] %vm2365_vm10, %v2322_v54  ;;  %5556 = vmatmul.msk.f32.gmra.mxu0 %vm2437_vm11, %v2414_v29 }
 0x362   : > { %v2332_v49 = vpop.permute.xlu0 %2331  ;;  %v7142_v61 = vld [vmem:[#allocation4 + $0xe0] sm:$0xff] }
 0x363   : > { %2397 = vst.msk [vmem:[#allocation4 + $0xf8] sm:$0xff] %vm2365_vm10, %v2332_v49  ;;  %v2328_v60 = vpop.permute.xlu1 %2327  ;;  %v2435_v39 = vld [vmem:[#allocation4 + $0xf0] sm:$0xff]  ;;  %v2428_v49 = vld [vmem:[#allocation4 + $0xb8] sm:$0xff] }
 0x364   : > { %v7121_v50 = vld [vmem:[#allocation4 + $0xd0] sm:$0xff]  ;;  %5589 = vmatmul.msk.f32.gmra.mxu1 %vm2437_vm11, %v2414_v29  ;;  %2395 = vst.msk [vmem:[#allocation4 + $0xe8] sm:$0xff] %vm2365_vm10, %v2328_v60 }
 0x365   : > { %5557 = vmatmul.msk.f32.gmra.mxu0 %vm2437_vm11, %v2415_v33  ;;  %5573 = vmatmul.msk.f32.gmra.mxu3 %vm2437_vm11, %v7121_v50  ;;  %2762 = vst.msk [vmem:[#allocation4 + $0xf0] sm:$0xff] %vm2759_vm13, %v8817_v21 }
 0x36a   : > { %v2436_v28 = vld [vmem:[#allocation4 + $0xf8] sm:$0xff] }
 0x36b   : > { %2763 = vst.msk [vmem:[#allocation4 + $0xf8] sm:$0xff] %vm2759_vm13, %v8817_v21  ;;  %v7148_v8 = vld [vmem:[#allocation4 + $0xe8] sm:$0xff] }
 0x36c   : > { %5590 = vmatmul.msk.f32.gmra.mxu1 %vm2437_vm11, %v2415_v33 }
 0x36d   : > { %5558 = vmatmul.msk.f32.gmra.mxu0 %vm2437_vm11, %v2416_v12  ;;  %5574 = vmatmul.msk.f32.gmra.mxu3 %vm2437_vm11, %v7134_v2 }
 0x374   : > { %5591 = vmatmul.msk.f32.gmra.mxu1 %vm2437_vm11, %v2416_v12  ;;  %v2429_v12 = vld [vmem:[#allocation4 + $0xc0] sm:$0xff] }
 0x375   : > { %5559 = vmatmul.msk.f32.gmra.mxu0 %vm2437_vm11, %v2417_v48  ;;  %5575 = vmatmul.msk.f32.gmra.mxu3 %vm2437_vm11, %v7142_v61 }
 0x37c   : > { %5592 = vmatmul.msk.f32.gmra.mxu1 %vm2437_vm11, %v2417_v48 }
 0x37d   : > { %5560 = vmatmul.msk.f32.gmra.mxu0 %vm2437_vm11, %v2418_v17  ;;  %5576 = vmatmul.msk.f32.gmra.mxu3 %vm2437_vm11, %v7148_v8 }
 0x384   : > { %5593 = vmatmul.msk.f32.gmra.mxu1 %vm2437_vm11, %v2418_v17 }
 0x385   : > { %5561 = vmatmul.msk.f32.gmra.mxu0 %vm2437_vm11, %v2419_v47  ;;  %5577 = vmatmul.msk.f32.gmra.mxu3 %vm2437_vm11, %v2435_v39 }
 0x38c   : > { %5594 = vmatmul.msk.f32.gmra.mxu1 %vm2437_vm11, %v2785_v3 }
 0x38d   : > { %5562 = vmatmul.msk.f32.gmra.mxu0 %vm2437_vm11, %v2420_v42  ;;  %5578 = vmatmul.msk.f32.gmra.mxu3 %vm2437_vm11, %v2436_v28 }
 0x394   : > { %5595 = vmatmul.msk.f32.gmra.mxu1 %vm2437_vm11, %v2786_v57 }
 0x395   : > { %5563 = vmatmul.msk.f32.gmra.mxu0 %vm2437_vm11, %v7108_v7  ;;  %5605 = vmatmul.msk.f32.vlgmr.msrb.gmra.mxu3 %vm2437_vm11, %v7099_v44 }
 0x396   : > { %v2919_v4 = vpop.f32.mrf.mxu1 }
 0x397   : > { %v3018_v0 = vmul.f32 %v7217_v62, %v2919_v4 }
 0x399   : > { %v3053_v10 = vadd.f32 %v7224_v18, %v3018_v0 }
 0x39b   : > { %v3085_v35 = vmax.f32 %v3053_v10, 0.0 }
 0x39c   : > { %5596 = vmatmul.msk.f32.gmra.mxu1 %vm2437_vm11, %v2787_v15 }
 0x39d   : > { %5564 = vmatmul.msk.f32.gmra.mxu0 %vm2437_vm11, %v7116_v45  ;;  %5606 = vmatmul.msk.f32.gmra.mxu3 %vm2437_vm11, %v7121_v50  ;;  %3174 = vst.msk [vmem:[#allocation3 + $0x19] sm:$0xff] %vm3117_vm14, %v3085_v35 }
 0x3a1   : > { %v2922_v58 = vpop.f32.mrf.mxu1 }
 0x3a2   : > { %v3019_v20 = vmul.f32 %v7217_v62, %v2922_v58 }
 0x3a4   : > { %v3054_v34 = vadd.f32 %v7224_v18, %v3019_v20  ;;  %5597 = vmatmul.msk.f32.gmra.mxu1 %vm2437_vm11, %v2788_v19  ;;  %v3272_v16 = vld [vmem:[#allocation3 + $0x19] sm:$0xff] }
 0x3a5   : > { %5565 = vmatmul.msk.f32.gmra.mxu0 %vm2437_vm11, %v2423_v14  ;;  %5607 = vmatmul.msk.f32.gmra.mxu3 %vm2437_vm11, %v7134_v2  ;;  %v7297_v5 = vld [vmem:[#allocation3 + $0x18] sm:$0xff]  ;;  %v7354_v2 = vpop.f32.mrf.mxu0 }
 0x3a6   : > { %v3086_v11 = vmax.f32 %v3054_v34, 0.0  ;;  %3338 = vrot.lane.b32.xlu0 %v3272_v16, %s5748_s28  ;;  %3240 = vst.msk [vmem:[#allocation4 + $0x10] sm:$0xff] %vm3117_vm14, %v7297_v5 }
 0x3a7   : > { %8818 = vst [vmem:[#allocation15_spill] sm:$0xff] %v7354_v2 }
 0x3a8   : > { %3175 = vst.msk [vmem:[#allocation3 + $0x21] sm:$0xff] %vm3117_vm14, %v3086_v11 }
 0x3a9   : > { %v2925_v51 = vpop.f32.mrf.mxu1 }
 0x3aa   : > { %v3020_v22 = vmul.f32 %v7217_v62, %v2925_v51 }
 0x3ac   : > { %v3055_v40 = vadd.f32 %v7224_v18, %v3020_v22  ;;  %5598 = vmatmul.msk.f32.gmra.mxu1 %vm2437_vm11, %v2423_v14 }
 0x3ad   : > { %5566 = vmatmul.msk.f32.gmra.mxu0 %vm2437_vm11, %v2424_v52  ;;  %5608 = vmatmul.msk.f32.gmra.mxu3 %vm2437_vm11, %v7142_v61 }
 0x3ae   : > { %v3087_v24 = vmax.f32 %v3055_v40, 0.0 }
 0x3af   : > { %v3273_v13 = vld [vmem:[#allocation3 + $0x21] sm:$0xff] }
 0x3b0   : > { %3176 = vst.msk [vmem:[#allocation3 + $0x31] sm:$0xff] %vm3117_vm14, %v3087_v24  ;;  %3340 = vrot.lane.b32.xlu1 %v3273_v13, %s5748_s28  ;;  %v7303_v9 = vld [vmem:[#allocation3 + $0x20] sm:$0xff]  ;;  %v3207_v24 = vld [vmem:[#allocation3 + $0x8] sm:$0xff] }
 0x3b1   : > { %v2928_v31 = vpop.f32.mrf.mxu1  ;;  %3241 = vst.msk [vmem:[#allocation4 + $0x18] sm:$0xff] %vm3117_vm14, %v7303_v9 }
 0x3b2   : > { %v3021_v38 = vmul.f32 %v7217_v62, %v2928_v31  ;;  %3239 = vst.msk [vmem:[#allocation4 + $0x8] sm:$0xff] %vm3117_vm14, %v3207_v24 }
 0x3b4   : > { %v3056_v30 = vadd.f32 %v7224_v18, %v3021_v38  ;;  %5599 = vmatmul.msk.f32.gmra.mxu1 %vm2437_vm11, %v2424_v52 }
 0x3b5   : > { %5567 = vmatmul.msk.f32.gmra.mxu0 %vm2437_vm11, %v2425_v26  ;;  %5609 = vmatmul.msk.f32.gmra.mxu3 %vm2437_vm11, %v7148_v8 }
 0x3b6   : > { %v3088_v55 = vmax.f32 %v3056_v30, 0.0 }
 0x3b7   : > { %v7313_v1 = vld [vmem:[#allocation3 + $0x30] sm:$0xff] }
 0x3b8   : > { %3177 = vst.msk [vmem:[#allocation3 + $0x39] sm:$0xff] %vm3117_vm14, %v3088_v55  ;;  %v3274_v21 = vld [vmem:[#allocation3 + $0x31] sm:$0xff] }
 0x3b9   : > { %v2931_v32 = vpop.f32.mrf.mxu1  ;;  %3242 = vst.msk [vmem:[#allocation4 + $0x20] sm:$0xff] %vm3117_vm14, %v7313_v1  ;;  %3342 = vrot.lane.b32.xlu2 %v3274_v21, %s5748_s28 }
 0x3ba   : > { %v3022_v6 = vmul.f32 %v7217_v62, %v2931_v32 }
 0x3bc   : > { %v3057_v37 = vadd.f32 %v7224_v18, %v3022_v6  ;;  %5600 = vmatmul.msk.f32.gmra.mxu1 %vm2437_vm11, %v2425_v26 }
 0x3bd   : > { %5568 = vmatmul.msk.f32.gmra.mxu0 %vm2437_vm11, %v2426_v25 }
 0x3be   : > { %v3089_v27 = vmax.f32 %v3057_v37, 0.0 }
 0x3bf   : > { %v3275_v41 = vld [vmem:[#allocation3 + $0x39] sm:$0xff] }
 0x3c0   : > { %v7325_v59 = vld [vmem:[#allocation3 + $0x38] sm:$0xff]  ;;  %3178 = vst.msk [vmem:[#allocation3 + $0x49] sm:$0xff] %vm3117_vm14, %v3089_v27  ;;  %3344 = vrot.lane.b32.xlu0 %v3275_v41, %s5748_s28  ;;  %v3206_v41 = vld [vmem:[#allocation3] sm:$0xff] }
 0x3c1   : > { %v2934_v53 = vpop.f32.mrf.mxu1  ;;  %3243 = vst.msk [vmem:[#allocation4 + $0x28] sm:$0xff] %vm3117_vm14, %v7325_v59 }
 0x3c2   : > { %v3023_v44 = vmul.f32 %v7217_v62, %v2934_v53  ;;  %3238 = vst.msk [vmem:[#allocation4] sm:$0xff] %vm3117_vm14, %v3206_v41 }
 0x3c4   : > { %v3058_v46 = vadd.f32 %v7224_v18, %v3023_v44  ;;  %5601 = vmatmul.msk.f32.gmra.mxu1 %vm2437_vm11, %v2426_v25 }
 0x3c5   : > { %5569 = vmatmul.msk.f32.gmra.mxu0 %vm2437_vm11, %v2427_v63 }
 0x3c6   : > { %v3090_v43 = vmax.f32 %v3058_v46, 0.0  ;;  %v3335_v46 = vpop.permute.xlu1 %3334 }
 0x3c7   : > { %v3276_v7 = vld [vmem:[#allocation3 + $0x49] sm:$0xff]  ;;  %3431 = vst.msk [vmem:[#allocation4] sm:$0xff] %vm3430_vm1, %v3335_v46 }
 0x3c8   : > { %v7335_v29 = vld [vmem:[#allocation3 + $0x48] sm:$0xff]  ;;  %3179 = vst.msk [vmem:[#allocation3 + $0x51] sm:$0xff] %vm3117_vm14, %v3090_v43  ;;  %3346 = vrot.lane.b32.xlu1 %v3276_v7, %s5748_s28 }
 0x3c9   : > { %v2937_v36 = vpop.f32.mrf.mxu1  ;;  %3244 = vst.msk [vmem:[#allocation4 + $0x30] sm:$0xff] %vm3117_vm14, %v7335_v29 }
 0x3ca   : > { %v3024_v54 = vmul.f32 %v7217_v62, %v2937_v36 }
 0x3cc   : > { %v3059_v45 = vadd.f32 %v7224_v18, %v3024_v54  ;;  %5602 = vmatmul.msk.f32.gmra.mxu1 %vm2437_vm11, %v2427_v63 }
 0x3cd   : > { %5570 = vmatmul.msk.f32.gmra.mxu0 %vm2437_vm11, %v2428_v49 }
 0x3ce   : > { %v3091_v33 = vmax.f32 %v3059_v45, 0.0 }
 0x3cf   : > { %v3277_v50 = vld [vmem:[#allocation3 + $0x51] sm:$0xff] }
 0x3d0   : > { %v7345_v60 = vld [vmem:[#allocation3 + $0x50] sm:$0xff]  ;;  %3180 = vst.msk [vmem:[#allocation3 + $0x61] sm:$0xff] %vm3117_vm14, %v3091_v33  ;;  %3348 = vrot.lane.b32.xlu2 %v3277_v50, %s5748_s28 }
 0x3d1   : > { %v2940_v47 = vpop.f32.mrf.mxu1  ;;  %3245 = vst.msk [vmem:[#allocation4 + $0x38] sm:$0xff] %vm3117_vm14, %v7345_v60 }
 0x3d2   : > { %v3025_v39 = vmul.f32 %v7217_v62, %v2940_v47 }
 0x3d4   : > { %v3060_v42 = vadd.f32 %v7224_v18, %v3025_v39  ;;  %5603 = vmatmul.msk.f32.gmra.mxu1 %vm2437_vm11, %v2428_v49  ;;  %v3337_v39 = vpop.permute.xlu2 %3336 }
 0x3d5   : > { %5571 = vmatmul.msk.f32.gmra.mxu0 %vm2437_vm11, %v2429_v12  ;;  %3432 = vst.msk [vmem:[#allocation4 + $0x8] sm:$0xff] %vm3430_vm1, %v3337_v39 }
 0x3d6   : > { %v3092_v28 = vmax.f32 %v3060_v42, 0.0 }
 0x3d7   : > { %v3278_v48 = vld [vmem:[#allocation3 + $0x61] sm:$0xff] }
 0x3d8   : > { %v7357_v61 = vld [vmem:[#allocation3 + $0x60] sm:$0xff]  ;;  %3181 = vst.msk [vmem:[#allocation3 + $0x69] sm:$0xff] %vm3117_vm14, %v3092_v28  ;;  %3350 = vrot.lane.b32.xlu0 %v3278_v48, %s5748_s28 }
 0x3d9   : > { %v2943_v8 = vpop.f32.mrf.mxu1  ;;  %3246 = vst.msk [vmem:[#allocation4 + $0x40] sm:$0xff] %vm3117_vm14, %v7357_v61 }
 0x3da   : > { %v3026_v17 = vmul.f32 %v7217_v62, %v2943_v8 }
 0x3dc   : > { %v3061_v56 = vadd.f32 %v7224_v18, %v3026_v17  ;;  %5604 = vmatmul.msk.f32.gmra.mxu1 %vm2437_vm11, %v2429_v12  ;;  %v3286_v12 = vld [vmem:[#allocation3 + $0xf1] sm:$0xff] }
 0x3de   : > { %v3093_v3 = vmax.f32 %v3061_v56, 0.0  ;;  %v7366_v57 = vpop.f32.mrf.mxu3 }
 0x3df   : > { %8819 = vst [vmem:[#allocation7_spill] sm:$0xff] %v7366_v57  ;;  %v3279_v4 = vld [vmem:[#allocation3 + $0x69] sm:$0xff] }
 0x3e0   : > { %v7368_v15 = vld [vmem:[#allocation3 + $0x68] sm:$0xff]  ;;  %3182 = vst.msk [vmem:[#allocation3 + $0x79] sm:$0xff] %vm3117_vm14, %v3093_v3  ;;  %3352 = vrot.lane.b32.xlu1 %v3279_v4, %s5748_s28 }
 0x3e1   : > { %v2946_v0 = vpop.f32.mrf.mxu1  ;;  %3247 = vst.msk [vmem:[#allocation4 + $0x48] sm:$0xff] %vm3117_vm14, %v7368_v15 }
 0x3e2   : > { %v3027_v10 = vmul.f32 %v7217_v62, %v2946_v0  ;;  %v3287_v0 = vld [vmem:[#allocation3 + $0xf9] sm:$0xff] }
 0x3e4   : > { %v3062_v35 = vadd.f32 %v7224_v18, %v3027_v10 }
 0x3e6   : > { %v3094_v58 = vmax.f32 %v3062_v35, 0.0 }
 0x3e7   : > { %v3280_v19 = vld [vmem:[#allocation3 + $0x79] sm:$0xff] }
 0x3e8   : > { %v7376_v20 = vld [vmem:[#allocation3 + $0x78] sm:$0xff]  ;;  %3183 = vst.msk [vmem:[#allocation3 + $0x81] sm:$0xff] %vm3117_vm14, %v3094_v58  ;;  %v7379_v34 = vpop.f32.mrf.mxu3  ;;  %3354 = vrot.lane.b32.xlu2 %v3280_v19, %s5748_s28 }
 0x3e9   : > { %8820 = vst [vmem:[#allocation9_spill] sm:$0xff] %v7379_v34  ;;  %v2949_v14 = vpop.f32.mrf.mxu1 }
 0x3ea   : > { %3248 = vst.msk [vmem:[#allocation4 + $0x50] sm:$0xff] %vm3117_vm14, %v7376_v20  ;;  %v3028_v11 = vmul.f32 %v7217_v62, %v2949_v14 }
 0x3ec   : > { %v3063_v16 = vadd.f32 %v7224_v18, %v3028_v11 }
 0x3ee   : > { %v3095_v51 = vmax.f32 %v3063_v16, 0.0 }
 0x3ef   : > { %v3281_v22 = vld [vmem:[#allocation3 + $0x81] sm:$0xff] }
 0x3f0   : > { %v7386_v40 = vld [vmem:[#allocation3 + $0x80] sm:$0xff]  ;;  %3184 = vst.msk [vmem:[#allocation3 + $0x91] sm:$0xff] %vm3117_vm14, %v3095_v51  ;;  %v7389_v52 = vpop.f32.mrf.mxu3  ;;  %3356 = vrot.lane.b32.xlu0 %v3281_v22, %s5748_s28 }
 0x3f1   : > { %8821 = vst [vmem:[#allocation18_spill] sm:$0xff] %v7389_v52  ;;  %v2952_v13 = vpop.f32.mrf.mxu1 }
 0x3f2   : > { %v3029_v31 = vmul.f32 %v7217_v62, %v2952_v13  ;;  %3249 = vst.msk [vmem:[#allocation4 + $0x58] sm:$0xff] %vm3117_vm14, %v7386_v40 }
 0x3f4   : > { %v3064_v38 = vadd.f32 %v7224_v18, %v3029_v31 }
 0x3f6   : > { %v3096_v23 = vmax.f32 %v3064_v38, 0.0 }
 0x3f7   : > { %v3282_v30 = vld [vmem:[#allocation3 + $0x91] sm:$0xff] }
 0x3f8   : > { %v7397_v26 = vld [vmem:[#allocation3 + $0x90] sm:$0xff]  ;;  %3185 = vst.msk [vmem:[#allocation3 + $0x99] sm:$0xff] %vm3117_vm14, %v3096_v23  ;;  %v7400_v55 = vpop.f32.mrf.mxu3  ;;  %3358 = vrot.lane.b32.xlu1 %v3282_v30, %s5748_s28 }
 0x3f9   : > { %8822 = vst [vmem:[#allocation8_spill] sm:$0xff] %v7400_v55  ;;  %v2955_v32 = vpop.f32.mrf.mxu1 }
 0x3fa   : > { %3250 = vst.msk [vmem:[#allocation4 + $0x60] sm:$0xff] %vm3117_vm14, %v7397_v26  ;;  %v3030_v21 = vmul.f32 %v7217_v62, %v2955_v32 }
 0x3fc   : > { %v3065_v6 = vadd.f32 %v7224_v18, %v3030_v21 }
 0x3fe   : > { %v3097_v37 = vmax.f32 %v3065_v6, 0.0 }
 0x3ff   : > { %v3283_v25 = vld [vmem:[#allocation3 + $0x99] sm:$0xff] }
 0x400   : > { %3186 = vst.msk [vmem:[#allocation3 + $0xa9] sm:$0xff] %vm3117_vm14, %v3097_v37  ;;  %v7408_v27 = vpop.f32.mrf.mxu3  ;;  %3360 = vrot.lane.b32.xlu2 %v3283_v25, %s5748_s28  ;;  %v7411_v53 = vld [vmem:[#allocation3 + $0x98] sm:$0xff] }
 0x401   : > { %8823 = vst [vmem:[#allocation11_spill] sm:$0xff] %v7408_v27  ;;  %v2958_v44 = vpop.f32.mrf.mxu1 }
 0x402   : > { %v3031_v63 = vmul.f32 %v7217_v62, %v2958_v44  ;;  %3251 = vst.msk [vmem:[#allocation4 + $0x68] sm:$0xff] %vm3117_vm14, %v7411_v53 }
 0x404   : > { %v3066_v43 = vadd.f32 %v7224_v18, %v3031_v63 }
 0x406   : > { %v3098_v7 = vmax.f32 %v3066_v43, 0.0 }
 0x407   : > { %v3284_v36 = vld [vmem:[#allocation3 + $0xa9] sm:$0xff] }
 0x408   : > { %v7419_v54 = vld [vmem:[#allocation3 + $0xa8] sm:$0xff]  ;;  %3187 = vst.msk [vmem:[#allocation3 + $0xb1] sm:$0xff] %vm3117_vm14, %v3098_v7  ;;  %v7422_v45 = vpop.f32.mrf.mxu3  ;;  %3362 = vrot.lane.b32.xlu0 %v3284_v36, %s5748_s28  ;;  %3366 = vrot.lane.b32.xlu2 %v3286_v12, %s5748_s28  ;;  %v2801_v36 = vld [vmem:[#allocation4 + $0xf0] sm:$0xff] }
 0x409   : > { %8824 = vst [vmem:[#allocation20_spill] sm:$0xff] %v7422_v45  ;;  %v2961_v49 = vpop.f32.mrf.mxu1  ;;  %5610 = vmatmul.msk.f32.gmra.mxu3 %vm2437_vm11, %v2801_v36  ;;  %v3479_v45 = vld [vmem:[#allocation3 + $0xf2] sm:$0xff] }
 0x40a   : > { %3252 = vst.msk [vmem:[#allocation4 + $0x70] sm:$0xff] %vm3117_vm14, %v7419_v54  ;;  %v3032_v33 = vmul.f32 %v7217_v62, %v2961_v49 }
 0x40c   : > { %v3067_v50 = vadd.f32 %v7224_v18, %v3032_v33 }
 0x40e   : > { %v3099_v47 = vmax.f32 %v3067_v50, 0.0 }
 0x40f   : > { %v3285_v42 = vld [vmem:[#allocation3 + $0xb1] sm:$0xff] }
 0x410   : > { %v7429_v28 = vld [vmem:[#allocation3 + $0xb0] sm:$0xff]  ;;  %3188 = vst.msk [vmem:[#allocation3 + $0xc1] sm:$0xff] %vm3117_vm14, %v3099_v47  ;;  %v7432_v48 = vpop.f32.mrf.mxu3  ;;  %3364 = vrot.lane.b32.xlu1 %v3285_v42, %s5748_s28  ;;  %3368 = vrot.lane.b32.xlu0 %v3287_v0, %s5748_s28  ;;  %v2802_v0 = vld [vmem:[#allocation4 + $0xf8] sm:$0xff] }
 0x411   : > { %8825 = vst [vmem:[#allocation10_spill] sm:$0xff] %v7432_v48  ;;  %v2964_v8 = vpop.f32.mrf.mxu1  ;;  %5611 = vmatmul.msk.f32.gmra.mxu3 %vm2437_vm11, %v2802_v0  ;;  %v7657_v48 = vld [vmem:[#allocation3 + $0x6a] sm:$0xff]  ;;  %v3478_v52 = vld [vmem:[#allocation3 + $0xb2] sm:$0xff] }
 0x412   : > { %v3033_v17 = vmul.f32 %v7217_v62, %v2964_v8  ;;  %3253 = vst.msk [vmem:[#allocation4 + $0x78] sm:$0xff] %vm3117_vm14, %v7429_v28  ;;  %v7661_v27 = vld [vmem:[#allocation3 + $0xaa] sm:$0xff] }
 0x413   : > { %v3343_v4 = vpop.permute.xlu2 %3342  ;;  %8826 = vst [vmem:[#allocation13_spill] sm:$0xff] %v7661_v27 }
 0x414   : > { %v3068_v56 = vadd.f32 %v7224_v18, %v3033_v17  ;;  %3435 = vst.msk [vmem:[#allocation4 + $0x20] sm:$0xff] %vm3430_vm1, %v3343_v4 }
 0x416   : > { %v3100_v3 = vmax.f32 %v3068_v56, 0.0 }
 0x418   : > { %3189 = vst.msk [vmem:[#allocation3 + $0xc9] sm:$0xff] %vm3117_vm14, %v3100_v3  ;;  %v2994_v10 = vpop.f32.mrf.mxu3  ;;  %v3339_v14 = vpop.permute.xlu0 %3338 }
 0x419   : > { %v3043_v35 = vmul.f32 %v7217_v62, %v2994_v10  ;;  %v2967_v58 = vpop.f32.mrf.mxu1  ;;  %3433 = vst.msk [vmem:[#allocation4 + $0x10] sm:$0xff] %vm3430_vm1, %v3339_v14 }
 0x41a   : > { %v3034_v19 = vmul.f32 %v7217_v62, %v2967_v58 }
 0x41b   : > { %v3078_v11 = vadd.f32 %v7224_v18, %v3043_v35 }
 0x41c   : > { %v3069_v16 = vadd.f32 %v7224_v18, %v3034_v19 }
 0x41d   : > { %v3110_v51 = vmax.f32 %v3078_v11, 0.0 }
 0x41e   : > { %v3101_v22 = vmax.f32 %v3069_v16, 0.0 }
 0x41f   : > { %3199 = vst.msk [vmem:[#allocation3 + $0x171] sm:$0xff] %vm3117_vm14, %v3110_v51 }
 0x420   : > { %3190 = vst.msk [vmem:[#allocation3 + $0x109] sm:$0xff] %vm3117_vm14, %v3101_v22  ;;  %v2997_v24 = vpop.f32.mrf.mxu3 }
 0x421   : > { %v3044_v13 = vmul.f32 %v7217_v62, %v2997_v24  ;;  %v2970_v31 = vpop.f32.mrf.mxu1 }
 0x422   : > { %v3035_v38 = vmul.f32 %v7217_v62, %v2970_v31  ;;  %v3341_v23 = vpop.permute.xlu1 %3340 }
 0x423   : > { %v3079_v30 = vadd.f32 %v7224_v18, %v3044_v13  ;;  %3434 = vst.msk [vmem:[#allocation4 + $0x18] sm:$0xff] %vm3430_vm1, %v3341_v23 }
 0x424   : > { %v3070_v32 = vadd.f32 %v7224_v18, %v3035_v38 }
 0x425   : > { %v3111_v21 = vmax.f32 %v3079_v30, 0.0 }
 0x426   : > { %v3102_v6 = vmax.f32 %v3070_v32, 0.0 }
 0x427   : > { %3200 = vst.msk [vmem:[#allocation3 + $0x181] sm:$0xff] %vm3117_vm14, %v3111_v21  ;;  %v7457_v37 = vld [vmem:[#allocation3 + $0x109] sm:$0xff] }
 0x428   : > { %v7459_v25 = vld [vmem:[#allocation3 + $0x108] sm:$0xff]  ;;  %3191 = vst.msk [vmem:[#allocation3 + $0x111] sm:$0xff] %vm3117_vm14, %v3102_v6  ;;  %v3000_v41 = vpop.f32.mrf.mxu3  ;;  %3370 = vrot.lane.b32.xlu1 %v7457_v37, %s5748_s28 }
 0x429   : > { %v3045_v44 = vmul.f32 %v7217_v62, %v3000_v41  ;;  %v2973_v46 = vpop.f32.mrf.mxu1  ;;  %3256 = vst.msk [vmem:[#allocation4 + $0x90] sm:$0xff] %vm3117_vm14, %v7459_v25 }
 0x42a   : > { %v3036_v63 = vmul.f32 %v7217_v62, %v2973_v46  ;;  %v3349_v43 = vpop.permute.xlu2 %3348 }
 0x42b   : > { %v3080_v7 = vadd.f32 %v7224_v18, %v3045_v44  ;;  %3438 = vst.msk [vmem:[#allocation4 + $0x38] sm:$0xff] %vm3430_vm1, %v3349_v43 }
 0x42c   : > { %v3071_v49 = vadd.f32 %v7224_v18, %v3036_v63 }
 0x42d   : > { %v3112_v33 = vmax.f32 %v3080_v7, 0.0 }
 0x42e   : > { %v3103_v50 = vmax.f32 %v3071_v49, 0.0  ;;  %v7477_v42 = vld [vmem:[#allocation3 + $0x180] sm:$0xff] }
 0x42f   : > { %3201 = vst.msk [vmem:[#allocation3 + $0x189] sm:$0xff] %vm3117_vm14, %v3112_v33  ;;  %v7473_v47 = vld [vmem:[#allocation3 + $0x111] sm:$0xff] }
 0x430   : > { %v7475_v39 = vld [vmem:[#allocation3 + $0x110] sm:$0xff]  ;;  %3192 = vst.msk [vmem:[#allocation3 + $0x121] sm:$0xff] %vm3117_vm14, %v3103_v50  ;;  %v3003_v12 = vpop.f32.mrf.mxu3  ;;  %3372 = vrot.lane.b32.xlu2 %v7473_v47, %s5748_s28 }
 0x431   : > { %v3046_v8 = vmul.f32 %v7217_v62, %v3003_v12  ;;  %v2976_v17 = vpop.f32.mrf.mxu1  ;;  %3257 = vst.msk [vmem:[#allocation4 + $0x98] sm:$0xff] %vm3117_vm14, %v7475_v39  ;;  %v3482_v55 = vld [vmem:[#allocation3 + $0x112] sm:$0xff]  ;;  %v3481_v2 = vld [vmem:[#allocation3 + $0x10a] sm:$0xff] }
 0x432   : > { %v3037_v56 = vmul.f32 %v7217_v62, %v2976_v17  ;;  %v3345_v3 = vpop.permute.xlu0 %3344  ;;  %3266 = vst.msk [vmem:[#allocation4 + $0xe0] sm:$0xff] %vm3117_vm14, %v7477_v42 }
 0x433   : > { %v3081_v4 = vadd.f32 %v7224_v18, %v3046_v8  ;;  %3436 = vst.msk [vmem:[#allocation4 + $0x28] sm:$0xff] %vm3430_vm1, %v3345_v3 }
 0x434   : > { %v3072_v10 = vadd.f32 %v7224_v18, %v3037_v56 }
 0x435   : > { %v3113_v35 = vmax.f32 %v3081_v4, 0.0 }
 0x436   : > { %v3104_v58 = vmax.f32 %v3072_v10, 0.0  ;;  %v7497_v11 = vld [vmem:[#allocation3 + $0x188] sm:$0xff] }
 0x437   : > { %3202 = vst.msk [vmem:[#allocation3 + $0x199] sm:$0xff] %vm3117_vm14, %v3113_v35  ;;  %v7493_v19 = vld [vmem:[#allocation3 + $0x121] sm:$0xff] }
 0x438   : > { %v7495_v14 = vld [vmem:[#allocation3 + $0x120] sm:$0xff]  ;;  %3193 = vst.msk [vmem:[#allocation3 + $0x129] sm:$0xff] %vm3117_vm14, %v3104_v58  ;;  %3374 = vrot.lane.b32.xlu0 %v7493_v19, %s5748_s28  ;;  %v3006_v16 = vpop.f32.mrf.mxu3 }
 0x439   : > { %v2979_v51 = vpop.f32.mrf.mxu1  ;;  %3258 = vst.msk [vmem:[#allocation4 + $0xa0] sm:$0xff] %vm3117_vm14, %v7495_v14  ;;  %v3047_v22 = vmul.f32 %v7217_v62, %v3006_v16 }
 0x43a   : > { %v3038_v24 = vmul.f32 %v7217_v62, %v2979_v51  ;;  %v3347_v13 = vpop.permute.xlu1 %3346  ;;  %3267 = vst.msk [vmem:[#allocation4 + $0xe8] sm:$0xff] %vm3117_vm14, %v7497_v11 }
 0x43b   : > { %3437 = vst.msk [vmem:[#allocation4 + $0x30] sm:$0xff] %vm3430_vm1, %v3347_v13  ;;  %v3082_v31 = vadd.f32 %v7224_v18, %v3047_v22 }
 0x43c   : > { %v3073_v38 = vadd.f32 %v7224_v18, %v3038_v24 }
 0x43d   : > { %v3114_v23 = vmax.f32 %v3082_v31, 0.0 }
 0x43e   : > { %v3105_v30 = vmax.f32 %v3073_v38, 0.0  ;;  %v7511_v32 = vld [vmem:[#allocation3 + $0x198] sm:$0xff] }
 0x43f   : > { %v7513_v21 = vld [vmem:[#allocation3 + $0x129] sm:$0xff]  ;;  %3268 = vst.msk [vmem:[#allocation4 + $0xf0] sm:$0xff] %vm3117_vm14, %v7511_v32 }
 0x440   : > { %3203 = vst.msk [vmem:[#allocation3 + $0x1a1] sm:$0xff] %vm3117_vm14, %v3114_v23  ;;  %3376 = vrot.lane.b32.xlu1 %v7513_v21, %s5748_s28  ;;  %v7520_v6 = vld [vmem:[#allocation3 + $0x128] sm:$0xff]  ;;  %v7568_v23 = vld [vmem:[#allocation3 + $0x171] sm:$0xff] }
 0x441   : > { %3194 = vst.msk [vmem:[#allocation3 + $0x139] sm:$0xff] %vm3117_vm14, %v3105_v30  ;;  %v2982_v41 = vpop.f32.mrf.mxu1  ;;  %v3483_v57 = vld [vmem:[#allocation3 + $0x122] sm:$0xff] }
 0x442   : > { %v3039_v44 = vmul.f32 %v7217_v62, %v2982_v41  ;;  %v3355_v46 = vpop.permute.xlu2 %3354  ;;  %3259 = vst.msk [vmem:[#allocation4 + $0xa8] sm:$0xff] %vm3117_vm14, %v7520_v6 }
 0x443   : > { %3441 = vst.msk [vmem:[#allocation4 + $0x50] sm:$0xff] %vm3430_vm1, %v3355_v46 }
 0x444   : > { %v3074_v63 = vadd.f32 %v7224_v18, %v3039_v44  ;;  %v3222_v44 = vld [vmem:[#allocation3 + $0xf0] sm:$0xff] }
 0x445   : > { %3254 = vst.msk [vmem:[#allocation4 + $0x80] sm:$0xff] %vm3117_vm14, %v3222_v44  ;;  %v3223_v44 = vld [vmem:[#allocation3 + $0xf8] sm:$0xff] }
 0x446   : > { %v3106_v43 = vmax.f32 %v3074_v63, 0.0  ;;  %v7583_v63 = vld [vmem:[#allocation3 + $0x181] sm:$0xff]  ;;  %3255 = vst.msk [vmem:[#allocation4 + $0x88] sm:$0xff] %vm3117_vm14, %v3223_v44 }
 0x447   : > { %v7533_v49 = vld [vmem:[#allocation3 + $0x1a0] sm:$0xff] }
 0x448   : > { %3195 = vst.msk [vmem:[#allocation3 + $0x141] sm:$0xff] %vm3117_vm14, %v3106_v43  ;;  %v7529_v7 = vld [vmem:[#allocation3 + $0x139] sm:$0xff] }
 0x449   : > { %v7531_v36 = vld [vmem:[#allocation3 + $0x138] sm:$0xff]  ;;  %3378 = vrot.lane.b32.xlu2 %v7529_v7, %s5748_s28  ;;  %v2985_v33 = vpop.f32.mrf.mxu1  ;;  %3269 = vst.msk [vmem:[#allocation4 + $0xf8] sm:$0xff] %vm3117_vm14, %v7533_v49 }
 0x44a   : > { %3260 = vst.msk [vmem:[#allocation4 + $0xb0] sm:$0xff] %vm3117_vm14, %v7531_v36  ;;  %v3040_v50 = vmul.f32 %v7217_v62, %v2985_v33  ;;  %v3351_v12 = vpop.permute.xlu0 %3350  ;;  %v7585_v43 = vld [vmem:[#allocation3 + $0x199] sm:$0xff] }
 0x44b   : > { %3439 = vst.msk [vmem:[#allocation4 + $0x40] sm:$0xff] %vm3430_vm1, %v3351_v12  ;;  %v3476_v44 = vld [vmem:[#allocation3 + $0x9a] sm:$0xff] }
 0x44c   : > { %v3075_v8 = vadd.f32 %v7224_v18, %v3040_v50 }
 0x44e   : > { %v3107_v17 = vmax.f32 %v3075_v8, 0.0 }
 0x44f   : > { %v7544_v56 = vld [vmem:[#allocation3 + $0x141] sm:$0xff] }
 0x450   : > { %3196 = vst.msk [vmem:[#allocation3 + $0x151] sm:$0xff] %vm3117_vm14, %v3107_v17  ;;  %3380 = vrot.lane.b32.xlu0 %v7544_v56, %s5748_s28  ;;  %v7549_v3 = vld [vmem:[#allocation3 + $0x140] sm:$0xff] }
 0x451   : > { %v2988_v4 = vpop.f32.mrf.mxu1  ;;  %3261 = vst.msk [vmem:[#allocation4 + $0xb8] sm:$0xff] %vm3117_vm14, %v7549_v3  ;;  %v3485_v34 = vld [vmem:[#allocation3 + $0x13a] sm:$0xff] }
 0x452   : > { %v3041_v0 = vmul.f32 %v7217_v62, %v2988_v4  ;;  %v3353_v10 = vpop.permute.xlu1 %3352  ;;  %v3464_v4 = vld [vmem:[#allocation3 + $0xa] sm:$0xff] }
 0x453   : > { %3440 = vst.msk [vmem:[#allocation4 + $0x48] sm:$0xff] %vm3430_vm1, %v3353_v10  ;;  %v7610_v10 = vld [vmem:[#allocation3 + $0x189] sm:$0xff] }
 0x454   : > { %v3076_v35 = vadd.f32 %v7224_v18, %v3041_v0  ;;  %v7605_v0 = vld [vmem:[#allocation3 + $0x1a1] sm:$0xff] }
 0x456   : > { %v3108_v58 = vmax.f32 %v3076_v35, 0.0  ;;  %v3463_v35 = vld [vmem:[#allocation3 + $0x2] sm:$0xff] }
 0x457   : > { %v7556_v16 = vld [vmem:[#allocation3 + $0x151] sm:$0xff] }
 0x458   : > { %v7558_v51 = vld [vmem:[#allocation3 + $0x150] sm:$0xff]  ;;  %3197 = vst.msk [vmem:[#allocation3 + $0x159] sm:$0xff] %vm3117_vm14, %v3108_v58  ;;  %3382 = vrot.lane.b32.xlu1 %v7556_v16, %s5748_s28 }
 0x459   : > { %v2991_v22 = vpop.f32.mrf.mxu1  ;;  %3262 = vst.msk [vmem:[#allocation4 + $0xc0] sm:$0xff] %vm3117_vm14, %v7558_v51  ;;  %v7614_v58 = vld [vmem:[#allocation3 + $0x32] sm:$0xff] }
 0x45a   : > { %v3042_v24 = vmul.f32 %v7217_v62, %v2991_v22  ;;  %v3361_v13 = vpop.permute.xlu2 %3360  ;;  %v7616_v22 = vld [vmem:[#allocation3 + $0x1a] sm:$0xff] }
 0x45b   : > { %3444 = vst.msk [vmem:[#allocation4 + $0x68] sm:$0xff] %vm3430_vm1, %v3361_v13  ;;  %v7624_v13 = vld [vmem:[#allocation3 + $0x52] sm:$0xff] }
 0x45c   : > { %v3077_v31 = vadd.f32 %v7224_v18, %v3042_v24 }
 0x45e   : > { %v3109_v38 = vmax.f32 %v3077_v31, 0.0  ;;  %v7626_v31 = vld [vmem:[#allocation3 + $0x3a] sm:$0xff] }
 0x45f   : > { %v7570_v30 = vld [vmem:[#allocation3 + $0x159] sm:$0xff] }
 0x460   : > { %3198 = vst.msk [vmem:[#allocation3 + $0x169] sm:$0xff] %vm3117_vm14, %v3109_v38  ;;  %3388 = vrot.lane.b32.xlu1 %v7568_v23, %s5748_s28  ;;  %3384 = vrot.lane.b32.xlu2 %v7570_v30, %s5748_s28  ;;  %v7577_v41 = vld [vmem:[#allocation3 + $0x158] sm:$0xff]  ;;  %v7632_v38 = vld [vmem:[#allocation3 + $0x22] sm:$0xff] }
 0x461   : > { %3263 = vst.msk [vmem:[#allocation4 + $0xc8] sm:$0xff] %vm3117_vm14, %v7577_v41 }
 0x462   : > { %v3357_v46 = vpop.permute.xlu0 %3356  ;;  %v3367_v17 = vpop.permute.xlu2 %3366 }
 0x463   : > { %3442 = vst.msk [vmem:[#allocation4 + $0x58] sm:$0xff] %vm3430_vm1, %v3357_v46 }
 0x464   : > { %3447 = vst.msk [vmem:[#allocation4 + $0x80] sm:$0xff] %vm3430_vm1, %v3367_v17  ;;  %v7640_v17 = vld [vmem:[#allocation3 + $0x62] sm:$0xff] }
 0x467   : > { %v7587_v33 = vld [vmem:[#allocation3 + $0x169] sm:$0xff] }
 0x468   : > { %v7589_v50 = vld [vmem:[#allocation3 + $0x170] sm:$0xff]  ;;  %3394 = vrot.lane.b32.xlu1 %v7585_v43, %s5748_s28  ;;  %3390 = vrot.lane.b32.xlu2 %v7583_v63, %s5748_s28  ;;  %v7597_v12 = vld [vmem:[#allocation3 + $0x168] sm:$0xff] }
 0x469   : > { %3265 = vst.msk [vmem:[#allocation4 + $0xd8] sm:$0xff] %vm3117_vm14, %v7589_v50  ;;  %3386 = vrot.lane.b32.xlu0 %v7587_v33, %s5748_s28 }
 0x46a   : > { %3264 = vst.msk [vmem:[#allocation4 + $0xd0] sm:$0xff] %vm3117_vm14, %v7597_v12  ;;  %v3359_v8 = vpop.permute.xlu1 %3358 }
 0x46b   : > { %3443 = vst.msk [vmem:[#allocation4 + $0x60] sm:$0xff] %vm3430_vm1, %v3359_v8  ;;  %v7638_v8 = vld [vmem:[#allocation3 + $0x7a] sm:$0xff] }
 0x470   : > { %3529 = vrot.lane.b32.xlu1 %v3464_v4, %s5750_s30  ;;  %3396 = vrot.lane.b32.xlu2 %v7605_v0, %s5748_s28  ;;  %v7646_v4 = vld [vmem:[#allocation3 + $0x4a] sm:$0xff] }
 0x471   : > { %3392 = vrot.lane.b32.xlu0 %v7610_v10, %s5748_s28  ;;  %s5755_s28 = smov 40  }
 0x478   : > { %3535 = vrot.lane.b32.xlu1 %v7614_v58, %s5750_s30  ;;  %3531 = vrot.lane.b32.xlu2 %v7616_v22, %s5750_s30 }
 0x479   : > { %3527 = vrot.lane.b32.xlu0 %v3463_v35, %s5750_s30 }
 0x47a   : > { %v3363_v24 = vpop.permute.xlu0 %3362 }
 0x47b   : > { %3445 = vst.msk [vmem:[#allocation4 + $0x70] sm:$0xff] %vm3430_vm1, %v3363_v24 }
 0x480   : > { %3541 = vrot.lane.b32.xlu1 %v7624_v13, %s5750_s30  ;;  %3537 = vrot.lane.b32.xlu2 %v7626_v31, %s5750_s30 }
 0x481   : > { %3533 = vrot.lane.b32.xlu0 %v7632_v38, %s5750_s30 }
 0x482   : > { %v3365_v46 = vpop.permute.xlu1 %3364  ;;  %v3369_v24 = vpop.permute.xlu0 %3368 }
 0x483   : > { %3446 = vst.msk [vmem:[#allocation4 + $0x78] sm:$0xff] %vm3430_vm1, %v3365_v46  ;;  %v7652_v46 = vld [vmem:[#allocation3 + $0x82] sm:$0xff] }
 0x484   : > { %3448 = vst.msk [vmem:[#allocation4 + $0x88] sm:$0xff] %vm3430_vm1, %v3369_v24 }
 0x488   : > { %3547 = vrot.lane.b32.xlu1 %v7638_v8, %s5750_s30  ;;  %3543 = vrot.lane.b32.xlu2 %v7640_v17, %s5750_s30 }
 0x489   : > { %3539 = vrot.lane.b32.xlu0 %v7646_v4, %s5750_s30 }
 0x48a   : > { %v3373_v35 = vpop.permute.xlu2 %3372 }
 0x48b   : > { %3450 = vst.msk [vmem:[#allocation4 + $0x98] sm:$0xff] %vm3430_vm1, %v3373_v35  ;;  %v7666_v35 = vld [vmem:[#allocation3 + $0x92] sm:$0xff] }
 0x490   : > { %3553 = vrot.lane.b32.xlu1 %v3476_v44, %s5750_s30  ;;  %3549 = vrot.lane.b32.xlu2 %v7652_v46, %s5750_s30  ;;  %v3480_v44 = vld [vmem:[#allocation3 + $0xfa] sm:$0xff] }
 0x491   : > { %3545 = vrot.lane.b32.xlu0 %v7657_v48, %s5750_s30 }
 0x498   : > { %3559 = vrot.lane.b32.xlu1 %v3479_v45, %s5750_s30  ;;  %3555 = vrot.lane.b32.xlu2 %v7661_v27, %s5750_s30 }
 0x499   : > { %3551 = vrot.lane.b32.xlu0 %v7666_v35, %s5750_s30 }
 0x49a   : > { %v3371_v24 = vpop.permute.xlu1 %3370 }
 0x49b   : > { %3449 = vst.msk [vmem:[#allocation4 + $0x90] sm:$0xff] %vm3430_vm1, %v3371_v24 }
 0x4a0   : > { %3565 = vrot.lane.b32.xlu1 %v3482_v55, %s5750_s30  ;;  %3561 = vrot.lane.b32.xlu2 %v3480_v44, %s5750_s30  ;;  %v3488_v55 = vld [vmem:[#allocation3 + $0x15a] sm:$0xff]  ;;  %v3486_v44 = vld [vmem:[#allocation3 + $0x142] sm:$0xff] }
 0x4a1   : > { %3557 = vrot.lane.b32.xlu0 %v3478_v52, %s5750_s30  ;;  %v3484_v52 = vld [vmem:[#allocation3 + $0x12a] sm:$0xff] }
 0x4a3   : > { %v3379_v45 = vpop.permute.xlu2 %3378 }
 0x4a4   : > { %3453 = vst.msk [vmem:[#allocation4 + $0xb0] sm:$0xff] %vm3430_vm1, %v3379_v45 }
 0x4a8   : > { %3571 = vrot.lane.b32.xlu1 %v3485_v34, %s5750_s30  ;;  %3567 = vrot.lane.b32.xlu2 %v3483_v57, %s5750_s30  ;;  %v3491_v34 = vld [vmem:[#allocation3 + $0x182] sm:$0xff]  ;;  %v3489_v57 = vld [vmem:[#allocation3 + $0x16a] sm:$0xff] }
 0x4a9   : > { %3563 = vrot.lane.b32.xlu0 %v3481_v2, %s5750_s30  ;;  %v3487_v2 = vld [vmem:[#allocation3 + $0x152] sm:$0xff] }
 0x4aa   : > { %v3375_v24 = vpop.permute.xlu0 %3374 }
 0x4ab   : > { %3451 = vst.msk [vmem:[#allocation4 + $0xa0] sm:$0xff] %vm3430_vm1, %v3375_v24 }
 0x4b0   : > { %3577 = vrot.lane.b32.xlu1 %v3488_v55, %s5750_s30  ;;  %3573 = vrot.lane.b32.xlu2 %v3486_v44, %s5750_s30  ;;  %v3494_v55 = vld [vmem:[#allocation3 + $0x1a2] sm:$0xff]  ;;  %v3492_v44 = vld [vmem:[#allocation3 + $0x18a] sm:$0xff] }
 0x4b1   : > { %3569 = vrot.lane.b32.xlu0 %v3484_v52, %s5750_s30  ;;  %v3490_v52 = vld [vmem:[#allocation3 + $0x172] sm:$0xff] }
 0x4b2   : > { %v3377_v45 = vpop.permute.xlu1 %3376 }
 0x4b3   : > { %3452 = vst.msk [vmem:[#allocation4 + $0xa8] sm:$0xff] %vm3430_vm1, %v3377_v45 }
 0x4b8   : > { %3583 = vrot.lane.b32.xlu1 %v3491_v34, %s5750_s30  ;;  %3579 = vrot.lane.b32.xlu2 %v3489_v57, %s5750_s30  ;;  %v3493_v34 = vld [vmem:[#allocation3 + $0x19a] sm:$0xff] }
 0x4b9   : > { %3575 = vrot.lane.b32.xlu0 %v3487_v2, %s5750_s30 }
 0x4ba   : > { %v3385_v24 = vpop.permute.xlu2 %3384 }
 0x4bb   : > { %3456 = vst.msk [vmem:[#allocation4 + $0xc8] sm:$0xff] %vm3430_vm1, %v3385_v24 }
 0x4c0   : > { %3589 = vrot.lane.b32.xlu1 %v3494_v55, %s5750_s30  ;;  %3585 = vrot.lane.b32.xlu2 %v3492_v44, %s5750_s30 }
 0x4c1   : > { %3581 = vrot.lane.b32.xlu0 %v3490_v52, %s5750_s30 }
 0x4c2   : > { %v3381_v45 = vpop.permute.xlu0 %3380  ;;  %v3391_v27 = vpop.permute.xlu2 %3390 }
 0x4c3   : > { %3454 = vst.msk [vmem:[#allocation4 + $0xb8] sm:$0xff] %vm3430_vm1, %v3381_v45 }
 0x4c4   : > { %3459 = vst.msk [vmem:[#allocation4 + $0xe0] sm:$0xff] %vm3430_vm1, %v3391_v27 }
 0x4c8   : > { %3724 = vrot.lane.b32.xlu1 %v7313_v1, %s5752_s13  ;;  %3720 = vrot.lane.b32.xlu2 %v7297_v5, %s5752_s13 }
 0x4c9   : > { %3587 = vrot.lane.b32.xlu0 %v3493_v34, %s5750_s30  ;;  %s5756_s30 = smov 48  }
 0x4ca   : > { %v3383_v57 = vpop.permute.xlu1 %3382  ;;  %v3397_v2 = vpop.permute.xlu2 %3396 }
 0x4cb   : > { %3455 = vst.msk [vmem:[#allocation4 + $0xc0] sm:$0xff] %vm3430_vm1, %v3383_v57  ;;  %v5719_v57 = vld [vmem:[%s7062_s26] ss:$0 sm:$0xff] }
 0x4cc   : > { %3462 = vst.msk [vmem:[#allocation4 + $0xf8] sm:$0xff] %vm3430_vm1, %v3397_v2 }
 0x4d0   : > { %3730 = vrot.lane.b32.xlu1 %v7345_v60, %s5752_s13  ;;  %3726 = vrot.lane.b32.xlu2 %v7325_v59, %s5752_s13 }
 0x4d1   : > { %3722 = vrot.lane.b32.xlu0 %v7303_v9, %s5752_s13 }
 0x4d2   : > { %v3389_v5 = vpop.permute.xlu1 %3388  ;;  %v3532_v1 = vpop.permute.xlu2 %3531 }
 0x4d3   : > { %3458 = vst.msk [vmem:[#allocation4 + $0xd8] sm:$0xff] %vm3430_vm1, %v3389_v5  ;;  %v7741_v5 = vld [vmem:[#allocation3 + $0xc8] sm:$0xff] }
 0x4d4   : > { %3626 = vst.msk [vmem:[#allocation4 + $0x10] sm:$0xff] %vm3623_vm2, %v3532_v1 }
 0x4d8   : > { %3736 = vrot.lane.b32.xlu1 %v7376_v20, %s5752_s13  ;;  %3732 = vrot.lane.b32.xlu2 %v7357_v61, %s5752_s13  ;;  %v3009_v61 = vpop.f32.mrf.mxu3 }
 0x4d9   : > { %3728 = vrot.lane.b32.xlu0 %v7335_v29, %s5752_s13  ;;  %v3048_v24 = vmul.f32 %v7217_v62, %v3009_v61  ;;  %v7796_v61 = vld [vmem:[#allocation3 + $0x39] sm:$0xff] }
 0x4da   : > { %v3395_v59 = vpop.permute.xlu1 %3394  ;;  %v3538_v60 = vpop.permute.xlu2 %3537 }
 0x4db   : > { %3461 = vst.msk [vmem:[#allocation4 + $0xf0] sm:$0xff] %vm3430_vm1, %v3395_v59  ;;  %v3387_v9 = vpop.permute.xlu0 %3386  ;;  %v3083_v44 = vadd.f32 %v7224_v18, %v3048_v24 }
 0x4dc   : > { %3629 = vst.msk [vmem:[#allocation4 + $0x28] sm:$0xff] %vm3623_vm2, %v3538_v60 }
 0x4dd   : > { %3457 = vst.msk [vmem:[#allocation4 + $0xd0] sm:$0xff] %vm3430_vm1, %v3387_v9  ;;  %v3849_v9 = vld [vmem:[#allocation3 + $0x19] sm:$0xff] }
 0x4e0   : > { %3742 = vrot.lane.b32.xlu1 %v7411_v53, %s5752_s13  ;;  %3738 = vrot.lane.b32.xlu2 %v7386_v40, %s5752_s13  ;;  %v3115_v53 = vmax.f32 %v3083_v44, 0.0  ;;  %v7727_v40 = vld [vmem:[#allocation3 + $0xc0] sm:$0xff] }
 0x4e1   : > { %3734 = vrot.lane.b32.xlu0 %v7368_v15, %s5752_s13  ;;  %v3012_v15 = vpop.f32.mrf.mxu3  ;;  %v7805_v44 = vld [vmem:[#allocation3 + $0x61] sm:$0xff] }
 0x4e2   : > { %v3530_v20 = vpop.permute.xlu1 %3529  ;;  %v3544_v27 = vpop.permute.xlu2 %3543  ;;  %3204 = vst.msk [vmem:[#allocation3 + $0x1b1] sm:$0xff] %vm3117_vm14, %v3115_v53  ;;  %v3049_v18 = vmul.f32 %v7217_v62, %v3012_v15  ;;  %v7807_v53 = vld [vmem:[#allocation3 + $0x49] sm:$0xff]  ;;  %v7813_v15 = vld [vmem:[#allocation3 + $0x31] sm:$0xff] }
 0x4e3   : > { %3625 = vst.msk [vmem:[#allocation4 + $0x8] sm:$0xff] %vm3623_vm2, %v3530_v20  ;;  %v3393_v55 = vpop.permute.xlu0 %3392  ;;  %v3850_v20 = vld [vmem:[#allocation3 + $0x21] sm:$0xff] }
 0x4e4   : > { %3632 = vst.msk [vmem:[#allocation4 + $0x40] sm:$0xff] %vm3623_vm2, %v3544_v27  ;;  %v3084_v2 = vadd.f32 %v5719_v57, %v3049_v18  ;;  %v7822_v57 = vld [vmem:[#allocation3 + $0x69] sm:$0xff] }
 0x4e5   : > { %3460 = vst.msk [vmem:[#allocation4 + $0xe8] sm:$0xff] %vm3430_vm1, %v3393_v55 }
 0x4e8   : > { %3748 = vrot.lane.b32.xlu1 %v7727_v40, %s5752_s13  ;;  %3744 = vrot.lane.b32.xlu2 %v7419_v54, %s5752_s13  ;;  %v3116_v54 = vmax.f32 %v3084_v2, 0.0  ;;  %v7828_v2 = vld [vmem:[#allocation3 + $0x51] sm:$0xff] }
 0x4e9   : > { %3740 = vrot.lane.b32.xlu0 %v7397_v26, %s5752_s13  ;;  %v3686_v60 = vld [vmem:[#allocation3 + $0x1b0] sm:$0xff] }
 0x4ea   : > { %v3536_v52 = vpop.permute.xlu1 %3535  ;;  %v3550_v45 = vpop.permute.xlu2 %3549  ;;  %3205 = vst.msk [vmem:[#allocation3 + $0x1b9] sm:$0xff] %vm3117_vm14, %v3116_v54 }
 0x4eb   : > { %3628 = vst.msk [vmem:[#allocation4 + $0x20] sm:$0xff] %vm3623_vm2, %v3536_v52  ;;  %v3528_v34 = vpop.permute.xlu0 %3527 }
 0x4ec   : > { %3635 = vst.msk [vmem:[#allocation4 + $0x58] sm:$0xff] %vm3623_vm2, %v3550_v45 }
 0x4ed   : > { %3624 = vst.msk [vmem:[#allocation4] sm:$0xff] %vm3623_vm2, %v3528_v34  ;;  %v7820_v34 = vld [vmem:[#allocation3 + $0x81] sm:$0xff] }
 0x4f0   : > { %3754 = vrot.lane.b32.xlu1 %v7475_v39, %s5752_s13  ;;  %3750 = vrot.lane.b32.xlu2 %v7741_v5, %s5752_s13 }
 0x4f1   : > { %3746 = vrot.lane.b32.xlu0 %v7429_v28, %s5752_s13  ;;  %v3687_v27 = vld [vmem:[#allocation3 + $0x1b8] sm:$0xff] }
 0x4f2   : > { %v3542_v62 = vpop.permute.xlu1 %3541  ;;  %v3556_v26 = vpop.permute.xlu2 %3555 }
 0x4f3   : > { %3631 = vst.msk [vmem:[#allocation4 + $0x38] sm:$0xff] %vm3623_vm2, %v3542_v62  ;;  %v3534_v1 = vpop.permute.xlu0 %3533 }
 0x4f4   : > { %3638 = vst.msk [vmem:[#allocation4 + $0x70] sm:$0xff] %vm3623_vm2, %v3556_v26 }
 0x4f5   : > { %3627 = vst.msk [vmem:[#allocation4 + $0x18] sm:$0xff] %vm3623_vm2, %v3534_v1  ;;  %v7835_v1 = vld [vmem:[#allocation3 + $0xa9] sm:$0xff] }
 0x4f8   : > { %3760 = vrot.lane.b32.xlu1 %v7531_v36, %s5752_s13  ;;  %3756 = vrot.lane.b32.xlu2 %v7495_v14, %s5752_s13 }
 0x4f9   : > { %3752 = vrot.lane.b32.xlu0 %v7459_v25, %s5752_s13 }
 0x4fa   : > { %v3548_v39 = vpop.permute.xlu1 %3547  ;;  %v3562_v28 = vpop.permute.xlu2 %3561 }
 0x4fb   : > { %3634 = vst.msk [vmem:[#allocation4 + $0x50] sm:$0xff] %vm3623_vm2, %v3548_v39  ;;  %v3540_v59 = vpop.permute.xlu0 %3539  ;;  %v7837_v39 = vld [vmem:[#allocation3 + $0x91] sm:$0xff] }
 0x4fc   : > { %3641 = vst.msk [vmem:[#allocation4 + $0x88] sm:$0xff] %vm3623_vm2, %v3562_v28  ;;  %v7843_v28 = vld [vmem:[#allocation3 + $0x79] sm:$0xff] }
 0x4fd   : > { %3630 = vst.msk [vmem:[#allocation4 + $0x30] sm:$0xff] %vm3623_vm2, %v3540_v59 }
 0x500   : > { %3766 = vrot.lane.b32.xlu1 %v7577_v41, %s5752_s13  ;;  %3762 = vrot.lane.b32.xlu2 %v7549_v3, %s5752_s13 }
 0x501   : > { %3758 = vrot.lane.b32.xlu0 %v7520_v6, %s5752_s13 }
 0x502   : > { %v3554_v14 = vpop.permute.xlu1 %3553  ;;  %v3568_v25 = vpop.permute.xlu2 %3567 }
 0x503   : > { %3637 = vst.msk [vmem:[#allocation4 + $0x68] sm:$0xff] %vm3623_vm2, %v3554_v14  ;;  %v3546_v36 = vpop.permute.xlu0 %3545 }
 0x504   : > { %3644 = vst.msk [vmem:[#allocation4 + $0xa0] sm:$0xff] %vm3623_vm2, %v3568_v25 }
 0x505   : > { %3633 = vst.msk [vmem:[#allocation4 + $0x48] sm:$0xff] %vm3623_vm2, %v3546_v36  ;;  %v7850_v36 = vld [vmem:[#allocation3 + $0xc9] sm:$0xff] }
 0x508   : > { %3772 = vrot.lane.b32.xlu1 %v7477_v42, %s5752_s13  ;;  %3768 = vrot.lane.b32.xlu2 %v7597_v12, %s5752_s13 }
 0x509   : > { %3764 = vrot.lane.b32.xlu0 %v7558_v51, %s5752_s13 }
 0x50a   : > { %v3560_v3 = vpop.permute.xlu1 %3559  ;;  %v3574_v6 = vpop.permute.xlu2 %3573 }
 0x50b   : > { %3640 = vst.msk [vmem:[#allocation4 + $0x80] sm:$0xff] %vm3623_vm2, %v3560_v3  ;;  %v3552_v41 = vpop.permute.xlu0 %3551  ;;  %v7852_v3 = vld [vmem:[#allocation3 + $0xb1] sm:$0xff] }
 0x50c   : > { %3647 = vst.msk [vmem:[#allocation4 + $0xb8] sm:$0xff] %vm3623_vm2, %v3574_v6  ;;  %v7858_v6 = vld [vmem:[#allocation3 + $0x99] sm:$0xff] }
 0x50d   : > { %3636 = vst.msk [vmem:[#allocation4 + $0x60] sm:$0xff] %vm3623_vm2, %v3552_v41 }
 0x510   : > { %3778 = vrot.lane.b32.xlu1 %v7533_v49, %s5752_s13  ;;  %3774 = vrot.lane.b32.xlu2 %v7497_v11, %s5752_s13 }
 0x511   : > { %3770 = vrot.lane.b32.xlu0 %v7589_v50, %s5752_s13 }
 0x512   : > { %v3566_v42 = vpop.permute.xlu1 %3565  ;;  %v3580_v51 = vpop.permute.xlu2 %3579 }
 0x513   : > { %3643 = vst.msk [vmem:[#allocation4 + $0x98] sm:$0xff] %vm3623_vm2, %v3566_v42  ;;  %v3558_v12 = vpop.permute.xlu0 %3557 }
 0x514   : > { %3650 = vst.msk [vmem:[#allocation4 + $0xd0] sm:$0xff] %vm3623_vm2, %v3580_v51 }
 0x515   : > { %3639 = vst.msk [vmem:[#allocation4 + $0x78] sm:$0xff] %vm3623_vm2, %v3558_v12  ;;  %v7869_v12 = vld [vmem:[#allocation3 + $0xc1] sm:$0xff] }
 0x518   : > { %3913 = vrot.lane.b32.xlu1 %v3849_v9, %s5754_s16  ;;  %3780 = vrot.lane.b32.xlu2 %v3686_v60, %s5752_s13 }
 0x519   : > { %3776 = vrot.lane.b32.xlu0 %v7511_v32, %s5752_s13 }
 0x51a   : > { %v3572_v11 = vpop.permute.xlu1 %3571  ;;  %v3586_v49 = vpop.permute.xlu2 %3585 }
 0x51b   : > { %3646 = vst.msk [vmem:[#allocation4 + $0xb0] sm:$0xff] %vm3623_vm2, %v3572_v11  ;;  %v3564_v50 = vpop.permute.xlu0 %3563 }
 0x51c   : > { %3653 = vst.msk [vmem:[#allocation4 + $0xe8] sm:$0xff] %vm3623_vm2, %v3586_v49 }
 0x51d   : > { %3642 = vst.msk [vmem:[#allocation4 + $0x90] sm:$0xff] %vm3623_vm2, %v3564_v50  ;;  %v7903_v50 = vld [vmem:[#allocation3 + $0x1b1] sm:$0xff] }
 0x520   : > { %3919 = vrot.lane.b32.xlu1 %v7796_v61, %s5754_s16  ;;  %3915 = vrot.lane.b32.xlu2 %v3850_v20, %s5754_s16  ;;  %v7914_v20 = vld [vmem:[#allocation3 + $0x1b9] sm:$0xff] }
 0x521   : > { %3782 = vrot.lane.b32.xlu0 %v3687_v27, %s5752_s13  ;;  %s5757_s13 = smov 56  }
 0x522   : > { %v3578_v32 = vpop.permute.xlu1 %3577  ;;  %v3721_v24 = vpop.permute.xlu2 %3720 }
 0x523   : > { %3649 = vst.msk [vmem:[#allocation4 + $0xc8] sm:$0xff] %vm3623_vm2, %v3578_v32  ;;  %v3570_v55 = vpop.permute.xlu0 %3569  ;;  %v4236_v32 = vld [vmem:[#allocation3 + $0x30] sm:$0xff] }
 0x524   : > { %3817 = vst.msk [vmem:[#allocation4] sm:$0xff] %vm3816_vm3, %v3721_v24 }
 0x525   : > { %3645 = vst.msk [vmem:[#allocation4 + $0xa8] sm:$0xff] %vm3623_vm2, %v3570_v55  ;;  %v4237_v55 = vld [vmem:[#allocation3 + $0x38] sm:$0xff] }
 0x528   : > { %3925 = vrot.lane.b32.xlu1 %v7805_v44, %s5754_s16  ;;  %3921 = vrot.lane.b32.xlu2 %v7807_v53, %s5754_s16 }
 0x529   : > { %3917 = vrot.lane.b32.xlu0 %v7813_v15, %s5754_s16 }
 0x52a   : > { %v3584_v52 = vpop.permute.xlu1 %3583  ;;  %v3727_v45 = vpop.permute.xlu2 %3726 }
 0x52b   : > { %3652 = vst.msk [vmem:[#allocation4 + $0xe0] sm:$0xff] %vm3623_vm2, %v3584_v52  ;;  %v3576_v18 = vpop.permute.xlu0 %3575 }
 0x52c   : > { %3820 = vst.msk [vmem:[#allocation4 + $0x18] sm:$0xff] %vm3816_vm3, %v3727_v45 }
 0x52d   : > { %3648 = vst.msk [vmem:[#allocation4 + $0xc0] sm:$0xff] %vm3623_vm2, %v3576_v18 }
 0x530   : > { %3931 = vrot.lane.b32.xlu1 %v7820_v34, %s5754_s16  ;;  %3927 = vrot.lane.b32.xlu2 %v7822_v57, %s5754_s16 }
 0x531   : > { %3923 = vrot.lane.b32.xlu0 %v7828_v2, %s5754_s16 }
 0x532   : > { %v3590_v54 = vpop.permute.xlu1 %3589  ;;  %v3733_v62 = vpop.permute.xlu2 %3732 }
 0x533   : > { %3655 = vst.msk [vmem:[#allocation4 + $0xf8] sm:$0xff] %vm3623_vm2, %v3590_v54  ;;  %v3582_v26 = vpop.permute.xlu0 %3581 }
 0x534   : > { %3823 = vst.msk [vmem:[#allocation4 + $0x30] sm:$0xff] %vm3816_vm3, %v3733_v62  ;;  %v4239_v62 = vld [vmem:[#allocation3 + $0x50] sm:$0xff] }
 0x535   : > { %3651 = vst.msk [vmem:[#allocation4 + $0xd8] sm:$0xff] %vm3623_vm2, %v3582_v26 }
 0x538   : > { %3937 = vrot.lane.b32.xlu1 %v7835_v1, %s5754_s16  ;;  %3933 = vrot.lane.b32.xlu2 %v7837_v39, %s5754_s16 }
 0x539   : > { %3929 = vrot.lane.b32.xlu0 %v7843_v28, %s5754_s16 }
 0x53a   : > { %v3725_v59 = vpop.permute.xlu1 %3724  ;;  %v3739_v14 = vpop.permute.xlu2 %3738 }
 0x53b   : > { %3819 = vst.msk [vmem:[#allocation4 + $0x10] sm:$0xff] %vm3816_vm3, %v3725_v59  ;;  %v3588_v25 = vpop.permute.xlu0 %3587  ;;  %v4240_v59 = vld [vmem:[#allocation3 + $0x60] sm:$0xff] }
 0x53c   : > { %3826 = vst.msk [vmem:[#allocation4 + $0x48] sm:$0xff] %vm3816_vm3, %v3739_v14 }
 0x53d   : > { %3654 = vst.msk [vmem:[#allocation4 + $0xf0] sm:$0xff] %vm3623_vm2, %v3588_v25 }
 0x540   : > { %3943 = vrot.lane.b32.xlu1 %v7850_v36, %s5754_s16  ;;  %3939 = vrot.lane.b32.xlu2 %v7852_v3, %s5754_s16 }
 0x541   : > { %3935 = vrot.lane.b32.xlu0 %v7858_v6, %s5754_s16 }
 0x542   : > { %v3731_v41 = vpop.permute.xlu1 %3730  ;;  %v3745_v42 = vpop.permute.xlu2 %3744 }
 0x543   : > { %3822 = vst.msk [vmem:[#allocation4 + $0x28] sm:$0xff] %vm3816_vm3, %v3731_v41  ;;  %v3723_v51 = vpop.permute.xlu0 %3722 }
 0x544   : > { %3829 = vst.msk [vmem:[#allocation4 + $0x60] sm:$0xff] %vm3816_vm3, %v3745_v42 }
 0x545   : > { %3818 = vst.msk [vmem:[#allocation4 + $0x8] sm:$0xff] %vm3816_vm3, %v3723_v51  ;;  %v4242_v51 = vld [vmem:[#allocation3 + $0x78] sm:$0xff] }
 0x548   : > { %3949 = vrot.lane.b32.xlu1 %v7493_v19, %s5754_s16  ;;  %3945 = vrot.lane.b32.xlu2 %v7457_v37, %s5754_s16 }
 0x549   : > { %3941 = vrot.lane.b32.xlu0 %v7869_v12, %s5754_s16 }
 0x54a   : > { %v3737_v60 = vpop.permute.xlu1 %3736  ;;  %v3751_v9 = vpop.permute.xlu2 %3750 }
 0x54b   : > { %3825 = vst.msk [vmem:[#allocation4 + $0x40] sm:$0xff] %vm3816_vm3, %v3737_v60  ;;  %v3729_v11 = vpop.permute.xlu0 %3728 }
 0x54c   : > { %3832 = vst.msk [vmem:[#allocation4 + $0x78] sm:$0xff] %vm3816_vm3, %v3751_v9 }
 0x54d   : > { %3821 = vst.msk [vmem:[#allocation4 + $0x20] sm:$0xff] %vm3816_vm3, %v3729_v11 }
 0x550   : > { %3955 = vrot.lane.b32.xlu1 %v7544_v56, %s5754_s16  ;;  %3951 = vrot.lane.b32.xlu2 %v7513_v21, %s5754_s16 }
 0x551   : > { %3947 = vrot.lane.b32.xlu0 %v7473_v47, %s5754_s16 }
 0x552   : > { %v3743_v37 = vpop.permute.xlu1 %3742  ;;  %v3757_v19 = vpop.permute.xlu2 %3756 }
 0x553   : > { %3828 = vst.msk [vmem:[#allocation4 + $0x58] sm:$0xff] %vm3816_vm3, %v3743_v37  ;;  %v3735_v49 = vpop.permute.xlu0 %3734 }
 0x554   : > { %3835 = vst.msk [vmem:[#allocation4 + $0x90] sm:$0xff] %vm3816_vm3, %v3757_v19  ;;  %v4243_v19 = vld [vmem:[#allocation3 + $0x80] sm:$0xff] }
 0x555   : > { %3824 = vst.msk [vmem:[#allocation4 + $0x38] sm:$0xff] %vm3816_vm3, %v3735_v49 }
 0x558   : > { %3961 = vrot.lane.b32.xlu1 %v7587_v33, %s5754_s16  ;;  %3957 = vrot.lane.b32.xlu2 %v7556_v16, %s5754_s16 }
 0x559   : > { %3953 = vrot.lane.b32.xlu0 %v7529_v7, %s5754_s16 }
 0x55a   : > { %v3749_v21 = vpop.permute.xlu1 %3748  ;;  %v3763_v47 = vpop.permute.xlu2 %3762 }
 0x55b   : > { %3831 = vst.msk [vmem:[#allocation4 + $0x70] sm:$0xff] %vm3816_vm3, %v3749_v21  ;;  %v3741_v56 = vpop.permute.xlu0 %3740 }
 0x55c   : > { %3838 = vst.msk [vmem:[#allocation4 + $0xa8] sm:$0xff] %vm3816_vm3, %v3763_v47 }
 0x55d   : > { %3827 = vst.msk [vmem:[#allocation4 + $0x50] sm:$0xff] %vm3816_vm3, %v3741_v56 }
 0x560   : > { %3967 = vrot.lane.b32.xlu1 %v7610_v10, %s5754_s16  ;;  %3963 = vrot.lane.b32.xlu2 %v7568_v23, %s5754_s16 }
 0x561   : > { %3959 = vrot.lane.b32.xlu0 %v7570_v30, %s5754_s16 }
 0x562   : > { %v3755_v16 = vpop.permute.xlu1 %3754  ;;  %v3769_v7 = vpop.permute.xlu2 %3768 }
 0x563   : > { %3834 = vst.msk [vmem:[#allocation4 + $0x88] sm:$0xff] %vm3816_vm3, %v3755_v16  ;;  %v3747_v33 = vpop.permute.xlu0 %3746 }
 0x564   : > { %3841 = vst.msk [vmem:[#allocation4 + $0xc0] sm:$0xff] %vm3816_vm3, %v3769_v7 }
 0x565   : > { %3830 = vst.msk [vmem:[#allocation4 + $0x68] sm:$0xff] %vm3816_vm3, %v3747_v33  ;;  %v4822_v33 = vld [vmem:[%s8021_s19 + $0x38] sm:$0xff] }
 0x568   : > { %3973 = vrot.lane.b32.xlu1 %v7903_v50, %s5754_s16  ;;  %3969 = vrot.lane.b32.xlu2 %v7585_v43, %s5754_s16 }
 0x569   : > { %3965 = vrot.lane.b32.xlu0 %v7583_v63, %s5754_s16 }
 0x56a   : > { %v3761_v23 = vpop.permute.xlu1 %3760  ;;  %v3775_v30 = vpop.permute.xlu2 %3774 }
 0x56b   : > { %3837 = vst.msk [vmem:[#allocation4 + $0xa0] sm:$0xff] %vm3816_vm3, %v3761_v23  ;;  %v3753_v10 = vpop.permute.xlu0 %3752  ;;  %v4821_v23 = vld [vmem:[%s8021_s19 + $0x30] sm:$0xff] }
 0x56c   : > { %3844 = vst.msk [vmem:[#allocation4 + $0xd8] sm:$0xff] %vm3816_vm3, %v3775_v30  ;;  %v4820_v30 = vld [vmem:[%s8021_s19 + $0x28] sm:$0xff] }
 0x56d   : > { %3833 = vst.msk [vmem:[#allocation4 + $0x80] sm:$0xff] %vm3816_vm3, %v3753_v10  ;;  %v4819_v10 = vld [vmem:[%s8021_s19 + $0x20] sm:$0xff] }
 0x570   : > { %4108 = vrot.lane.b32.xlu1 %v7632_v38, %s5755_s28  ;;  %3975 = vrot.lane.b32.xlu2 %v7914_v20, %s5754_s16 }
 0x571   : > { %3971 = vrot.lane.b32.xlu0 %v7605_v0, %s5754_s16  ;;  %s5758_s16 = smov 64  }
 0x572   : > { %v3767_v63 = vpop.permute.xlu1 %3766  ;;  %v3781_v43 = vpop.permute.xlu2 %3780 }
 0x573   : > { %3840 = vst.msk [vmem:[#allocation4 + $0xb8] sm:$0xff] %vm3816_vm3, %v3767_v63  ;;  %v3759_v27 = vpop.permute.xlu0 %3758 }
 0x574   : > { %3847 = vst.msk [vmem:[#allocation4 + $0xf0] sm:$0xff] %vm3816_vm3, %v3781_v43 }
 0x575   : > { %3836 = vst.msk [vmem:[#allocation4 + $0x98] sm:$0xff] %vm3816_vm3, %v3759_v27 }
 0x578   : > { %4300 = vrot.lane.b32.xlu1 %v4236_v32, %s5756_s30  ;;  %4110 = vrot.lane.b32.xlu2 %v7614_v58, %s5755_s28  ;;  %v4246_v32 = vld [vmem:[#allocation3 + $0xa8] sm:$0xff] }
 0x579   : > { %4106 = vrot.lane.b32.xlu0 %v7616_v22, %s5755_s28 }
 0x57a   : > { %v3773_v0 = vpop.permute.xlu1 %3772  ;;  %v3916_v38 = vpop.permute.xlu2 %3915 }
 0x57b   : > { %3843 = vst.msk [vmem:[#allocation4 + $0xd0] sm:$0xff] %vm3816_vm3, %v3773_v0  ;;  %v3765_v24 = vpop.permute.xlu0 %3764  ;;  %v4631_v0 = vld [vmem:[#allocation3 + $0x9a] sm:$0xff] }
 0x57c   : > { %4011 = vst.msk [vmem:[#allocation4 + $0x8] sm:$0xff] %vm4009_vm4, %v3916_v38  ;;  %v4816_v38 = vld [vmem:[%s8021_s19 + $0x8] sm:$0xff] }
 0x57d   : > { %3839 = vst.msk [vmem:[#allocation4 + $0xb0] sm:$0xff] %vm3816_vm3, %v3765_v24 }
 0x580   : > { %4302 = vrot.lane.b32.xlu1 %v4237_v55, %s5756_s30  ;;  %4493 = vrot.lane.b32.xlu2 %v7813_v15, %s5757_s13 }
 0x581   : > { %4112 = vrot.lane.b32.xlu0 %v7626_v31, %s5755_s28 }
 0x582   : > { %v3779_v22 = vpop.permute.xlu1 %3778  ;;  %v3922_v52 = vpop.permute.xlu2 %3921 }
 0x583   : > { %3846 = vst.msk [vmem:[#allocation4 + $0xe8] sm:$0xff] %vm3816_vm3, %v3779_v22  ;;  %v3771_v45 = vpop.permute.xlu0 %3770  ;;  %v4815_v22 = vld [vmem:[%s8021_s19] sm:$0xff] }
 0x584   : > { %4014 = vst.msk [vmem:[#allocation4 + $0x20] sm:$0xff] %vm4009_vm4, %v3922_v52 }
 0x585   : > { %3842 = vst.msk [vmem:[#allocation4 + $0xc8] sm:$0xff] %vm3816_vm3, %v3771_v45 }
 0x588   : > { %4304 = vrot.lane.b32.xlu1 %v7335_v29, %s5756_s30  ;;  %4495 = vrot.lane.b32.xlu2 %v7796_v61, %s5757_s13 }
 0x589   : > { %4686 = vrot.lane.b32.xlu0 %v7614_v58, %s5758_s16 }
 0x58a   : > { %v3914_v15 = vpop.permute.xlu1 %3913  ;;  %v3928_v18 = vpop.permute.xlu2 %3927 }
 0x58b   : > { %4010 = vst.msk [vmem:[#allocation4] sm:$0xff] %vm4009_vm4, %v3914_v15  ;;  %v3777_v54 = vpop.permute.xlu0 %3776 }
 0x58c   : > { %4017 = vst.msk [vmem:[#allocation4 + $0x38] sm:$0xff] %vm4009_vm4, %v3928_v18 }
 0x58d   : > { %3845 = vst.msk [vmem:[#allocation4 + $0xe0] sm:$0xff] %vm3816_vm3, %v3777_v54  ;;  %v4633_v54 = vld [vmem:[#allocation3 + $0xb2] sm:$0xff] }
 0x590   : > { %4306 = vrot.lane.b32.xlu1 %v4239_v62, %s5756_s30  ;;  %4497 = vrot.lane.b32.xlu2 %v7807_v53, %s5757_s13 }
 0x591   : > { %4688 = vrot.lane.b32.xlu0 %v7626_v31, %s5758_s16 }
 0x592   : > { %v3920_v29 = vpop.permute.xlu1 %3919  ;;  %v3934_v58 = vpop.permute.xlu2 %3933 }
 0x593   : > { %4013 = vst.msk [vmem:[#allocation4 + $0x18] sm:$0xff] %vm4009_vm4, %v3920_v29  ;;  %v3783_v61 = vpop.permute.xlu0 %3782 }
 0x594   : > { %4020 = vst.msk [vmem:[#allocation4 + $0x50] sm:$0xff] %vm4009_vm4, %v3934_v58 }
 0x595   : > { %3848 = vst.msk [vmem:[#allocation4 + $0xf8] sm:$0xff] %vm3816_vm3, %v3783_v61 }
 0x598   : > { %4114 = vrot.lane.b32.xlu1 %v7646_v4, %s5755_s28  ;;  %4499 = vrot.lane.b32.xlu2 %v7828_v2, %s5757_s13 }
 0x599   : > { %4690 = vrot.lane.b32.xlu0 %v7646_v4, %s5758_s16 }
 0x59a   : > { %v3926_v53 = vpop.permute.xlu1 %3925  ;;  %v3940_v31 = vpop.permute.xlu2 %3939 }
 0x59b   : > { %4016 = vst.msk [vmem:[#allocation4 + $0x30] sm:$0xff] %vm4009_vm4, %v3926_v53  ;;  %v3918_v26 = vpop.permute.xlu0 %3917 }
 0x59c   : > { %4023 = vst.msk [vmem:[#allocation4 + $0x68] sm:$0xff] %vm4009_vm4, %v3940_v31  ;;  %v4635_v31 = vld [vmem:[#allocation3 + $0xca] sm:$0xff] }
 0x59d   : > { %4012 = vst.msk [vmem:[#allocation4 + $0x10] sm:$0xff] %vm4009_vm4, %v3918_v26 }
 0x5a0   : > { %4694 = vrot.lane.b32.xlu1 %v7640_v17, %s5758_s16  ;;  %4308 = vrot.lane.b32.xlu2 %v4240_v59, %s5756_s30 }
 0x5a1   : > { %4692 = vrot.lane.b32.xlu0 %v7624_v13, %s5758_s16 }
 0x5a2   : > { %v3932_v2 = vpop.permute.xlu1 %3931  ;;  %v3946_v4 = vpop.permute.xlu2 %3945 }
 0x5a3   : > { %4019 = vst.msk [vmem:[#allocation4 + $0x48] sm:$0xff] %vm4009_vm4, %v3932_v2  ;;  %v3924_v14 = vpop.permute.xlu0 %3923 }
 0x5a4   : > { %4026 = vst.msk [vmem:[#allocation4 + $0x80] sm:$0xff] %vm4009_vm4, %v3946_v4 }
 0x5a5   : > { %4015 = vst.msk [vmem:[#allocation4 + $0x28] sm:$0xff] %vm4009_vm4, %v3924_v14  ;;  %v4443_v14 = vld [vmem:[#allocation3 + $0xd9] sm:$0xff] }
 0x5a8   : > { %4503 = vrot.lane.b32.xlu1 %v7822_v57, %s5757_s13  ;;  %4116 = vrot.lane.b32.xlu2 %v7624_v13, %s5755_s28  ;;  %v4241_v57 = vld [vmem:[#allocation3 + $0x68] sm:$0xff] }
 0x5a9   : > { %4501 = vrot.lane.b32.xlu0 %v7805_v44, %s5757_s13 }
 0x5aa   : > { %v3938_v25 = vpop.permute.xlu1 %3937  ;;  %v3952_v41 = vpop.permute.xlu2 %3951 }
 0x5ab   : > { %4022 = vst.msk [vmem:[#allocation4 + $0x60] sm:$0xff] %vm4009_vm4, %v3938_v25  ;;  %v3930_v42 = vpop.permute.xlu0 %3929 }
 0x5ac   : > { %4029 = vst.msk [vmem:[#allocation4 + $0x98] sm:$0xff] %vm4009_vm4, %v3952_v41 }
 0x5ad   : > { %4018 = vst.msk [vmem:[#allocation4 + $0x40] sm:$0xff] %vm4009_vm4, %v3930_v42 }
 0x5b0   : > { %4312 = vrot.lane.b32.xlu1 %v4242_v51, %s5756_s30  ;;  %4696 = vrot.lane.b32.xlu2 %v7657_v48, %s5758_s16  ;;  %v4251_v51 = vld [vmem:[#allocation3 + $0xe0] sm:$0xff] }
 0x5b1   : > { %4310 = vrot.lane.b32.xlu0 %v4241_v57, %s5756_s30  ;;  %v4636_v57 = vld [vmem:[#allocation3 + $0xda] sm:$0xff] }
 0x5b2   : > { %v3944_v13 = vpop.permute.xlu1 %3943  ;;  %v3958_v44 = vpop.permute.xlu2 %3957 }
 0x5b3   : > { %4025 = vst.msk [vmem:[#allocation4 + $0x78] sm:$0xff] %vm4009_vm4, %v3944_v13  ;;  %v3936_v60 = vpop.permute.xlu0 %3935  ;;  %v4250_v13 = vld [vmem:[#allocation3 + $0xd8] sm:$0xff] }
 0x5b4   : > { %4032 = vst.msk [vmem:[#allocation4 + $0xb0] sm:$0xff] %vm4009_vm4, %v3958_v44 }
 0x5b5   : > { %4021 = vst.msk [vmem:[#allocation4 + $0x58] sm:$0xff] %vm4009_vm4, %v3936_v60 }
 0x5b8   : > { %4120 = vrot.lane.b32.xlu1 %v7657_v48, %s5755_s28  ;;  %4505 = vrot.lane.b32.xlu2 %v7843_v28, %s5757_s13 }
 0x5b9   : > { %4118 = vrot.lane.b32.xlu0 %v7640_v17, %s5755_s28 }
 0x5ba   : > { %v3950_v9 = vpop.permute.xlu1 %3949  ;;  %v3964_v11 = vpop.permute.xlu2 %3963 }
 0x5bb   : > { %4028 = vst.msk [vmem:[#allocation4 + $0x90] sm:$0xff] %vm4009_vm4, %v3950_v9  ;;  %v3942_v37 = vpop.permute.xlu0 %3941 }
 0x5bc   : > { %4035 = vst.msk [vmem:[#allocation4 + $0xc8] sm:$0xff] %vm4009_vm4, %v3964_v11  ;;  %v4444_v11 = vld [vmem:[#allocation3 + $0xe1] sm:$0xff] }
 0x5bd   : > { %4024 = vst.msk [vmem:[#allocation4 + $0x70] sm:$0xff] %vm4009_vm4, %v3942_v37  ;;  %v4058_v37 = vld [vmem:[#allocation3 + $0x10a] sm:$0xff] }
 0x5c0   : > { %4700 = vrot.lane.b32.xlu1 %v7652_v46, %s5758_s16  ;;  %4314 = vrot.lane.b32.xlu2 %v4243_v19, %s5756_s30 }
 0x5c1   : > { %4698 = vrot.lane.b32.xlu0 %v7638_v8, %s5758_s16 }
 0x5c2   : > { %v3956_v48 = vpop.permute.xlu1 %3955  ;;  %v3970_v17 = vpop.permute.xlu2 %3969 }
 0x5c3   : > { %4031 = vst.msk [vmem:[#allocation4 + $0xa8] sm:$0xff] %vm4009_vm4, %v3956_v48  ;;  %v3948_v28 = vpop.permute.xlu0 %3947 }
 0x5c4   : > { %4038 = vst.msk [vmem:[#allocation4 + $0xe0] sm:$0xff] %vm4009_vm4, %v3970_v17 }
 0x5c5   : > { %4027 = vst.msk [vmem:[#allocation4 + $0x88] sm:$0xff] %vm4009_vm4, %v3948_v28 }
 0x5c8   : > { %4509 = vrot.lane.b32.xlu1 %v7837_v39, %s5757_s13  ;;  %4122 = vrot.lane.b32.xlu2 %v7638_v8, %s5755_s28  ;;  %v4245_v8 = vld [vmem:[#allocation3 + $0x98] sm:$0xff]  ;;  %v4823_v39 = vld [vmem:[%s8021_s19 + $0x40] sm:$0xff] }
 0x5c9   : > { %4507 = vrot.lane.b32.xlu0 %v7820_v34, %s5757_s13  ;;  %v4244_v34 = vld [vmem:[#allocation3 + $0x90] sm:$0xff]  ;;  %4962 = vmatpush.msra.mxu2 %v4823_v39 }
 0x5ca   : > { %v3962_v49 = vpop.permute.xlu1 %3961  ;;  %v3976_v21 = vpop.permute.xlu2 %3975  ;;  %5665 = vmatpush.msra.mxu3 %v4823_v39 }
 0x5cb   : > { %4034 = vst.msk [vmem:[#allocation4 + $0xc0] sm:$0xff] %vm4009_vm4, %v3962_v49  ;;  %v3954_v47 = vpop.permute.xlu0 %3953  ;;  %4963 = vmatpush.msra.mxu2 %v4822_v33  ;;  %v4637_v49 = vld [vmem:[#allocation3 + $0xe2] sm:$0xff] }
 0x5cc   : > { %4041 = vst.msk [vmem:[#allocation4 + $0xf8] sm:$0xff] %vm4009_vm4, %v3976_v21  ;;  %5666 = vmatpush.msra.mxu3 %v4822_v33  ;;  %v4260_v21 = vld [vmem:[#allocation3 + $0x180] sm:$0xff] }
 0x5cd   : > { %4030 = vst.msk [vmem:[#allocation4 + $0xa0] sm:$0xff] %vm4009_vm4, %v3954_v47  ;;  %4964 = vmatpush.msra.mxu2 %v4821_v23  ;;  %v8111_v47 = vld [vmem:[#allocation3 + $0x16a] sm:$0xff]  ;;  %v4252_v33 = vld [vmem:[#allocation3 + $0x120] sm:$0xff] }
 0x5ce   : > { %5667 = vmatpush.msra.mxu3 %v4821_v23 }
 0x5cf   : > { %4965 = vmatpush.msra.mxu2 %v4820_v30 }
 0x5d0   : > { %4318 = vrot.lane.b32.xlu1 %v4245_v8, %s5756_s30  ;;  %4702 = vrot.lane.b32.xlu2 %v7666_v35, %s5758_s16 }
 0x5d1   : > { %4316 = vrot.lane.b32.xlu0 %v4244_v34, %s5756_s30  ;;  %5668 = vmatpush.msra.mxu3 %v4820_v30 }
 0x5d2   : > { %v3968_v56 = vpop.permute.xlu1 %3967  ;;  %v4111_v16 = vpop.permute.xlu2 %4110  ;;  %4966 = vmatpush.msra.mxu2 %v4819_v10 }
 0x5d3   : > { %4037 = vst.msk [vmem:[#allocation4 + $0xd8] sm:$0xff] %vm4009_vm4, %v3968_v56  ;;  %v3960_v7 = vpop.permute.xlu0 %3959  ;;  %5669 = vmatpush.msra.mxu3 %v4819_v10 }
 0x5d4   : > { %4205 = vst.msk [vmem:[#allocation4 + $0x10] sm:$0xff] %vm4202_vm5, %v4111_v16  ;;  %v4638_v16 = vld [vmem:[#allocation3 + $0x122] sm:$0xff] }
 0x5d5   : > { %4033 = vst.msk [vmem:[#allocation4 + $0xb8] sm:$0xff] %vm4009_vm4, %v3960_v7  ;;  %v4445_v7 = vld [vmem:[#allocation3 + $0x121] sm:$0xff] }
 0x5d8   : > { %4126 = vrot.lane.b32.xlu1 %v7666_v35, %s5755_s28  ;;  %4511 = vrot.lane.b32.xlu2 %v7858_v6, %s5757_s13  ;;  %v4818_v35 = vld [vmem:[%s8021_s19 + $0x18] sm:$0xff]  ;;  %v4817_v6 = vld [vmem:[%s8021_s19 + $0x10] sm:$0xff] }
 0x5d9   : > { %4124 = vrot.lane.b32.xlu0 %v7652_v46, %s5755_s28  ;;  %4967 = vmatpush.msra.mxu2 %v4818_v35  ;;  %v8827_v46 = vld [vmem:[#allocation13_spill] sm:$0xff] }
 0x5da   : > { %v3974_v63 = vpop.permute.xlu1 %3973  ;;  %v4494_v43 = vpop.permute.xlu2 %4493  ;;  %5670 = vmatpush.msra.mxu3 %v4818_v35  ;;  %v4453_v35 = vld [vmem:[#allocation3 + $0x181] sm:$0xff] }
 0x5db   : > { %4040 = vst.msk [vmem:[#allocation4 + $0xf0] sm:$0xff] %vm4009_vm4, %v3974_v63  ;;  %v3966_v27 = vpop.permute.xlu0 %3965  ;;  %4968 = vmatpush.msra.mxu2 %v4817_v6 }
 0x5dc   : > { %4036 = vst.msk [vmem:[#allocation4 + $0xd0] sm:$0xff] %vm4009_vm4, %v3966_v27  ;;  %5671 = vmatpush.msra.mxu3 %v4817_v6  ;;  %v4646_v27 = vld [vmem:[#allocation3 + $0x182] sm:$0xff] }
 0x5dd   : > { %4969 = vmatpush.msra.mxu2 %v4816_v38 }
 0x5de   : > { %5672 = vmatpush.msra.mxu3 %v4816_v38  ;;  %v4253_v38 = vld [vmem:[#allocation3 + $0x128] sm:$0xff] }
 0x5df   : > { %4970 = vmatpush.msra.mxu2 %v4815_v22 }
 0x5e0   : > { %4706 = vrot.lane.b32.xlu1 %v8827_v46, %s5758_s16  ;;  %4320 = vrot.lane.b32.xlu2 %v4246_v32, %s5756_s30 }
 0x5e1   : > { %4704 = vrot.lane.b32.xlu0 %v4631_v0, %s5758_s16  ;;  %5673 = vmatpush.msra.mxu3 %v4815_v22 }
 0x5e2   : > { %v4109_v24 = vpop.permute.xlu1 %4108  ;;  %v4496_v55 = vpop.permute.xlu2 %4495 }
 0x5e3   : > { %4204 = vst.msk [vmem:[#allocation4 + $0x8] sm:$0xff] %vm4202_vm5, %v4109_v24  ;;  %v3972_v52 = vpop.permute.xlu0 %3971  ;;  %v4059_v24 = vld [vmem:[#allocation3 + $0x112] sm:$0xff] }
 0x5e4   : > { %4039 = vst.msk [vmem:[#allocation4 + $0xe8] sm:$0xff] %vm4009_vm4, %v3972_v52 }
 0x5e8   : > { %4515 = vrot.lane.b32.xlu1 %v7852_v3, %s5757_s13  ;;  %4128 = vrot.lane.b32.xlu2 %v4631_v0, %s5755_s28  ;;  %v4247_v3 = vld [vmem:[#allocation3 + $0xb0] sm:$0xff] }
 0x5e9   : > { %4513 = vrot.lane.b32.xlu0 %v7835_v1, %s5757_s13  ;;  %v4446_v0 = vld [vmem:[#allocation3 + $0x129] sm:$0xff] }
 0x5ea   : > { %v4301_v45 = vpop.permute.xlu1 %4300  ;;  %v4498_v15 = vpop.permute.xlu2 %4497 }
 0x5eb   : > { %v4107_v18 = vpop.permute.xlu0 %4106 }
 0x5ec   : > { %4203 = vst.msk [vmem:[#allocation4] sm:$0xff] %vm4202_vm5, %v4107_v18  ;;  %v4454_v18 = vld [vmem:[#allocation3 + $0x189] sm:$0xff] }
 0x5ed   : > { %4397 = vst.msk [vmem:[#allocation4] sm:$0xff] %vm4396_vm6, %v4301_v45 }
 0x5ee   : > { %4590 = vst.msk [vmem:[#allocation4] sm:$0xff] %vm4589_vm7, %v4494_v43  ;;  %v8131_v43 = vld [vmem:[#allocation3 + $0x172] sm:$0xff] }
 0x5f0   : > { %4324 = vrot.lane.b32.xlu1 %v7727_v40, %s5756_s30  ;;  %4708 = vrot.lane.b32.xlu2 %v4633_v54, %s5758_s16  ;;  %v4054_v40 = vld [vmem:[#allocation3 + $0xaa] sm:$0xff] }
 0x5f1   : > { %4322 = vrot.lane.b32.xlu0 %v4247_v3, %s5756_s30 }
 0x5f2   : > { %v4303_v1 = vpop.permute.xlu1 %4302  ;;  %v4500_v62 = vpop.permute.xlu2 %4499 }
 0x5f3   : > { %4398 = vst.msk [vmem:[#allocation4 + $0x8] sm:$0xff] %vm4396_vm6, %v4303_v1  ;;  %v4113_v29 = vpop.permute.xlu0 %4112 }
 0x5f4   : > { %4206 = vst.msk [vmem:[#allocation4 + $0x18] sm:$0xff] %vm4202_vm5, %v4113_v29 }
 0x5f5   : > { %4591 = vst.msk [vmem:[#allocation4 + $0x8] sm:$0xff] %vm4589_vm7, %v4496_v55 }
 0x5f8   : > { %4132 = vrot.lane.b32.xlu1 %v4633_v54, %s5755_s28  ;;  %4517 = vrot.lane.b32.xlu2 %v7869_v12, %s5757_s13  ;;  %v4634_v12 = vld [vmem:[#allocation3 + $0xc2] sm:$0xff] }
 0x5f9   : > { %4130 = vrot.lane.b32.xlu0 %v4054_v40, %s5755_s28  ;;  %v4261_v54 = vld [vmem:[#allocation3 + $0x188] sm:$0xff] }
 0x5fa   : > { %v4305_v58 = vpop.permute.xlu1 %4304  ;;  %v4309_v61 = vpop.permute.xlu2 %4308 }
 0x5fb   : > { %4399 = vst.msk [vmem:[#allocation4 + $0x10] sm:$0xff] %vm4396_vm6, %v4305_v58  ;;  %v4687_v53 = vpop.permute.xlu0 %4686  ;;  %v4254_v58 = vld [vmem:[#allocation3 + $0x138] sm:$0xff] }
 0x5fc   : > { %4783 = vst.msk [vmem:[#allocation4] sm:$0xff] %vm4782_vm8, %v4687_v53 }
 0x5fd   : > { %4592 = vst.msk [vmem:[#allocation4 + $0x10] sm:$0xff] %vm4589_vm7, %v4498_v15  ;;  %v4647_v15 = vld [vmem:[#allocation3 + $0x18a] sm:$0xff] }
 0x600   : > { %4712 = vrot.lane.b32.xlu1 %v4635_v31, %s5758_s16  ;;  %4326 = vrot.lane.b32.xlu2 %v7741_v5, %s5756_s30 }
 0x601   : > { %4710 = vrot.lane.b32.xlu0 %v4634_v12, %s5758_s16 }
 0x602   : > { %v4307_v26 = vpop.permute.xlu1 %4306  ;;  %v4117_v59 = vpop.permute.xlu2 %4116 }
 0x603   : > { %4400 = vst.msk [vmem:[#allocation4 + $0x18] sm:$0xff] %vm4396_vm6, %v4307_v26  ;;  %v4689_v2 = vpop.permute.xlu0 %4688  ;;  %v4826_v4 = vld [vmem:[#allocation4] sm:$0xff] }
 0x604   : > { %4593 = vst.msk [vmem:[#allocation4 + $0x18] sm:$0xff] %vm4589_vm7, %v4500_v62  ;;  %5612 = vmatmul.msk.f32.vlgmr.msra.gmra.mxu2 %vm4858_vm9, %v4826_v4  ;;  %v8147_v62 = vpop.f32.mrf.mxu0  ;;  %v4262_v4 = vld [vmem:[#allocation3 + $0x198] sm:$0xff] }
 0x605   : > { %4208 = vst.msk [vmem:[#allocation4 + $0x28] sm:$0xff] %vm4202_vm5, %v4117_v59 }
 0x606   : > { %4784 = vst.msk [vmem:[#allocation4 + $0x8] sm:$0xff] %vm4782_vm8, %v4689_v2  ;;  %v4455_v2 = vld [vmem:[#allocation3 + $0x199] sm:$0xff] }
 0x608   : > { %4521 = vrot.lane.b32.xlu1 %v4443_v14, %s5757_s13  ;;  %4134 = vrot.lane.b32.xlu2 %v4634_v12, %s5755_s28 }
 0x609   : > { %4519 = vrot.lane.b32.xlu0 %v7850_v36, %s5757_s13 }
 0x60a   : > { %v4115_v5 = vpop.permute.xlu1 %4114  ;;  %v4697_v25 = vpop.permute.xlu2 %4696 }
 0x60b   : > { %4207 = vst.msk [vmem:[#allocation4 + $0x20] sm:$0xff] %vm4202_vm5, %v4115_v5  ;;  %v4691_v41 = vpop.permute.xlu0 %4690 }
 0x60c   : > { %4401 = vst.msk [vmem:[#allocation4 + $0x20] sm:$0xff] %vm4396_vm6, %v4309_v61  ;;  %v4639_v61 = vld [vmem:[#allocation3 + $0x12a] sm:$0xff]  ;;  %v8159_v26 = vpop.f32.mrf.mxu0 }
 0x60d   : > { %4785 = vst.msk [vmem:[#allocation4 + $0x10] sm:$0xff] %vm4782_vm8, %v4691_v41  ;;  %v4827_v42 = vld [vmem:[#allocation4 + $0x8] sm:$0xff] }
 0x60e   : > { %5613 = vmatmul.msk.f32.gmra.mxu2 %vm4858_vm9, %v4827_v42  ;;  %v4640_v42 = vld [vmem:[#allocation3 + $0x13a] sm:$0xff] }
 0x610   : > { %4330 = vrot.lane.b32.xlu1 %v4251_v51, %s5756_s30  ;;  %4714 = vrot.lane.b32.xlu2 %v4636_v57, %s5758_s16  ;;  %v4447_v51 = vld [vmem:[#allocation3 + $0x139] sm:$0xff] }
 0x611   : > { %4328 = vrot.lane.b32.xlu0 %v4250_v13, %s5756_s30 }
 0x612   : > { %v4695_v36 = vpop.permute.xlu1 %4694  ;;  %v4506_v44 = vpop.permute.xlu2 %4505 }
 0x613   : > { %v4693_v60 = vpop.permute.xlu0 %4692 }
 0x614   : > { %4786 = vst.msk [vmem:[#allocation4 + $0x18] sm:$0xff] %vm4782_vm8, %v4693_v60  ;;  %v4828_v9 = vld [vmem:[#allocation4 + $0x10] sm:$0xff]  ;;  %v8169_v41 = vpop.f32.mrf.mxu0  ;;  %v4263_v60 = vld [vmem:[#allocation3 + $0x1a0] sm:$0xff] }
 0x616   : > { %5614 = vmatmul.msk.f32.gmra.mxu2 %vm4858_vm9, %v4828_v9  ;;  %v4648_v9 = vld [vmem:[#allocation3 + $0x19a] sm:$0xff] }
 0x618   : > { %4138 = vrot.lane.b32.xlu1 %v4058_v37, %s5755_s28  ;;  %4523 = vrot.lane.b32.xlu2 %v4444_v11, %s5757_s13 }
 0x619   : > { %4136 = vrot.lane.b32.xlu0 %v4635_v31, %s5755_s28 }
 0x61a   : > { %v4504_v19 = vpop.permute.xlu1 %4503  ;;  %v4315_v48 = vpop.permute.xlu2 %4314 }
 0x61b   : > { %v4502_v17 = vpop.permute.xlu0 %4501  ;;  %v4829_v28 = vld [vmem:[#allocation4 + $0x18] sm:$0xff] }
 0x61c   : > { %4594 = vst.msk [vmem:[#allocation4 + $0x20] sm:$0xff] %vm4589_vm7, %v4502_v17  ;;  %v8179_v11 = vpop.f32.mrf.mxu0 }
 0x61d   : > { %4787 = vst.msk [vmem:[#allocation4 + $0x20] sm:$0xff] %vm4782_vm8, %v4695_v36 }
 0x61e   : > { %5615 = vmatmul.msk.f32.gmra.mxu2 %vm4858_vm9, %v4829_v28  ;;  %v8187_v28 = vld [vmem:[#allocation3 + $0x142] sm:$0xff] }
 0x620   : > { %4348 = vrot.lane.b32.xlu1 %v4260_v21, %s5756_s30  ;;  %4154 = vrot.lane.b32.xlu2 %v8111_v47, %s5755_s28  ;;  %v4255_v21 = vld [vmem:[#allocation3 + $0x140] sm:$0xff] }
 0x621   : > { %4716 = vrot.lane.b32.xlu0 %v4637_v49, %s5758_s16  ;;  %v4448_v49 = vld [vmem:[#allocation3 + $0x141] sm:$0xff] }
 0x622   : > { %v4313_v8 = vpop.permute.xlu1 %4312  ;;  %v4123_v34 = vpop.permute.xlu2 %4122 }
 0x623   : > { %4211 = vst.msk [vmem:[#allocation4 + $0x40] sm:$0xff] %vm4202_vm5, %v4123_v34  ;;  %v4311_v39 = vpop.permute.xlu0 %4310 }
 0x624   : > { %4402 = vst.msk [vmem:[#allocation4 + $0x28] sm:$0xff] %vm4396_vm6, %v4311_v39  ;;  %v4830_v56 = vld [vmem:[#allocation4 + $0x20] sm:$0xff]  ;;  %v8193_v39 = vpop.f32.mrf.mxu0 }
 0x625   : > { %4595 = vst.msk [vmem:[#allocation4 + $0x28] sm:$0xff] %vm4589_vm7, %v4504_v19 }
 0x626   : > { %4788 = vst.msk [vmem:[#allocation4 + $0x28] sm:$0xff] %vm4782_vm8, %v4697_v25  ;;  %5616 = vmatmul.msk.f32.gmra.mxu2 %vm4858_vm9, %v4830_v56 }
 0x628   : > { %4718 = vrot.lane.b32.xlu1 %v4638_v16, %s5758_s16  ;;  %4525 = vrot.lane.b32.xlu2 %v4445_v7, %s5757_s13  ;;  %v8201_v7 = vld [vmem:[#allocation3 + $0x1a2] sm:$0xff] }
 0x629   : > { %4332 = vrot.lane.b32.xlu0 %v4252_v33, %s5756_s30  ;;  %v4456_v33 = vld [vmem:[#allocation3 + $0x1a1] sm:$0xff] }
 0x62a   : > { %v4121_v23 = vpop.permute.xlu1 %4120  ;;  %v4703_v30 = vpop.permute.xlu2 %4702 }
 0x62b   : > { %4210 = vst.msk [vmem:[#allocation4 + $0x38] sm:$0xff] %vm4202_vm5, %v4121_v23  ;;  %v4119_v10 = vpop.permute.xlu0 %4118 }
 0x62c   : > { %4404 = vst.msk [vmem:[#allocation4 + $0x38] sm:$0xff] %vm4396_vm6, %v4315_v48 }
 0x62d   : > { %4209 = vst.msk [vmem:[#allocation4 + $0x30] sm:$0xff] %vm4202_vm5, %v4119_v10  ;;  %v4831_v63 = vld [vmem:[#allocation4 + $0x28] sm:$0xff] }
 0x62e   : > { %4403 = vst.msk [vmem:[#allocation4 + $0x30] sm:$0xff] %vm4396_vm6, %v4313_v8  ;;  %5617 = vmatmul.msk.f32.gmra.mxu2 %vm4858_vm9, %v4831_v63  ;;  %v8208_v63 = vpop.f32.mrf.mxu0 }
 0x62f   : > { %4596 = vst.msk [vmem:[#allocation4 + $0x30] sm:$0xff] %vm4589_vm7, %v4506_v44 }
 0x630   : > { %4156 = vrot.lane.b32.xlu1 %v8131_v43, %s5755_s28  ;;  %4734 = vrot.lane.b32.xlu2 %v4646_v27, %s5758_s16 }
 0x631   : > { %4541 = vrot.lane.b32.xlu0 %v4453_v35, %s5757_s13  ;;  %v4256_v35 = vld [vmem:[#allocation3 + $0x150] sm:$0xff] }
 0x632   : > { %v4701_v6 = vpop.permute.xlu1 %4700  ;;  %v4512_v32 = vpop.permute.xlu2 %4511 }
 0x633   : > { %v4699_v46 = vpop.permute.xlu0 %4698 }
 0x634   : > { %4789 = vst.msk [vmem:[#allocation4 + $0x30] sm:$0xff] %vm4782_vm8, %v4699_v46 }
 0x638   : > { %4527 = vrot.lane.b32.xlu1 %v4446_v0, %s5757_s13  ;;  %4334 = vrot.lane.b32.xlu2 %v4253_v38, %s5756_s30  ;;  %v8217_v38 = vpop.f32.mrf.mxu0 }
 0x639   : > { %4140 = vrot.lane.b32.xlu0 %v4059_v24, %s5755_s28  ;;  %v8219_v24 = vld [vmem:[#allocation3 + $0x1b2] sm:$0xff] }
 0x63a   : > { %v4510_v55 = vpop.permute.xlu1 %4509  ;;  %v4321_v22 = vpop.permute.xlu2 %4320 }
 0x63b   : > { %v4508_v52 = vpop.permute.xlu0 %4507  ;;  %v4832_v45 = vld [vmem:[#allocation4 + $0x30] sm:$0xff] }
 0x63c   : > { %4597 = vst.msk [vmem:[#allocation4 + $0x38] sm:$0xff] %vm4589_vm7, %v4508_v52  ;;  %5618 = vmatmul.msk.f32.gmra.mxu2 %vm4858_vm9, %v4832_v45 }
 0x63d   : > { %4790 = vst.msk [vmem:[#allocation4 + $0x38] sm:$0xff] %vm4782_vm8, %v4701_v6 }
 0x640   : > { %4736 = vrot.lane.b32.xlu1 %v4647_v15, %s5758_s16  ;;  %4543 = vrot.lane.b32.xlu2 %v4454_v18, %s5757_s13  ;;  %v8828_v18 = vld [vmem:[#allocation15_spill] sm:$0xff] }
 0x641   : > { %4350 = vrot.lane.b32.xlu0 %v4261_v54, %s5756_s30 }
 0x642   : > { %v4319_v3 = vpop.permute.xlu1 %4318  ;;  %v4129_v1 = vpop.permute.xlu2 %4128 }
 0x643   : > { %4214 = vst.msk [vmem:[#allocation4 + $0x58] sm:$0xff] %vm4202_vm5, %v4129_v1  ;;  %v4317_v29 = vpop.permute.xlu0 %4316 }
 0x644   : > { %4405 = vst.msk [vmem:[#allocation4 + $0x40] sm:$0xff] %vm4396_vm6, %v4317_v29  ;;  %v4833_v40 = vld [vmem:[#allocation4 + $0x38] sm:$0xff]  ;;  %v8256_v29 = vld [vmem:[%s663_s14] ss:$0 sm:$0xff] }
 0x645   : > { %4598 = vst.msk [vmem:[#allocation4 + $0x40] sm:$0xff] %vm4589_vm7, %v4510_v55  ;;  %5619 = vmatmul.msk.f32.gmra.mxu2 %vm4858_vm9, %v4833_v40  ;;  %v8224_v55 = vld [vmem:[%s8735_s3] ss:$0 sm:$0xff] }
 0x646   : > { %4791 = vst.msk [vmem:[#allocation4 + $0x40] sm:$0xff] %vm4782_vm8, %v4703_v30  ;;  %v2654_v54 = vmul.f32 %v8224_v55, %v8828_v18 }
 0x648   : > { %4336 = vrot.lane.b32.xlu1 %v4254_v58, %s5756_s30  ;;  %4142 = vrot.lane.b32.xlu2 %v4638_v16, %s5755_s28  ;;  %v4257_v58 = vld [vmem:[#allocation3 + $0x158] sm:$0xff] }
 0x649   : > { %4720 = vrot.lane.b32.xlu0 %v4639_v61, %s5758_s16 }
 0x64a   : > { %v4127_v53 = vpop.permute.xlu1 %4126  ;;  %v4709_v31 = vpop.permute.xlu2 %4708 }
 0x64b   : > { %4213 = vst.msk [vmem:[#allocation4 + $0x50] sm:$0xff] %vm4202_vm5, %v4127_v53  ;;  %v4125_v12 = vpop.permute.xlu0 %4124 }
 0x64c   : > { %4407 = vst.msk [vmem:[#allocation4 + $0x50] sm:$0xff] %vm4396_vm6, %v4321_v22  ;;  %v4264_v22 = vld [vmem:[#allocation3 + $0x1b0] sm:$0xff] }
 0x64d   : > { %4212 = vst.msk [vmem:[#allocation4 + $0x48] sm:$0xff] %vm4202_vm5, %v4125_v12  ;;  %v4834_v59 = vld [vmem:[#allocation4 + $0x40] sm:$0xff]  ;;  %v8263_v12 = vpop.f32.mrf.mxu0 }
 0x64e   : > { %4406 = vst.msk [vmem:[#allocation4 + $0x48] sm:$0xff] %vm4396_vm6, %v4319_v3  ;;  %5620 = vmatmul.msk.f32.gmra.mxu2 %vm4858_vm9, %v4834_v59  ;;  %v8238_v3 = vld [vmem:[%s8736_s4] ss:$0 sm:$0xff] }
 0x64f   : > { %4599 = vst.msk [vmem:[#allocation4 + $0x48] sm:$0xff] %vm4589_vm7, %v4512_v32 }
 0x650   : > { %4545 = vrot.lane.b32.xlu1 %v4455_v2, %s5757_s13  ;;  %4352 = vrot.lane.b32.xlu2 %v4262_v4, %s5756_s30 }
 0x651   : > { %4158 = vrot.lane.b32.xlu0 %v4646_v27, %s5755_s28  ;;  %v4449_v27 = vld [vmem:[#allocation3 + $0x151] sm:$0xff] }
 0x652   : > { %v4707_v14 = vpop.permute.xlu1 %4706  ;;  %v4518_v5 = vpop.permute.xlu2 %4517 }
 0x653   : > { %v4705_v25 = vpop.permute.xlu0 %4704 }
 0x654   : > { %4792 = vst.msk [vmem:[#allocation4 + $0x48] sm:$0xff] %vm4782_vm8, %v4705_v25 }
 0x658   : > { %4144 = vrot.lane.b32.xlu1 %v4639_v61, %s5755_s28  ;;  %4722 = vrot.lane.b32.xlu2 %v4640_v42, %s5758_s16  ;;  %v2689_v61 = vadd.f32 %v8238_v3, %v2654_v54 }
 0x659   : > { %4529 = vrot.lane.b32.xlu0 %v4447_v51, %s5757_s13  ;;  %v2655_v51 = vmul.f32 %v8224_v55, %v8147_v62 }
 0x65a   : > { %v4516_v57 = vpop.permute.xlu1 %4515  ;;  %v4327_v13 = vpop.permute.xlu2 %4326 }
 0x65b   : > { %v4514_v36 = vpop.permute.xlu0 %4513  ;;  %v4835_v44 = vld [vmem:[#allocation4 + $0x48] sm:$0xff]  ;;  %v2690_v62 = vadd.f32 %v8238_v3, %v2655_v51 }
 0x65c   : > { %4600 = vst.msk [vmem:[#allocation4 + $0x50] sm:$0xff] %vm4589_vm7, %v4514_v36  ;;  %5621 = vmatmul.msk.f32.gmra.mxu2 %vm4858_vm9, %v4835_v44  ;;  %v4652_v51 = vld [vmem:[#allocation3 + $0x1ca] sm:$0xff] }
 0x65d   : > { %4793 = vst.msk [vmem:[#allocation4 + $0x50] sm:$0xff] %vm4782_vm8, %v4707_v14 }
 0x660   : > { %4354 = vrot.lane.b32.xlu1 %v4263_v60, %s5756_s30  ;;  %4160 = vrot.lane.b32.xlu2 %v4647_v15, %s5755_s28 }
 0x661   : > { %4738 = vrot.lane.b32.xlu0 %v4648_v9, %s5758_s16 }
 0x662   : > { %v4325_v37 = vpop.permute.xlu1 %4324  ;;  %v4135_v19 = vpop.permute.xlu2 %4134 }
 0x663   : > { %4217 = vst.msk [vmem:[#allocation4 + $0x70] sm:$0xff] %vm4202_vm5, %v4135_v19  ;;  %v4323_v48 = vpop.permute.xlu0 %4322 }
 0x664   : > { %4408 = vst.msk [vmem:[#allocation4 + $0x58] sm:$0xff] %vm4396_vm6, %v4323_v48  ;;  %v4836_v17 = vld [vmem:[#allocation4 + $0x50] sm:$0xff]  ;;  %v2722_v48 = vmax.f32 %v2690_v62, 0.0 }
 0x665   : > { %4601 = vst.msk [vmem:[#allocation4 + $0x58] sm:$0xff] %vm4589_vm7, %v4516_v57  ;;  %5622 = vmatmul.msk.f32.gmra.mxu2 %vm4858_vm9, %v4836_v17  ;;  %v2656_v17 = vmul.f32 %v8224_v55, %v8159_v26  ;;  %v4459_v62 = vld [vmem:[#allocation3 + $0x1c9] sm:$0xff] }
 0x666   : > { %4794 = vst.msk [vmem:[#allocation4 + $0x58] sm:$0xff] %vm4782_vm8, %v4709_v31  ;;  %v4642_v31 = vld [vmem:[#allocation3 + $0x152] sm:$0xff] }
 0x668   : > { %4724 = vrot.lane.b32.xlu1 %v8187_v28, %s5758_s16  ;;  %4531 = vrot.lane.b32.xlu2 %v4448_v49, %s5757_s13  ;;  %v8297_v49 = vld [vmem:[#allocation3 + $0x15a] sm:$0xff] }
 0x669   : > { %4338 = vrot.lane.b32.xlu0 %v4255_v21, %s5756_s30 }
 0x66a   : > { %v4133_v8 = vpop.permute.xlu1 %4132  ;;  %v4715_v34 = vpop.permute.xlu2 %4714 }
 0x66b   : > { %4216 = vst.msk [vmem:[#allocation4 + $0x68] sm:$0xff] %vm4202_vm5, %v4133_v8  ;;  %v4131_v56 = vpop.permute.xlu0 %4130  ;;  %v4450_v8 = vld [vmem:[#allocation3 + $0x159] sm:$0xff] }
 0x66c   : > { %4410 = vst.msk [vmem:[#allocation4 + $0x68] sm:$0xff] %vm4396_vm6, %v4327_v13  ;;  %v4265_v13 = vld [vmem:[#allocation3 + $0x1b8] sm:$0xff] }
 0x66d   : > { %4215 = vst.msk [vmem:[#allocation4 + $0x60] sm:$0xff] %vm4202_vm5, %v4131_v56  ;;  %v4837_v16 = vld [vmem:[#allocation4 + $0x58] sm:$0xff]  ;;  %v2691_v56 = vadd.f32 %v8238_v3, %v2656_v17 }
 0x66e   : > { %4409 = vst.msk [vmem:[#allocation4 + $0x60] sm:$0xff] %vm4396_vm6, %v4325_v37  ;;  %5623 = vmatmul.msk.f32.gmra.mxu2 %vm4858_vm9, %v4837_v16  ;;  %v8290_v37 = vpop.f32.mrf.mxu0 }
 0x66f   : > { %4602 = vst.msk [vmem:[#allocation4 + $0x60] sm:$0xff] %vm4589_vm7, %v4518_v5  ;;  %v2721_v5 = vmax.f32 %v2689_v61, 0.0 }
 0x670   : > { %4162 = vrot.lane.b32.xlu1 %v4648_v9, %s5755_s28  ;;  %4740 = vrot.lane.b32.xlu2 %v8201_v7, %s5758_s16 }
 0x671   : > { %4547 = vrot.lane.b32.xlu0 %v4456_v33, %s5757_s13 }
 0x672   : > { %v4713_v23 = vpop.permute.xlu1 %4712  ;;  %v4524_v30 = vpop.permute.xlu2 %4523 }
 0x673   : > { %v4711_v10 = vpop.permute.xlu0 %4710 }
 0x674   : > { %4795 = vst.msk [vmem:[#allocation4 + $0x60] sm:$0xff] %vm4782_vm8, %v4711_v10 }
 0x676   : > { %v8312_v10 = vpop.f32.mrf.mxu0 }
 0x678   : > { %4533 = vrot.lane.b32.xlu1 %v4449_v27, %s5757_s13  ;;  %4340 = vrot.lane.b32.xlu2 %v4256_v35, %s5756_s30  ;;  %v4266_v27 = vld [vmem:[#allocation3 + $0x1c8] sm:$0xff]  ;;  %v2723_v35 = vmax.f32 %v2691_v56, 0.0  ;;  %v4259_v56 = vld [vmem:[#allocation3 + $0x170] sm:$0xff] }
 0x679   : > { %4146 = vrot.lane.b32.xlu0 %v4640_v42, %s5755_s28 }
 0x67a   : > { %v4522_v6 = vpop.permute.xlu1 %4521  ;;  %v4155_v32 = vpop.permute.xlu2 %4154 }
 0x67b   : > { %4227 = vst.msk [vmem:[#allocation4 + $0xc0] sm:$0xff] %vm4202_vm5, %v4155_v32  ;;  %v4520_v46 = vpop.permute.xlu0 %4519  ;;  %v4838_v0 = vld [vmem:[#allocation4 + $0x60] sm:$0xff] }
 0x67c   : > { %4603 = vst.msk [vmem:[#allocation4 + $0x68] sm:$0xff] %vm4589_vm7, %v4520_v46  ;;  %5624 = vmatmul.msk.f32.gmra.mxu2 %vm4858_vm9, %v4838_v0  ;;  %v4651_v0 = vld [vmem:[#allocation3 + $0x1ba] sm:$0xff] }
 0x67d   : > { %4796 = vst.msk [vmem:[#allocation4 + $0x68] sm:$0xff] %vm4782_vm8, %v4713_v23 }
 0x67e   : > { %v8336_v61 = vpop.f32.mrf.mxu0 }
 0x680   : > { %4742 = vrot.lane.b32.xlu1 %v8219_v24, %s5758_s16  ;;  %4549 = vrot.lane.b32.xlu2 %v7903_v50, %s5757_s13  ;;  %v8246_v50 = vld [vmem:[%s660_s27] ss:$0 sm:$0xff] }
 0x681   : > { %4356 = vrot.lane.b32.xlu0 %v4264_v22, %s5756_s30 }
 0x682   : > { %v4331_v52 = vpop.permute.xlu1 %4330  ;;  %v8231_v45 = vpop.permute.xlu2 %4525 }
 0x683   : > { %v4329_v15 = vpop.permute.xlu0 %4328 }
 0x684   : > { %4411 = vst.msk [vmem:[#allocation4 + $0x70] sm:$0xff] %vm4396_vm6, %v4329_v15  ;;  %v4839_v1 = vld [vmem:[#allocation4 + $0x68] sm:$0xff] }
 0x685   : > { %4604 = vst.msk [vmem:[#allocation4 + $0x70] sm:$0xff] %vm4589_vm7, %v4522_v6  ;;  %5625 = vmatmul.msk.f32.gmra.mxu2 %vm4858_vm9, %v4839_v1  ;;  %v2657_v6 = vmul.f32 %v8224_v55, %v8169_v41 }
 0x686   : > { %4797 = vst.msk [vmem:[#allocation4 + $0x70] sm:$0xff] %vm4782_vm8, %v4715_v34 }
 0x687   : > { %v4972_v40 = vpop.f32.mrf.mxu2 }
 0x688   : > { %v5071_v53 = vmul.f32 %v8246_v50, %v4972_v40  ;;  %4342 = vrot.lane.b32.xlu1 %v4257_v58, %s5756_s30  ;;  %4148 = vrot.lane.b32.xlu2 %v8187_v28, %s5755_s28  ;;  %v2658_v40 = vmul.f32 %v8224_v55, %v8179_v11 }
 0x689   : > { %4726 = vrot.lane.b32.xlu0 %v4642_v31, %s5758_s16 }
 0x68a   : > { %v5106_v59 = vadd.f32 %v8256_v29, %v5071_v53  ;;  %v4139_v2 = vpop.permute.xlu1 %4138  ;;  %v8267_v4 = vpop.permute.xlu2 %4734  ;;  %v4451_v53 = vld [vmem:[#allocation3 + $0x169] sm:$0xff]  ;;  %v2693_v11 = vadd.f32 %v8238_v3, %v2658_v40 }
 0x68b   : > { %4219 = vst.msk [vmem:[#allocation4 + $0x80] sm:$0xff] %vm4202_vm5, %v4139_v2  ;;  %v4137_v14 = vpop.permute.xlu0 %4136 }
 0x68c   : > { %v5138_v25 = vmax.f32 %v5106_v59, 0.0  ;;  %4218 = vst.msk [vmem:[#allocation4 + $0x78] sm:$0xff] %vm4202_vm5, %v4137_v14  ;;  %v4258_v59 = vld [vmem:[#allocation3 + $0x168] sm:$0xff] }
 0x68d   : > { %4412 = vst.msk [vmem:[#allocation4 + $0x78] sm:$0xff] %vm4396_vm6, %v4331_v52  ;;  %v4840_v42 = vld [vmem:[#allocation4 + $0x70] sm:$0xff]  ;;  %v2692_v52 = vadd.f32 %v8238_v3, %v2657_v6 }
 0x68e   : > { %v5170_v57 = vadd.f32 %v5138_v25, %v2721_v5  ;;  %4605 = vst.msk [vmem:[#allocation4 + $0x78] sm:$0xff] %vm4589_vm7, %v4524_v30  ;;  %5626 = vmatmul.msk.f32.gmra.mxu2 %vm4858_vm9, %v4840_v42  ;;  %v4460_v6 = vld [vmem:[#allocation3 + $0x1d1] sm:$0xff] }
 0x68f   : > { %v2724_v1 = vmax.f32 %v2692_v52, 0.0 }
 0x690   : > { %5202 = vst.msk [vmem:[%s8277_s22] sm:$0xff] %vm3117_vm14, %v5170_v57  ;;  %4551 = vrot.lane.b32.xlu1 %v7914_v20, %s5757_s13  ;;  %4358 = vrot.lane.b32.xlu2 %v4265_v13, %s5756_s30  ;;  %v2725_v57 = vmax.f32 %v2693_v11, 0.0  ;;  %v2659_v13 = vmul.f32 %v8224_v55, %v8193_v39 }
 0x691   : > { %v4975_v36 = vpop.f32.mrf.mxu2  ;;  %4164 = vrot.lane.b32.xlu0 %v8201_v7, %s5755_s28 }
 0x692   : > { %v5072_v44 = vmul.f32 %v8246_v50, %v4975_v36  ;;  %v4349_v60 = vpop.permute.xlu1 %4348  ;;  %v8288_v9 = vpop.permute.xlu2 %4334 }
 0x693   : > { %4421 = vst.msk [vmem:[#allocation4 + $0xc0] sm:$0xff] %vm4396_vm6, %v4349_v60  ;;  %v4717_v19 = vpop.permute.xlu0 %4716  ;;  %v8358_v60 = vpop.f32.mrf.mxu0 }
 0x694   : > { %v5107_v20 = vadd.f32 %v8256_v29, %v5072_v44  ;;  %4798 = vst.msk [vmem:[#allocation4 + $0x78] sm:$0xff] %vm4782_vm8, %v4717_v19  ;;  %v2694_v19 = vadd.f32 %v8238_v3, %v2659_v13 }
 0x696   : > { %v5139_v28 = vmax.f32 %v5107_v20, 0.0 }
 0x698   : > { %v5171_v21 = vadd.f32 %v5139_v28, %v2722_v48  ;;  %4150 = vrot.lane.b32.xlu1 %v4642_v31, %s5755_s28  ;;  %4728 = vrot.lane.b32.xlu2 %v8297_v49, %s5758_s16 }
 0x699   : > { %v4978_v34 = vpop.f32.mrf.mxu2  ;;  %4535 = vrot.lane.b32.xlu0 %v4450_v8, %s5757_s13 }
 0x69a   : > { %5203 = vst.msk [vmem:[%s8277_s22 + $0x8] sm:$0xff] %vm3117_vm14, %v5171_v21  ;;  %v5073_v16 = vmul.f32 %v8246_v50, %v4978_v34  ;;  %v4719_v26 = vpop.permute.xlu1 %4718  ;;  %v8307_v7 = vpop.permute.xlu2 %4543  ;;  %v2726_v21 = vmax.f32 %v2694_v19, 0.0  ;;  %v4452_v34 = vld [vmem:[#allocation3 + $0x171] sm:$0xff] }
 0x69b   : > { %v4333_v33 = vpop.permute.xlu0 %4332  ;;  %v4841_v23 = vld [vmem:[#allocation4 + $0x78] sm:$0xff] }
 0x69c   : > { %v5108_v30 = vadd.f32 %v8256_v29, %v5073_v16  ;;  %4413 = vst.msk [vmem:[#allocation4 + $0x80] sm:$0xff] %vm4396_vm6, %v4333_v33  ;;  %5627 = vmatmul.msk.f32.gmra.mxu2 %vm4858_vm9, %v4841_v23  ;;  %v8376_v23 = vpop.f32.mrf.mxu0 }
 0x69d   : > { %4606 = vst.msk [vmem:[#allocation4 + $0x80] sm:$0xff] %vm4589_vm7, %v8231_v45 }
 0x69e   : > { %v5140_v32 = vmax.f32 %v5108_v30, 0.0  ;;  %4799 = vst.msk [vmem:[#allocation4 + $0x80] sm:$0xff] %vm4782_vm8, %v4719_v26  ;;  %v2660_v30 = vmul.f32 %v8224_v55, %v8208_v63 }
 0x6a0   : > { %v5172_v46 = vadd.f32 %v5140_v32, %v2723_v35  ;;  %4360 = vrot.lane.b32.xlu1 %v4266_v27, %s5756_s30  ;;  %4166 = vrot.lane.b32.xlu2 %v8219_v24, %s5755_s28  ;;  %v4653_v35 = vld [vmem:[#allocation3 + $0x1d2] sm:$0xff] }
 0x6a1   : > { %v4981_v22 = vpop.f32.mrf.mxu2  ;;  %4744 = vrot.lane.b32.xlu0 %v4651_v0, %s5758_s16 }
 0x6a2   : > { %5204 = vst.msk [vmem:[%s8277_s22 + $0x10] sm:$0xff] %vm3117_vm14, %v5172_v46  ;;  %v5074_v45 = vmul.f32 %v8246_v50, %v4981_v22  ;;  %v4157_v41 = vpop.permute.xlu1 %4156  ;;  %v4143_v15 = vpop.permute.xlu2 %4142  ;;  %v2695_v46 = vadd.f32 %v8238_v3, %v2660_v30 }
 0x6a3   : > { %4228 = vst.msk [vmem:[#allocation4 + $0xc8] sm:$0xff] %vm4202_vm5, %v4157_v41  ;;  %v4542_v18 = vpop.permute.xlu0 %4541 }
 0x6a4   : > { %v5109_v54 = vadd.f32 %v8256_v29, %v5074_v45  ;;  %4221 = vst.msk [vmem:[#allocation4 + $0x90] sm:$0xff] %vm4202_vm5, %v4143_v15  ;;  %v2727_v41 = vmax.f32 %v2695_v46, 0.0 }
 0x6a5   : > { %4614 = vst.msk [vmem:[#allocation4 + $0xc0] sm:$0xff] %vm4589_vm7, %v4542_v18  ;;  %v4842_v24 = vld [vmem:[#allocation4 + $0x80] sm:$0xff] }
 0x6a6   : > { %v5141_v58 = vmax.f32 %v5109_v54, 0.0  ;;  %4807 = vst.msk [vmem:[#allocation4 + $0xc0] sm:$0xff] %vm4782_vm8, %v8267_v4  ;;  %5628 = vmatmul.msk.f32.gmra.mxu2 %vm4858_vm9, %v4842_v24  ;;  %v2661_v54 = vmul.f32 %v8224_v55, %v8217_v38  ;;  %v8393_v24 = vpop.f32.mrf.mxu0 }
 0x6a8   : > { %v5173_v31 = vadd.f32 %v5141_v58, %v2724_v1  ;;  %4730 = vrot.lane.b32.xlu1 %v8111_v47, %s5758_s16  ;;  %4537 = vrot.lane.b32.xlu2 %v4451_v53, %s5757_s13  ;;  %v2696_v58 = vadd.f32 %v8238_v3, %v2661_v54 }
 0x6a9   : > { %v4984_v2 = vpop.f32.mrf.mxu2  ;;  %4344 = vrot.lane.b32.xlu0 %v4258_v59, %s5756_s30 }
 0x6aa   : > { %5205 = vst.msk [vmem:[%s8277_s22 + $0x18] sm:$0xff] %vm3117_vm14, %v5173_v31  ;;  %v5075_v4 = vmul.f32 %v8246_v50, %v4984_v2  ;;  %v4528_v14 = vpop.permute.xlu1 %4527  ;;  %v8346_v5 = vpop.permute.xlu2 %4352  ;;  %v2728_v11 = vmax.f32 %v2696_v58, 0.0 }
 0x6ab   : > { %v4141_v25 = vpop.permute.xlu0 %4140 }
 0x6ac   : > { %v5110_v42 = vadd.f32 %v8256_v29, %v5075_v4  ;;  %4220 = vst.msk [vmem:[#allocation4 + $0x88] sm:$0xff] %vm4202_vm5, %v4141_v25 }
 0x6ad   : > { %4414 = vst.msk [vmem:[#allocation4 + $0x88] sm:$0xff] %vm4396_vm6, %v8288_v9  ;;  %v4850_v47 = vld [vmem:[#allocation4 + $0xc0] sm:$0xff] }
 0x6ae   : > { %v5142_v36 = vmax.f32 %v5110_v42, 0.0  ;;  %4607 = vst.msk [vmem:[#allocation4 + $0x88] sm:$0xff] %vm4589_vm7, %v4528_v14  ;;  %5636 = vmatmul.msk.f32.vlgmr.msra.gmra.mxu3 %vm4858_vm9, %v4850_v47  ;;  %v2662_v14 = vmul.f32 %v8224_v55, %v8263_v12 }
 0x6b0   : > { %v5174_v44 = vadd.f32 %v5142_v36, %v2725_v57  ;;  %4168 = vrot.lane.b32.xlu1 %v4651_v0, %s5755_s28  ;;  %4746 = vrot.lane.b32.xlu2 %v4652_v51, %s5758_s16  ;;  %v2697_v42 = vadd.f32 %v8238_v3, %v2662_v14 }
 0x6b1   : > { %4553 = vrot.lane.b32.xlu0 %v4459_v62, %s5757_s13  ;;  %v4987_v9 = vpop.f32.mrf.mxu2 }
 0x6b2   : > { %5206 = vst.msk [vmem:[%s8277_s22 + $0x20] sm:$0xff] %vm3117_vm14, %v5174_v44  ;;  %v5076_v39 = vmul.f32 %v8246_v50, %v4987_v9  ;;  %v4737_v20 = vpop.permute.xlu1 %4736  ;;  %v4723_v48 = vpop.permute.xlu2 %4722  ;;  %v2729_v62 = vmax.f32 %v2697_v42, 0.0  ;;  %v2666_v42 = vmul.f32 %v8224_v55, %v8358_v60 }
 0x6b3   : > { %v4351_v17 = vpop.permute.xlu0 %4350 }
 0x6b4   : > { %v5111_v28 = vadd.f32 %v8256_v29, %v5076_v39  ;;  %4422 = vst.msk [vmem:[#allocation4 + $0xc8] sm:$0xff] %vm4396_vm6, %v4351_v17 }
 0x6b5   : > { %4615 = vst.msk [vmem:[#allocation4 + $0xc8] sm:$0xff] %vm4589_vm7, %v8307_v7 }
 0x6b6   : > { %v5143_v8 = vmax.f32 %v5111_v28, 0.0  ;;  %4808 = vst.msk [vmem:[#allocation4 + $0xc8] sm:$0xff] %vm4782_vm8, %v4737_v20  ;;  %v2663_v28 = vmul.f32 %v8224_v55, %v8290_v37 }
 0x6b8   : > { %v5175_v16 = vadd.f32 %v5143_v8, %v2726_v21  ;;  %4539 = vrot.lane.b32.xlu1 %v4452_v34, %s5757_s13  ;;  %4346 = vrot.lane.b32.xlu2 %v4259_v56, %s5756_s30  ;;  %v2698_v8 = vadd.f32 %v8238_v3, %v2663_v28 }
 0x6b9   : > { %4152 = vrot.lane.b32.xlu0 %v8297_v49, %s5755_s28  ;;  %v4267_v49 = vld [vmem:[#allocation3 + $0x1d0] sm:$0xff] }
 0x6ba   : > { %5207 = vst.msk [vmem:[%s8277_s22 + $0x28] sm:$0xff] %vm3117_vm14, %v5175_v16  ;;  %v4337_v26 = vpop.permute.xlu1 %4336  ;;  %v4161_v33 = vpop.permute.xlu2 %4160 }
 0x6bb   : > { %4415 = vst.msk [vmem:[#allocation4 + $0x90] sm:$0xff] %vm4396_vm6, %v4337_v26  ;;  %v4721_v7 = vpop.permute.xlu0 %4720 }
 0x6bc   : > { %4230 = vst.msk [vmem:[#allocation4 + $0xd8] sm:$0xff] %vm4202_vm5, %v4161_v33  ;;  %v2730_v33 = vmax.f32 %v2698_v8, 0.0 }
 0x6bd   : > { %4800 = vst.msk [vmem:[#allocation4 + $0x88] sm:$0xff] %vm4782_vm8, %v4721_v7  ;;  %v4851_v27 = vld [vmem:[#allocation4 + $0xc8] sm:$0xff] }
 0x6be   : > { %5637 = vmatmul.msk.f32.gmra.mxu3 %vm4858_vm9, %v4851_v27  ;;  %v2664_v27 = vmul.f32 %v8224_v55, %v8312_v10 }
 0x6bf   : > { %v4990_v32 = vpop.f32.mrf.mxu2 }
 0x6c0   : > { %v5077_v0 = vmul.f32 %v8246_v50, %v4990_v32  ;;  %4748 = vrot.lane.b32.xlu1 %v4653_v35, %s5758_s16  ;;  %4555 = vrot.lane.b32.xlu2 %v4460_v6, %s5757_s13  ;;  %v2699_v32 = vadd.f32 %v8238_v3, %v2664_v27 }
 0x6c1   : > { %4362 = vrot.lane.b32.xlu0 %v4267_v49, %s5756_s30 }
 0x6c2   : > { %v5112_v63 = vadd.f32 %v8256_v29, %v5077_v0  ;;  %v4546_v22 = vpop.permute.xlu1 %4545  ;;  %v4532_v52 = vpop.permute.xlu2 %4531 }
 0x6c3   : > { %v4159_v45 = vpop.permute.xlu0 %4158 }
 0x6c4   : > { %v5144_v15 = vmax.f32 %v5112_v63, 0.0  ;;  %4229 = vst.msk [vmem:[#allocation4 + $0xd0] sm:$0xff] %vm4202_vm5, %v4159_v45  ;;  %v4843_v18 = vld [vmem:[#allocation4 + $0x88] sm:$0xff] }
 0x6c5   : > { %4423 = vst.msk [vmem:[#allocation4 + $0xd0] sm:$0xff] %vm4396_vm6, %v8346_v5  ;;  %5629 = vmatmul.msk.f32.gmra.mxu2 %vm4858_vm9, %v4843_v18  ;;  %v8411_v5 = vpop.f32.mrf.mxu0 }
 0x6c6   : > { %v5176_v1 = vadd.f32 %v5144_v15, %v2727_v41  ;;  %4616 = vst.msk [vmem:[#allocation4 + $0xd0] sm:$0xff] %vm4589_vm7, %v4546_v22  ;;  %v2665_v15 = vmul.f32 %v8224_v55, %v8336_v61 }
 0x6c8   : > { %5208 = vst.msk [vmem:[%s8277_s22 + $0x30] sm:$0xff] %vm3117_vm14, %v5176_v1  ;;  %v4993_v40 = vpop.f32.mrf.mxu2 }
 0x6c9   : > { %v5078_v53 = vmul.f32 %v8246_v50, %v4993_v40  ;;  %4732 = vrot.lane.b32.xlu0 %v8131_v43, %s5758_s16  ;;  %v2700_v40 = vadd.f32 %v8238_v3, %v2665_v15  ;;  %v2669_v15 = vmul.f32 %v8224_v55, %v8411_v5  ;;  %s5654_s16 = sshll.u32 (%p5850_p5), %s5835_s20, 7 }
 0x6ca   : > { %v4145_v38 = vpop.permute.xlu1 %4144  ;;  %v4741_v31 = vpop.permute.xlu2 %4740  ;;  %s8658_s23 = scalar_lea.vmem (%p5850_p5), %s8743_s11, %s5654_s16 }
 0x6cb   : > { %v5113_v59 = vadd.f32 %v8256_v29, %v5078_v53  ;;  %4222 = vst.msk [vmem:[#allocation4 + $0x98] sm:$0xff] %vm4202_vm5, %v4145_v38  ;;  %v4530_v2 = vpop.permute.xlu0 %4529 }
 0x6cc   : > { %4608 = vst.msk [vmem:[#allocation4 + $0x90] sm:$0xff] %vm4589_vm7, %v4530_v2 }
 0x6cd   : > { %v5145_v4 = vmax.f32 %v5113_v59, 0.0  ;;  %4801 = vst.msk [vmem:[#allocation4 + $0x90] sm:$0xff] %vm4782_vm8, %v4723_v48  ;;  %v8421_v19 = vpop.f32.mrf.mxu0  ;;  %v2732_v59 = vmax.f32 %v2700_v40, 0.0 }
 0x6cf   : > { %v5177_v25 = vadd.f32 %v5145_v4, %v2728_v11 }
 0x6d1   : > { %5209 = vst.msk [vmem:[%s8277_s22 + $0x38] sm:$0xff] %vm3117_vm14, %v5177_v25  ;;  %v4996_v43 = vpop.f32.mrf.mxu2 }
 0x6d2   : > { %v5079_v47 = vmul.f32 %v8246_v50, %v4996_v43  ;;  %v4355_v51 = vpop.permute.xlu1 %4354  ;;  %v4341_v57 = vpop.permute.xlu2 %4340 }
 0x6d3   : > { %4424 = vst.msk [vmem:[#allocation4 + $0xd8] sm:$0xff] %vm4396_vm6, %v4355_v51  ;;  %v4739_v13 = vpop.permute.xlu0 %4738 }
 0x6d4   : > { %v5114_v36 = vadd.f32 %v8256_v29, %v5079_v47  ;;  %4809 = vst.msk [vmem:[#allocation4 + $0xd0] sm:$0xff] %vm4782_vm8, %v4739_v13  ;;  %v4844_v12 = vld [vmem:[#allocation4 + $0x90] sm:$0xff] }
 0x6d5   : > { %5630 = vmatmul.msk.f32.gmra.mxu2 %vm4858_vm9, %v4844_v12  ;;  %v8435_v7 = vpop.f32.mrf.mxu0 }
 0x6d6   : > { %v5146_v44 = vmax.f32 %v5114_v36, 0.0 }
 0x6d8   : > { %v5178_v9 = vadd.f32 %v5146_v44, %v2729_v62 }
 0x6da   : > { %5210 = vst.msk [vmem:[%s8277_s22 + $0x40] sm:$0xff] %vm3117_vm14, %v5178_v9  ;;  %v4725_v39 = vpop.permute.xlu1 %4724  ;;  %v4550_v20 = vpop.permute.xlu2 %4549 }
 0x6db   : > { %v4339_v48 = vpop.permute.xlu0 %4338  ;;  %v4852_v17 = vld [vmem:[#allocation4 + $0xd0] sm:$0xff] }
 0x6dc   : > { %4416 = vst.msk [vmem:[#allocation4 + $0x98] sm:$0xff] %vm4396_vm6, %v4339_v48  ;;  %5638 = vmatmul.msk.f32.gmra.mxu3 %vm4858_vm9, %v4852_v17 }
 0x6dd   : > { %4609 = vst.msk [vmem:[#allocation4 + $0x98] sm:$0xff] %vm4589_vm7, %v4532_v52  ;;  %v2731_v52 = vmax.f32 %v2699_v32, 0.0  ;;  %v8452_v18 = vpop.f32.mrf.mxu0 }
 0x6de   : > { %4802 = vst.msk [vmem:[#allocation4 + $0x98] sm:$0xff] %vm4782_vm8, %v4725_v39 }
 0x6df   : > { %v4999_v21 = vpop.f32.mrf.mxu2 }
 0x6e0   : > { %v5080_v34 = vmul.f32 %v8246_v50, %v4999_v21 }
 0x6e2   : > { %v5115_v56 = vadd.f32 %v8256_v29, %v5080_v34  ;;  %v4163_v16 = vpop.permute.xlu1 %4162  ;;  %v4149_v26 = vpop.permute.xlu2 %4148 }
 0x6e3   : > { %4231 = vst.msk [vmem:[#allocation4 + $0xe0] sm:$0xff] %vm4202_vm5, %v4163_v16  ;;  %v4548_v37 = vpop.permute.xlu0 %4547 }
 0x6e4   : > { %v5147_v30 = vmax.f32 %v5115_v56, 0.0  ;;  %4224 = vst.msk [vmem:[#allocation4 + $0xa8] sm:$0xff] %vm4202_vm5, %v4149_v26 }
 0x6e5   : > { %4617 = vst.msk [vmem:[#allocation4 + $0xd8] sm:$0xff] %vm4589_vm7, %v4548_v37  ;;  %v4845_v35 = vld [vmem:[#allocation4 + $0x98] sm:$0xff]  ;;  %v8464_v11 = vpop.f32.mrf.mxu0  ;;  %v2668_v37 = vmul.f32 %v8224_v55, %v8393_v24 }
 0x6e6   : > { %v5179_v6 = vadd.f32 %v5147_v30, %v2730_v33  ;;  %4810 = vst.msk [vmem:[#allocation4 + $0xd8] sm:$0xff] %vm4782_vm8, %v4741_v31  ;;  %5631 = vmatmul.msk.f32.gmra.mxu2 %vm4858_vm9, %v4845_v35 }
 0x6e7   : > { %v2703_v27 = vadd.f32 %v8238_v3, %v2668_v37 }
 0x6e8   : > { %5211 = vst.msk [vmem:[%s8277_s22 + $0x48] sm:$0xff] %vm3117_vm14, %v5179_v6  ;;  %v5002_v49 = vpop.f32.mrf.mxu2 }
 0x6e9   : > { %v5081_v46 = vmul.f32 %v8246_v50, %v5002_v49  ;;  %v2735_v24 = vmax.f32 %v2703_v27, 0.0 }
 0x6ea   : > { %v4534_v0 = vpop.permute.xlu1 %4533  ;;  %v4359_v63 = vpop.permute.xlu2 %4358 }
 0x6eb   : > { %v5116_v10 = vadd.f32 %v8256_v29, %v5081_v46  ;;  %v4147_v22 = vpop.permute.xlu0 %4146 }
 0x6ec   : > { %4223 = vst.msk [vmem:[#allocation4 + $0xa0] sm:$0xff] %vm4202_vm5, %v4147_v22 }
 0x6ed   : > { %v5148_v45 = vmax.f32 %v5116_v10, 0.0  ;;  %4417 = vst.msk [vmem:[#allocation4 + $0xa0] sm:$0xff] %vm4396_vm6, %v4341_v57  ;;  %v4853_v41 = vld [vmem:[#allocation4 + $0xd8] sm:$0xff]  ;;  %v2701_v57 = vadd.f32 %v8238_v3, %v2666_v42  ;;  %v8476_v36 = vpop.f32.mrf.mxu0 }
 0x6ee   : > { %4610 = vst.msk [vmem:[#allocation4 + $0xa0] sm:$0xff] %vm4589_vm7, %v4534_v0  ;;  %5639 = vmatmul.msk.f32.gmra.mxu3 %vm4858_vm9, %v4853_v41 }
 0x6ef   : > { %v5180_v54 = vadd.f32 %v5148_v45, %v2731_v52  ;;  %v2733_v60 = vmax.f32 %v2701_v57, 0.0 }
 0x6f1   : > { %5212 = vst.msk [vmem:[%s8277_s22 + $0x50] sm:$0xff] %vm3117_vm14, %v5180_v54  ;;  %v5005_v1 = vpop.f32.mrf.mxu2 }
 0x6f2   : > { %v5082_v58 = vmul.f32 %v8246_v50, %v5005_v1  ;;  %v4743_v53 = vpop.permute.xlu1 %4742  ;;  %v4729_v38 = vpop.permute.xlu2 %4728  ;;  %v2704_v1 = vadd.f32 %v8238_v3, %v2669_v15 }
 0x6f3   : > { %v4357_v31 = vpop.permute.xlu0 %4356 }
 0x6f4   : > { %v5117_v61 = vadd.f32 %v8256_v29, %v5082_v58  ;;  %4425 = vst.msk [vmem:[#allocation4 + $0xe0] sm:$0xff] %vm4396_vm6, %v4357_v31 }
 0x6f5   : > { %4618 = vst.msk [vmem:[#allocation4 + $0xe0] sm:$0xff] %vm4589_vm7, %v4550_v20  ;;  %v2667_v20 = vmul.f32 %v8224_v55, %v8376_v23  ;;  %v8491_v56 = vpop.f32.mrf.mxu0 }
 0x6f6   : > { %v5149_v2 = vmax.f32 %v5117_v61, 0.0  ;;  %4811 = vst.msk [vmem:[#allocation4 + $0xe0] sm:$0xff] %vm4782_vm8, %v4743_v53  ;;  %v2736_v61 = vmax.f32 %v2704_v1, 0.0 }
 0x6f7   : > { %v2702_v28 = vadd.f32 %v8238_v3, %v2667_v20 }
 0x6f8   : > { %v5181_v4 = vadd.f32 %v5149_v2, %v2732_v59 }
 0x6f9   : > { %v2734_v16 = vmax.f32 %v2702_v28, 0.0 }
 0x6fa   : > { %5213 = vst.msk [vmem:[%s8277_s22 + $0x58] sm:$0xff] %vm3117_vm14, %v5181_v4  ;;  %v4343_v14 = vpop.permute.xlu1 %4342  ;;  %v4167_v25 = vpop.permute.xlu2 %4166  ;;  %v2670_v4 = vmul.f32 %v8224_v55, %v8421_v19 }
 0x6fb   : > { %4418 = vst.msk [vmem:[#allocation4 + $0xa8] sm:$0xff] %vm4396_vm6, %v4343_v14  ;;  %v4727_v43 = vpop.permute.xlu0 %4726 }
 0x6fc   : > { %4233 = vst.msk [vmem:[#allocation4 + $0xf0] sm:$0xff] %vm4202_vm5, %v4167_v25 }
 0x6fd   : > { %4803 = vst.msk [vmem:[#allocation4 + $0xa0] sm:$0xff] %vm4782_vm8, %v4727_v43  ;;  %v4854_v47 = vld [vmem:[#allocation4 + $0xe0] sm:$0xff]  ;;  %v8505_v0 = vpop.f32.mrf.mxu0  ;;  %v2705_v43 = vadd.f32 %v8238_v3, %v2670_v4 }
 0x6fe   : > { %5640 = vmatmul.msk.f32.gmra.mxu3 %vm4858_vm9, %v4854_v47 }
 0x6ff   : > { %v5008_v51 = vpop.f32.mrf.mxu2 }
 0x700   : > { %v5083_v13 = vmul.f32 %v8246_v50, %v5008_v51 }
 0x702   : > { %v5118_v12 = vadd.f32 %v8256_v29, %v5083_v13  ;;  %v4552_v62 = vpop.permute.xlu1 %4551 }
 0x703   : > { %v4165_v44 = vpop.permute.xlu0 %4164 }
 0x704   : > { %v5150_v9 = vmax.f32 %v5118_v12, 0.0  ;;  %4232 = vst.msk [vmem:[#allocation4 + $0xe8] sm:$0xff] %vm4202_vm5, %v4165_v44  ;;  %v4846_v39 = vld [vmem:[#allocation4 + $0xa0] sm:$0xff] }
 0x705   : > { %4426 = vst.msk [vmem:[#allocation4 + $0xe8] sm:$0xff] %vm4396_vm6, %v4359_v63  ;;  %5632 = vmatmul.msk.f32.gmra.mxu2 %vm4858_vm9, %v4846_v39  ;;  %v4538_v63 = vpop.permute.xlu2 %4537  ;;  %v8516_v40 = vpop.f32.mrf.mxu0 }
 0x706   : > { %v5182_v48 = vadd.f32 %v5150_v9, %v2733_v60  ;;  %4619 = vst.msk [vmem:[#allocation4 + $0xe8] sm:$0xff] %vm4589_vm7, %v4552_v62  ;;  %v2737_v62 = vmax.f32 %v2705_v43, 0.0 }
 0x708   : > { %5214 = vst.msk [vmem:[%s8277_s22 + $0x60] sm:$0xff] %vm3117_vm14, %v5182_v48  ;;  %v5011_v17 = vpop.f32.mrf.mxu2 }
 0x709   : > { %v5084_v21 = vmul.f32 %v8246_v50, %v5011_v17 }
 0x70a   : > { %v4151_v8 = vpop.permute.xlu1 %4150 }
 0x70b   : > { %v5119_v34 = vadd.f32 %v8256_v29, %v5084_v21  ;;  %4225 = vst.msk [vmem:[#allocation4 + $0xb0] sm:$0xff] %vm4202_vm5, %v4151_v8  ;;  %v4536_v23 = vpop.permute.xlu0 %4535 }
 0x70c   : > { %4611 = vst.msk [vmem:[#allocation4 + $0xa8] sm:$0xff] %vm4589_vm7, %v4536_v23 }
 0x70d   : > { %v5151_v26 = vmax.f32 %v5119_v34, 0.0  ;;  %4804 = vst.msk [vmem:[#allocation4 + $0xa8] sm:$0xff] %vm4782_vm8, %v4729_v38  ;;  %v4747_v58 = vpop.permute.xlu2 %4746  ;;  %v2627_v42 = vpop.f32.mrf.mxu0 }
 0x70e   : > { %v2678_v44 = vmul.f32 %v8224_v55, %v2627_v42 }
 0x70f   : > { %v5183_v33 = vadd.f32 %v5151_v26, %v2734_v16 }
 0x710   : > { %v2713_v20 = vadd.f32 %v8238_v3, %v2678_v44  ;;  %v8831_v44 = vld [vmem:[#allocation18_spill] sm:$0xff] }
 0x711   : > { %5215 = vst.msk [vmem:[%s8277_s22 + $0x68] sm:$0xff] %vm3117_vm14, %v5183_v33  ;;  %v5014_v30 = vpop.f32.mrf.mxu2  ;;  %v8829_v33 = vld [vmem:[#allocation7_spill] sm:$0xff] }
 0x712   : > { %v5085_v35 = vmul.f32 %v8246_v50, %v5014_v30  ;;  %v4361_v6 = vpop.permute.xlu1 %4360  ;;  %v2745_v34 = vmax.f32 %v2713_v20, 0.0  ;;  %v2679_v30 = vmul.f32 %v8224_v55, %v8829_v33 }
 0x713   : > { %4427 = vst.msk [vmem:[#allocation4 + $0xf0] sm:$0xff] %vm4396_vm6, %v4361_v6  ;;  %v4745_v49 = vpop.permute.xlu0 %4744 }
 0x714   : > { %v5120_v32 = vadd.f32 %v8256_v29, %v5085_v35  ;;  %4812 = vst.msk [vmem:[#allocation4 + $0xe8] sm:$0xff] %vm4782_vm8, %v4745_v49  ;;  %v4847_v46 = vld [vmem:[#allocation4 + $0xa8] sm:$0xff]  ;;  %v2714_v35 = vadd.f32 %v8238_v3, %v2679_v30 }
 0x715   : > { %5633 = vmatmul.msk.f32.gmra.mxu2 %vm4858_vm9, %v4847_v46  ;;  %v4347_v47 = vpop.permute.xlu2 %4346  ;;  %v2671_v46 = vmul.f32 %v8224_v55, %v8435_v7  ;;  %v2672_v7 = vmul.f32 %v8224_v55, %v8452_v18 }
 0x716   : > { %v5152_v10 = vmax.f32 %v5120_v32, 0.0 }
 0x718   : > { %v5184_v22 = vadd.f32 %v5152_v10, %v2735_v24  ;;  %v2746_v24 = vmax.f32 %v2714_v35, 0.0 }
 0x71a   : > { %5216 = vst.msk [vmem:[%s8277_s22 + $0x70] sm:$0xff] %vm3117_vm14, %v5184_v22  ;;  %v4731_v52 = vpop.permute.xlu1 %4730 }
 0x71b   : > { %v4345_v45 = vpop.permute.xlu0 %4344  ;;  %v4855_v41 = vld [vmem:[#allocation4 + $0xe8] sm:$0xff] }
 0x71c   : > { %4419 = vst.msk [vmem:[#allocation4 + $0xb0] sm:$0xff] %vm4396_vm6, %v4345_v45  ;;  %5641 = vmatmul.msk.f32.gmra.mxu3 %vm4858_vm9, %v4855_v41 }
 0x71d   : > { %4612 = vst.msk [vmem:[#allocation4 + $0xb0] sm:$0xff] %vm4589_vm7, %v4538_v63  ;;  %v4556_v17 = vpop.permute.xlu2 %4555 }
 0x71e   : > { %4805 = vst.msk [vmem:[#allocation4 + $0xb0] sm:$0xff] %vm4782_vm8, %v4731_v52  ;;  %v2706_v52 = vadd.f32 %v8238_v3, %v2671_v46 }
 0x71f   : > { %v5017_v54 = vpop.f32.mrf.mxu2 }
 0x720   : > { %v5086_v53 = vmul.f32 %v8246_v50, %v5017_v54  ;;  %v2738_v15 = vmax.f32 %v2706_v52, 0.0 }
 0x722   : > { %v5121_v38 = vadd.f32 %v8256_v29, %v5086_v53  ;;  %v4169_v5 = vpop.permute.xlu1 %4168  ;;  %v2707_v53 = vadd.f32 %v8238_v3, %v2672_v7 }
 0x723   : > { %4234 = vst.msk [vmem:[#allocation4 + $0xf8] sm:$0xff] %vm4202_vm5, %v4169_v5  ;;  %v4554_v31 = vpop.permute.xlu0 %4553 }
 0x724   : > { %v5153_v59 = vmax.f32 %v5121_v38, 0.0  ;;  %4620 = vst.msk [vmem:[#allocation4 + $0xf0] sm:$0xff] %vm4589_vm7, %v4554_v31  ;;  %v8830_v31 = vld [vmem:[#allocation9_spill] sm:$0xff] }
 0x725   : > { %4813 = vst.msk [vmem:[#allocation4 + $0xf0] sm:$0xff] %vm4782_vm8, %v4747_v58  ;;  %v4848_v2 = vld [vmem:[#allocation4 + $0xb0] sm:$0xff] }
 0x726   : > { %v5185_v14 = vadd.f32 %v5153_v59, %v2736_v61  ;;  %5634 = vmatmul.msk.f32.gmra.mxu2 %vm4858_vm9, %v4848_v2  ;;  %v2680_v61 = vmul.f32 %v8224_v55, %v8830_v31  ;;  %v2739_v59 = vmax.f32 %v2707_v53, 0.0 }
 0x728   : > { %5217 = vst.msk [vmem:[%s8277_s22 + $0x78] sm:$0xff] %vm3117_vm14, %v5185_v14 }
 0x729   : > { %v5020_v25 = vpop.f32.mrf.mxu2 }
 0x72a   : > { %v5087_v51 = vmul.f32 %v8246_v50, %v5020_v25  ;;  %v4540_v57 = vpop.permute.xlu1 %4539  ;;  %v2715_v25 = vadd.f32 %v8238_v3, %v2680_v61 }
 0x72b   : > { %v4153_v13 = vpop.permute.xlu0 %4152 }
 0x72c   : > { %v5122_v12 = vadd.f32 %v8256_v29, %v5087_v51  ;;  %4226 = vst.msk [vmem:[#allocation4 + $0xb8] sm:$0xff] %vm4202_vm5, %v4153_v13  ;;  %v4856_v19 = vld [vmem:[#allocation4 + $0xf0] sm:$0xff]  ;;  %v2747_v42 = vmax.f32 %v2715_v25, 0.0  ;;  %v2673_v51 = vmul.f32 %v8224_v55, %v8464_v11 }
 0x72d   : > { %4420 = vst.msk [vmem:[#allocation4 + $0xb8] sm:$0xff] %vm4396_vm6, %v4347_v47  ;;  %5642 = vmatmul.msk.f32.gmra.mxu3 %vm4858_vm9, %v4856_v19 }
 0x72e   : > { %v5154_v60 = vmax.f32 %v5122_v12, 0.0  ;;  %4613 = vst.msk [vmem:[#allocation4 + $0xb8] sm:$0xff] %vm4589_vm7, %v4540_v57  ;;  %v2708_v12 = vadd.f32 %v8238_v3, %v2673_v51 }
 0x730   : > { %v5186_v9 = vadd.f32 %v5154_v60, %v2737_v62  ;;  %v2681_v60 = vmul.f32 %v8224_v55, %v8831_v44 }
 0x731   : > { %v5044_v39 = vpop.f32.mrf.mxu3 }
 0x732   : > { %5218 = vst.msk [vmem:[%s8277_s22 + $0x80] sm:$0xff] %vm3117_vm14, %v5186_v9  ;;  %v5095_v48 = vmul.f32 %v8246_v50, %v5044_v39  ;;  %v4749_v21 = vpop.permute.xlu1 %4748  ;;  %v2740_v9 = vmax.f32 %v2708_v12, 0.0  ;;  %v2716_v11 = vadd.f32 %v8238_v3, %v2681_v60 }
 0x733   : > { %v4363_v28 = vpop.permute.xlu0 %4362 }
 0x734   : > { %v5130_v8 = vadd.f32 %v8256_v29, %v5095_v48  ;;  %4428 = vst.msk [vmem:[#allocation4 + $0xf8] sm:$0xff] %vm4396_vm6, %v4363_v28 }
 0x735   : > { %4621 = vst.msk [vmem:[#allocation4 + $0xf8] sm:$0xff] %vm4589_vm7, %v4556_v17 }
 0x736   : > { %v5162_v23 = vmax.f32 %v5130_v8, 0.0  ;;  %4814 = vst.msk [vmem:[#allocation4 + $0xf8] sm:$0xff] %vm4782_vm8, %v4749_v21  ;;  %v2748_v21 = vmax.f32 %v2716_v11, 0.0 }
 0x738   : > { %v5194_v16 = vadd.f32 %v5162_v23, %v2745_v34  ;;  %v8832_v23 = vld [vmem:[#allocation8_spill] sm:$0xff] }
 0x73a   : > { %5226 = vst.msk [vmem:[%s8277_s22 + $0xc0] sm:$0xff] %vm3117_vm14, %v5194_v16  ;;  %v2682_v16 = vmul.f32 %v8224_v55, %v8832_v23 }
 0x73b   : > { %v4733_v26 = vpop.permute.xlu0 %4732 }
 0x73c   : > { %4806 = vst.msk [vmem:[#allocation4 + $0xb8] sm:$0xff] %vm4782_vm8, %v4733_v26 }
 0x73d   : > { %v4857_v37 = vld [vmem:[#allocation4 + $0xf8] sm:$0xff] }
 0x73e   : > { %5643 = vmatmul.msk.f32.gmra.mxu3 %vm4858_vm9, %v4857_v37  ;;  %v2717_v37 = vadd.f32 %v8238_v3, %v2682_v16 }
 0x740   : > { %v2749_v35 = vmax.f32 %v2717_v37, 0.0 }
 0x741   : > { %v5047_v27 = vpop.f32.mrf.mxu3 }
 0x742   : > { %v5096_v6 = vmul.f32 %v8246_v50, %v5047_v27  ;;  %v2674_v27 = vmul.f32 %v8224_v55, %v8476_v36  ;;  %v2675_v36 = vmul.f32 %v8224_v55, %v8491_v56 }
 0x743   : > { %v4849_v49 = vld [vmem:[#allocation4 + $0xb8] sm:$0xff] }
 0x744   : > { %v5131_v32 = vadd.f32 %v8256_v29, %v5096_v6  ;;  %5635 = vmatmul.msk.f32.gmra.mxu2 %vm4858_vm9, %v4849_v49  ;;  %v2709_v46 = vadd.f32 %v8238_v3, %v2674_v27 }
 0x746   : > { %v5163_v63 = vmax.f32 %v5131_v32, 0.0 }
 0x748   : > { %v5195_v10 = vadd.f32 %v5163_v63, %v2746_v24  ;;  %v5023_v22 = vpop.f32.mrf.mxu2 }
 0x749   : > { %v5088_v45 = vmul.f32 %v8246_v50, %v5023_v22 }
 0x74a   : > { %5227 = vst.msk [vmem:[%s8277_s22 + $0xc8] sm:$0xff] %vm3117_vm14, %v5195_v10  ;;  %v2741_v10 = vmax.f32 %v2709_v46, 0.0  ;;  %v5345_v46 = vld [vmem:[%s8277_s22 + $0x28] sm:$0xff] (%p5850_p5) }
 0x74b   : > { %v5123_v41 = vadd.f32 %v8256_v29, %v5088_v45  ;;  %5346 = vst [vmem:[%s8658_s23 + $0x28] sm:$0xff] (%p5850_p5), %v5345_v46 }
 0x74d   : > { %v5155_v54 = vmax.f32 %v5123_v41, 0.0  ;;  %v2710_v41 = vadd.f32 %v8238_v3, %v2675_v36  ;;  %v5357_v36 = vld [vmem:[%s8277_s22 + $0x58] sm:$0xff] (%p5850_p5) }
 0x74e   : > { %5358 = vst [vmem:[%s8658_s23 + $0x58] sm:$0xff] (%p5850_p5), %v5357_v36 }
 0x74f   : > { %v5187_v1 = vadd.f32 %v5155_v54, %v2738_v15 }
 0x751   : > { %5219 = vst.msk [vmem:[%s8277_s22 + $0x88] sm:$0xff] %vm3117_vm14, %v5187_v1  ;;  %v8833_v1 = vld [vmem:[#allocation11_spill] sm:$0xff] }
 0x752   : > { %v2683_v7 = vmul.f32 %v8224_v55, %v8833_v1  ;;  %v5367_v1 = vld [vmem:[%s8277_s22 + $0x80] sm:$0xff] (%p5850_p5) }
 0x753   : > { %5368 = vst [vmem:[%s8658_s23 + $0x100] sm:$0xff] (%p5850_p5), %v5367_v1 }
 0x754   : > { %v2718_v31 = vadd.f32 %v8238_v3, %v2683_v7 }
 0x758   : > { %v5026_v58 = vpop.f32.mrf.mxu2  ;;  %v5369_v7 = vld [vmem:[%s8277_s22 + $0x88] sm:$0xff] (%p5850_p5) }
 0x759   : > { %v5089_v38 = vmul.f32 %v8246_v50, %v5026_v58  ;;  %v2742_v58 = vmax.f32 %v2710_v41, 0.0  ;;  %v5361_v41 = vld [vmem:[%s8277_s22 + $0x68] sm:$0xff] (%p5850_p5)  ;;  %5370 = vst [vmem:[%s8658_s23 + $0x108] sm:$0xff] (%p5850_p5), %v5369_v7 }
 0x75a   : > { %5362 = vst [vmem:[%s8658_s23 + $0x68] sm:$0xff] (%p5850_p5), %v5361_v41 }
 0x75b   : > { %v5124_v5 = vadd.f32 %v8256_v29, %v5089_v38 }
 0x75d   : > { %v5156_v2 = vmax.f32 %v5124_v5, 0.0 }
 0x75f   : > { %v5188_v4 = vadd.f32 %v5156_v2, %v2739_v59  ;;  %v5050_v14 = vpop.f32.mrf.mxu3  ;;  %v2750_v59 = vmax.f32 %v2718_v31, 0.0 }
 0x760   : > { %v5097_v43 = vmul.f32 %v8246_v50, %v5050_v14 }
 0x761   : > { %5220 = vst.msk [vmem:[%s8277_s22 + $0x90] sm:$0xff] %vm3117_vm14, %v5188_v4  ;;  %v2676_v4 = vmul.f32 %v8224_v55, %v8505_v0 }
 0x762   : > { %v5132_v18 = vadd.f32 %v8256_v29, %v5097_v43 }
 0x763   : > { %v2711_v43 = vadd.f32 %v8238_v3, %v2676_v4 }
 0x764   : > { %v5164_v47 = vmax.f32 %v5132_v18, 0.0 }
 0x766   : > { %v5196_v57 = vadd.f32 %v5164_v47, %v2747_v42  ;;  %v8834_v47 = vld [vmem:[#allocation20_spill] sm:$0xff] }
 0x767   : > { %v2684_v51 = vmul.f32 %v8224_v55, %v8834_v47  ;;  %v5720_v55 = vld [vmem:[%s8735_s3] ss:$0 sm:$0xff] }
 0x768   : > { %5228 = vst.msk [vmem:[%s8277_s22 + $0xd0] sm:$0xff] %vm3117_vm14, %v5196_v57  ;;  %v2743_v57 = vmax.f32 %v2711_v43, 0.0 }
 0x769   : > { %v5029_v13 = vpop.f32.mrf.mxu2  ;;  %v2719_v0 = vadd.f32 %v8238_v3, %v2684_v51 }
 0x76a   : > { %v5090_v19 = vmul.f32 %v8246_v50, %v5029_v13 }
 0x76b   : > { %v2751_v60 = vmax.f32 %v2719_v0, 0.0 }
 0x76c   : > { %v5125_v62 = vadd.f32 %v8256_v29, %v5090_v19 }
 0x76e   : > { %v5157_v39 = vmax.f32 %v5125_v62, 0.0 }
 0x770   : > { %v5189_v20 = vadd.f32 %v5157_v39, %v2740_v9 }
 0x771   : > { %v5053_v48 = vpop.f32.mrf.mxu3 }
 0x772   : > { %5221 = vst.msk [vmem:[%s8277_s22 + $0x98] sm:$0xff] %vm3117_vm14, %v5189_v20  ;;  %v5098_v17 = vmul.f32 %v8246_v50, %v5053_v48  ;;  %v8835_v20 = vld [vmem:[#allocation10_spill] sm:$0xff] }
 0x773   : > { %v2685_v48 = vmul.f32 %v5720_v55, %v8835_v20 }
 0x774   : > { %v5133_v28 = vadd.f32 %v8256_v29, %v5098_v17 }
 0x775   : > { %v2720_v17 = vadd.f32 %v8238_v3, %v2685_v48 }
 0x776   : > { %v5165_v8 = vmax.f32 %v5133_v28, 0.0 }
 0x778   : > { %v5197_v34 = vadd.f32 %v5165_v8, %v2748_v21  ;;  %v2677_v21 = vmul.f32 %v5720_v55, %v8516_v40 }
 0x77a   : > { %5229 = vst.msk [vmem:[%s8277_s22 + $0xd8] sm:$0xff] %vm3117_vm14, %v5197_v34  ;;  %v2752_v34 = vmax.f32 %v2720_v17, 0.0 }
 0x781   : > { %v5056_v26 = vpop.f32.mrf.mxu3  ;;  %v5389_v4 = vld [vmem:[%s8277_s22 + $0xd8] sm:$0xff] (%p5850_p5) }
 0x782   : > { %v5099_v33 = vmul.f32 %v8246_v50, %v5056_v26  ;;  %v5721_v26 = vld [vmem:[%s8736_s4] ss:$0 sm:$0xff]  ;;  %5390 = vst [vmem:[%s8658_s23 + $0x158] sm:$0xff] (%p5850_p5), %v5389_v4 }
 0x783   : > { %v2712_v37 = vadd.f32 %v5721_v26, %v2677_v21 }
 0x784   : > { %v5134_v30 = vadd.f32 %v8256_v29, %v5099_v33 }
 0x785   : > { %v2744_v27 = vmax.f32 %v2712_v37, 0.0 }
 0x786   : > { %v5166_v6 = vmax.f32 %v5134_v30, 0.0 }
 0x788   : > { %v5198_v49 = vadd.f32 %v5166_v6, %v2749_v35  ;;  %v5032_v32 = vpop.f32.mrf.mxu2  ;;  %v5339_v6 = vld [vmem:[%s8277_s22 + $0x10] sm:$0xff] (%p5850_p5) }
 0x789   : > { %v5091_v24 = vmul.f32 %v8246_v50, %v5032_v32  ;;  %v5343_v32 = vld [vmem:[%s8277_s22 + $0x20] sm:$0xff] (%p5850_p5)  ;;  %5340 = vst [vmem:[%s8658_s23 + $0x10] sm:$0xff] (%p5850_p5), %v5339_v6 }
 0x78a   : > { %5230 = vst.msk [vmem:[%s8277_s22 + $0xe0] sm:$0xff] %vm3117_vm14, %v5198_v49  ;;  %v5341_v49 = vld [vmem:[%s8277_s22 + $0x18] sm:$0xff] (%p5850_p5) }
 0x78b   : > { %v5126_v63 = vadd.f32 %v8256_v29, %v5091_v24  ;;  %5342 = vst [vmem:[%s8658_s23 + $0x18] sm:$0xff] (%p5850_p5), %v5341_v49  ;;  %v5347_v24 = vld [vmem:[%s8277_s22 + $0x30] sm:$0xff] (%p5850_p5) }
 0x78c   : > { %5344 = vst [vmem:[%s8658_s23 + $0x20] sm:$0xff] (%p5850_p5), %v5343_v32 }
 0x78d   : > { %v5158_v22 = vmax.f32 %v5126_v63, 0.0  ;;  %v5349_v63 = vld [vmem:[%s8277_s22 + $0x38] sm:$0xff] (%p5850_p5)  ;;  %5348 = vst [vmem:[%s8658_s23 + $0x30] sm:$0xff] (%p5850_p5), %v5347_v24 }
 0x78e   : > { %5350 = vst [vmem:[%s8658_s23 + $0x38] sm:$0xff] (%p5850_p5), %v5349_v63 }
 0x78f   : > { %v5190_v52 = vadd.f32 %v5158_v22, %v2741_v10  ;;  %v5351_v10 = vld [vmem:[%s8277_s22 + $0x40] sm:$0xff] (%p5850_p5)  ;;  %v5353_v22 = vld [vmem:[%s8277_s22 + $0x48] sm:$0xff] (%p5850_p5) }
 0x790   : > { %5352 = vst [vmem:[%s8658_s23 + $0x40] sm:$0xff] (%p5850_p5), %v5351_v10 }
 0x791   : > { %5222 = vst.msk [vmem:[%s8277_s22 + $0xa0] sm:$0xff] %vm3117_vm14, %v5190_v52  ;;  %v5355_v52 = vld [vmem:[%s8277_s22 + $0x50] sm:$0xff] (%p5850_p5) }
 0x792   : > { %5354 = vst [vmem:[%s8658_s23 + $0x48] sm:$0xff] (%p5850_p5), %v5353_v22 }
 0x793   : > { %5356 = vst [vmem:[%s8658_s23 + $0x50] sm:$0xff] (%p5850_p5), %v5355_v52 }
 0x798   : > { %v5035_v45 = vpop.f32.mrf.mxu2 }
 0x799   : > { %v5092_v15 = vmul.f32 %v8246_v50, %v5035_v45  ;;  %v5359_v45 = vld [vmem:[%s8277_s22 + $0x60] sm:$0xff] (%p5850_p5) }
 0x79a   : > { %5360 = vst [vmem:[%s8658_s23 + $0x60] sm:$0xff] (%p5850_p5), %v5359_v45 }
 0x79b   : > { %v5127_v54 = vadd.f32 %v8256_v29, %v5092_v15  ;;  %v5363_v15 = vld [vmem:[%s8277_s22 + $0x70] sm:$0xff] (%p5850_p5) }
 0x79c   : > { %5364 = vst [vmem:[%s8658_s23 + $0x70] sm:$0xff] (%p5850_p5), %v5363_v15 }
 0x79d   : > { %v5159_v53 = vmax.f32 %v5127_v54, 0.0  ;;  %v5365_v54 = vld [vmem:[%s8277_s22 + $0x78] sm:$0xff] (%p5850_p5) }
 0x79e   : > { %5366 = vst [vmem:[%s8658_s23 + $0x78] sm:$0xff] (%p5850_p5), %v5365_v54 }
 0x79f   : > { %v5191_v38 = vadd.f32 %v5159_v53, %v2742_v58  ;;  %v5059_v5 = vpop.f32.mrf.mxu3  ;;  %v5371_v58 = vld [vmem:[%s8277_s22 + $0x90] sm:$0xff] (%p5850_p5)  ;;  %v5373_v53 = vld [vmem:[%s8277_s22 + $0x98] sm:$0xff] (%p5850_p5) }
 0x7a0   : > { %v5100_v61 = vmul.f32 %v8246_v50, %v5059_v5  ;;  %5372 = vst [vmem:[%s8658_s23 + $0x110] sm:$0xff] (%p5850_p5), %v5371_v58 }
 0x7a1   : > { %5223 = vst.msk [vmem:[%s8277_s22 + $0xa8] sm:$0xff] %vm3117_vm14, %v5191_v38  ;;  %v5375_v38 = vld [vmem:[%s8277_s22 + $0xa0] sm:$0xff] (%p5850_p5) }
 0x7a2   : > { %v5135_v56 = vadd.f32 %v8256_v29, %v5100_v61  ;;  %5374 = vst [vmem:[%s8658_s23 + $0x118] sm:$0xff] (%p5850_p5), %v5373_v53 }
 0x7a3   : > { %5376 = vst [vmem:[%s8658_s23 + $0x120] sm:$0xff] (%p5850_p5), %v5375_v38 }
 0x7a4   : > { %v5167_v2 = vmax.f32 %v5135_v56, 0.0  ;;  %v5383_v56 = vld [vmem:[%s8277_s22 + $0xc0] sm:$0xff] (%p5850_p5) }
 0x7a5   : > { %5384 = vst [vmem:[%s8658_s23 + $0x140] sm:$0xff] (%p5850_p5), %v5383_v56 }
 0x7a6   : > { %v5199_v14 = vadd.f32 %v5167_v2, %v2750_v59  ;;  %v5385_v59 = vld [vmem:[%s8277_s22 + $0xc8] sm:$0xff] (%p5850_p5)  ;;  %v5387_v2 = vld [vmem:[%s8277_s22 + $0xd0] sm:$0xff] (%p5850_p5) }
 0x7a7   : > { %5386 = vst [vmem:[%s8658_s23 + $0x148] sm:$0xff] (%p5850_p5), %v5385_v59 }
 0x7a8   : > { %5231 = vst.msk [vmem:[%s8277_s22 + $0xe8] sm:$0xff] %vm3117_vm14, %v5199_v14  ;;  %v5377_v5 = vld [vmem:[%s8277_s22 + $0xa8] sm:$0xff] (%p5850_p5)  ;;  %v5391_v14 = vld [vmem:[%s8277_s22 + $0xe0] sm:$0xff] (%p5850_p5) }
 0x7a9   : > { %v5038_v25 = vpop.f32.mrf.mxu2  ;;  %5378 = vst [vmem:[%s8658_s23 + $0x128] sm:$0xff] (%p5850_p5), %v5377_v5 }
 0x7aa   : > { %v5093_v18 = vmul.f32 %v8246_v50, %v5038_v25  ;;  %5388 = vst [vmem:[%s8658_s23 + $0x150] sm:$0xff] (%p5850_p5), %v5387_v2 }
 0x7ab   : > { %5392 = vst [vmem:[%s8658_s23 + $0x160] sm:$0xff] (%p5850_p5), %v5391_v14 }
 0x7ac   : > { %v5128_v42 = vadd.f32 %v8256_v29, %v5093_v18 }
 0x7ae   : > { %v5160_v13 = vmax.f32 %v5128_v42, 0.0 }
 0x7af   : > { %v5393_v25 = vld [vmem:[%s8277_s22 + $0xe8] sm:$0xff] (%p5850_p5) }
 0x7b0   : > { %v5192_v12 = vadd.f32 %v5160_v13, %v2743_v57  ;;  %v5062_v19 = vpop.f32.mrf.mxu3  ;;  %5394 = vst [vmem:[%s8658_s23 + $0x168] sm:$0xff] (%p5850_p5), %v5393_v25 }
 0x7b1   : > { %v5101_v62 = vmul.f32 %v8246_v50, %v5062_v19 }
 0x7b2   : > { %5224 = vst.msk [vmem:[%s8277_s22 + $0xb0] sm:$0xff] %vm3117_vm14, %v5192_v12 }
 0x7b3   : > { %v5136_v44 = vadd.f32 %v8256_v29, %v5101_v62 }
 0x7b5   : > { %v5168_v9 = vmax.f32 %v5136_v44, 0.0 }
 0x7b7   : > { %v5200_v39 = vadd.f32 %v5168_v9, %v2751_v60 }
 0x7b9   : > { %5232 = vst.msk [vmem:[%s8277_s22 + $0xf0] sm:$0xff] %vm3117_vm14, %v5200_v39  ;;  %v5379_v31 = vld [vmem:[%s8277_s22 + $0xb0] sm:$0xff] (%p5850_p5) }
 0x7ba   : > { %5380 = vst [vmem:[%s8658_s23 + $0x130] sm:$0xff] (%p5850_p5), %v5379_v31 }
 0x7c0   : > { %v5395_v43 = vld [vmem:[%s8277_s22 + $0xf0] sm:$0xff] (%p5850_p5) }
 0x7c1   : > { %v5065_v11 = vpop.f32.mrf.mxu3  ;;  %5396 = vst [vmem:[%s8658_s23 + $0x170] sm:$0xff] (%p5850_p5), %v5395_v43 }
 0x7c2   : > { %v5102_v28 = vmul.f32 %v8246_v50, %v5065_v11 }
 0x7c4   : > { %v5137_v8 = vadd.f32 %v8256_v29, %v5102_v28 }
 0x7c6   : > { %v5169_v23 = vmax.f32 %v5137_v8, 0.0 }
 0x7c7   : > { %v5041_v16 = vpop.f32.mrf.mxu2 }
 0x7c8   : > { %v5201_v33 = vadd.f32 %v5169_v23, %v2752_v34  ;;  %v5094_v30 = vmul.f32 %v8246_v50, %v5041_v16  ;;  %v5335_v50 = vld [vmem:[%s8277_s22] sm:$0xff] (%p5850_p5) }
 0x7c9   : > { %5336 = vst [vmem:[%s8658_s23] sm:$0xff] (%p5850_p5), %v5335_v50 }
 0x7ca   : > { %5233 = vst.msk [vmem:[%s8277_s22 + $0xf8] sm:$0xff] %vm3117_vm14, %v5201_v33  ;;  %v5129_v3 = vadd.f32 %v8256_v29, %v5094_v30  ;;  %v5337_v29 = vld [vmem:[%s8277_s22 + $0x8] sm:$0xff] (%p5850_p5) }
 0x7cb   : > { %5338 = vst [vmem:[%s8658_s23 + $0x8] sm:$0xff] (%p5850_p5), %v5337_v29 }
 0x7cc   : > { %v5161_v35 = vmax.f32 %v5129_v3, 0.0  ;;  %5240 = sbr.rel (!%p5850_p5) target bundleno = 2009 (0x7d9), region = 106 }
 0x7ce   : > { %v5193_v40 = vadd.f32 %v5161_v35, %v2744_v27 }
 0x7d0   : > { %5225 = vst.msk [vmem:[%s8277_s22 + $0xb8] sm:$0xff] %vm3117_vm14, %v5193_v40 }
 0x7d1   : > { %v5397_v18 = vld [vmem:[%s8277_s22 + $0xf8] sm:$0xff] }
 0x7d2   : > { %5398 = vst [vmem:[%s8658_s23 + $0x178] sm:$0xff] %v5397_v18 }
 0x7d7   : > { %v5381_v61 = vld [vmem:[%s8277_s22 + $0xb8] sm:$0xff] }
 0x7d8   : > { %5382 = vst [vmem:[%s8658_s23 + $0x138] sm:$0xff] %v5381_v61 }
 0x7d9 PF: > { %p18_p12 = scmp.ge.s32.totalorder %s5838_s21, 4   ;;  %s8836_s17 = smov %s5740_s18 }
 0x7da   : > { %s8837_s18 = smov %s5848_s24  ;;  %s8838_s19 = smov %s5838_s21 }
 0x7db   :  { %20 = sbr.rel (!%p18_p12) target bundleno = 2 (0x2), region = 203 }

</bundles_post_ra>
